<compile_context>
chip_gen: v7x
topology: tpu7x:2x2x1
jax: 0.10.0
libtpu: 0.0.40
codegen_flags: <defaults>
</compile_context>

<pallas_src>
import functools

import jax
import jax.numpy as jnp
from jax import lax
from jax.experimental import pallas as pl
from jax.experimental.pallas import tpu as pltpu

# Finite "-inf" (plain Python float so kernels never close over a jax.Array
# constant -- that was the previous "captures constants [f32[]]" failure).
NEG_INF = -1e9

# Keep every kernel's scoped VMEM request under v7x's 64 MiB physical budget
# (and comfortably inside v5e/v6e's 128 MiB).
_VMEM_LIMIT = 48 * 1024 * 1024


def _cparams(*sems):
    return pltpu.CompilerParams(dimension_semantics=tuple(sems),
                                vmem_limit_bytes=_VMEM_LIMIT)


def _pick_tile(dim, cap, align):
    """Largest block <= cap that divides `dim` and is a multiple of `align`.
    Falls back to the full dim (always a legal block shape)."""
    if dim <= cap:
        return dim
    for t in range(cap, align - 1, -1):
        if dim % t == 0 and t % align == 0:
            return t
    return dim


# ----------------------------- linear kernels -----------------------------

def _linear_kernel(x_ref, w_ref, b_ref, o_ref, *, relu, residual):
    x = x_ref[...]
    # bf16 operands into the MXU, f32 accumulation; epilogue stays f32 (v5e-safe).
    y = jnp.dot(x.astype(jnp.bfloat16), w_ref[...].astype(jnp.bfloat16),
                preferred_element_type=jnp.float32)
    y = y + b_ref[...].astype(jnp.float32)
    if residual:
        y = y + x.astype(jnp.float32)     # matches torch: relu(W x + b + x), K == N
    if relu:
        y = jnp.maximum(y, 0.0)
    o_ref[...] = y.astype(o_ref.dtype)


def _linear_kernel_acc(x_ref, w_ref, b_ref, o_ref, acc_ref, *, relu):
    # K-tiled path: f32 accumulator in VMEM, init/finalize gated on the K axis.
    @pl.when(pl.program_id(2) == 0)
    def _():
        acc_ref[...] = jnp.zeros_like(acc_ref)

    acc_ref[...] += jnp.dot(x_ref[...].astype(jnp.bfloat16),
                            w_ref[...].astype(jnp.bfloat16),
                            preferred_element_type=jnp.float32)

    @pl.when(pl.program_id(2) == pl.num_programs(2) - 1)
    def _():
        y = acc_ref[...] + b_ref[...].astype(jnp.float32)
        if relu:
            y = jnp.maximum(y, 0.0)
        o_ref[...] = y.astype(o_ref.dtype)


def pallas_linear(x, w, b, *, relu=False, residual=False, out_dtype=jnp.bfloat16,
                  tile_m=256, tile_n=512, tile_k=2048):
    """x: (M, K), w: (K, N) bf16 (pre-transposed), b: (N,) f32 -> (M, N) out_dtype."""
    M, K = x.shape
    Kw, N = w.shape
    assert K == Kw
    if residual:
        assert K == N, "residual=True requires a square layer (K == N)"
    tm = _pick_tile(M, tile_m, 8)
    tn = N if residual else _pick_tile(N, tile_n, 128)
    b2 = b.reshape(1, N)

    # K-tiled accumulator path only for big reduction dims (keeps the
    # double-buffered activation/weight blocks inside the v7x VMEM budget).
    tk = _pick_tile(K, tile_k, 128) if ((not residual) and K > tile_k) else K
    if tk < K:
        kernel = functools.partial(_linear_kernel_acc, relu=relu)
        return pl.pallas_call(
            kernel,
            out_shape=jax.ShapeDtypeStruct((M, N), out_dtype),
            grid=(M // tm, N // tn, K // tk),
            in_specs=[
                pl.BlockSpec((tm, tk), lambda i, j, k: (i, k)),
                pl.BlockSpec((tk, tn), lambda i, j, k: (k, j)),
                pl.BlockSpec((1, tn), lambda i, j, k: (0, j)),
            ],
            out_specs=pl.BlockSpec((tm, tn), lambda i, j, k: (i, j)),
            scratch_shapes=[pltpu.VMEM((tm, tn), jnp.float32)],
            compiler_params=_cparams("parallel", "parallel", "arbitrary"),
        )(x, w, b2)

    kernel = functools.partial(_linear_kernel, relu=relu, residual=residual)
    return pl.pallas_call(
        kernel,
        out_shape=jax.ShapeDtypeStruct((M, N), out_dtype),
        grid=(M // tm, N // tn),
        in_specs=[
            pl.BlockSpec((tm, K), lambda i, j: (i, 0)),
            pl.BlockSpec((K, tn), lambda i, j: (0, j)),
            pl.BlockSpec((1, tn), lambda i, j: (0, j)),
        ],
        out_specs=pl.BlockSpec((tm, tn), lambda i, j: (i, j)),
        compiler_params=_cparams("parallel", "parallel"),
    )(x, w, b2)


# ------------------------- fused add + layernorm -------------------------

def _add_layernorm_kernel(x_ref, h_ref, g_ref, b_ref, o_ref):
    x = x_ref[...].astype(jnp.float32) + h_ref[...].astype(jnp.float32)
    mu = jnp.mean(x, axis=-1, keepdims=True)
    var = jnp.mean((x - mu) ** 2, axis=-1, keepdims=True)
    y = (x - mu) * lax.rsqrt(var + 1e-5)
    o_ref[...] = (y * g_ref[...] + b_ref[...]).astype(o_ref.dtype)


def pallas_add_layernorm(x2d, h2d, gamma, beta, *, out_dtype=jnp.bfloat16):
    """LayerNorm(x2d + h2d) over the last axis.  x2d/h2d: (M, E) (any float dtype)."""
    M, E = x2d.shape
    tm = _pick_tile(M, 1024, 8)      # mem-bound: biggest tile that fits -> ~HBM roofline
    return pl.pallas_call(
        _add_layernorm_kernel,
        out_shape=jax.ShapeDtypeStruct((M, E), out_dtype),
        grid=(M // tm,),
        in_specs=[
            pl.BlockSpec((tm, E), lambda i: (i, 0)),
            pl.BlockSpec((tm, E), lambda i: (i, 0)),
            pl.BlockSpec((1, E), lambda i: (0, 0)),
            pl.BlockSpec((1, E), lambda i: (0, 0)),
        ],
        out_specs=pl.BlockSpec((tm, E), lambda i: (i, 0)),
        compiler_params=_cparams("parallel"),
    )(x2d, h2d, gamma.reshape(1, E), beta.reshape(1, E))


# ------------------------------- attention -------------------------------

def _attn_core(q, k, v, kpm_ref, wo_ref, bo_ref, o_ref, *, num_heads, causal):
    """q: (Lq, E) bf16 (already scaled by 1/sqrt(Dh)); k/v: (Lk, E) bf16;
    kpm_ref: (1, Lk) int32 (1 = pad).  Writes the out-projected (Lq, E) result."""
    Lq, E = q.shape
    Lk = k.shape[0]
    H = num_heads
    Dh = E // H

    # Head split once, head-major -> a single batched MXU contraction per matmul.
    qh = q.reshape(Lq, H, Dh).transpose(1, 0, 2)          # (H, Lq, Dh)
    kh = k.reshape(Lk, H, Dh).transpose(1, 0, 2)          # (H, Lk, Dh)
    vh = v.reshape(Lk, H, Dh).transpose(1, 0, 2)          # (H, Lk, Dh)

    s = jnp.einsum('hqd,hkd->hqk', qh, kh,
                   preferred_element_type=jnp.float32)    # (H, Lq, Lk)

    pad = (kpm_ref[...] != 0).reshape(1, 1, Lk)           # key-padding mask
    s = jnp.where(pad, NEG_INF, s)
    if causal:
        qi = lax.broadcasted_iota(jnp.int32, (Lq, Lk), 0)
        ki = lax.broadcasted_iota(jnp.int32, (Lq, Lk), 1)
        s = jnp.where((ki > qi)[None, :, :], NEG_INF, s)

    m = jnp.max(s, axis=-1, keepdims=True)
    p = jnp.exp(s - m)                                    # unnormalized probs
    denom = jnp.sum(p, axis=-1, keepdims=True)            # (H, Lq, 1)

    o = jnp.einsum('hqk,hkd->hqd', p.astype(jnp.bfloat16), vh,
                   preferred_element_type=jnp.float32)    # (H, Lq, Dh)
    # Deferred normalization: output-sized multiply instead of score-sized;
    # reciprocal on the EUP slot.
    o = o * pl.reciprocal(denom, approx=True)
    o = o.transpose(1, 0, 2).reshape(Lq, E)               # merge heads

    # Fused output projection (saves one HBM round trip of (B, Lq, E)).
    y = jnp.dot(o.astype(jnp.bfloat16), wo_ref[...].astype(jnp.bfloat16),
                preferred_element_type=jnp.float32)
    y = y + bo_ref[...].astype(jnp.float32)
    o_ref[...] = y.astype(o_ref.dtype)


def _mha_self_kernel(qkv_ref, kpm_ref, wo_ref, bo_ref, o_ref, *,
                     num_heads, scale, causal):
    qkv = qkv_ref[...]                                    # (L, 3E)
    E = qkv.shape[-1] // 3
    # fold 1/sqrt(Dh) into q (output-sized) instead of scaling the scores
    q = (qkv[:, :E].astype(jnp.float32) * scale).astype(jnp.bfloat16)
    k = qkv[:, E:2 * E].astype(jnp.bfloat16)
    v = qkv[:, 2 * E:].astype(jnp.bfloat16)
    _attn_core(q, k, v, kpm_ref, wo_ref, bo_ref, o_ref,
               num_heads=num_heads, causal=causal)


def _mha_cross_kernel(q_ref, kv_ref, kpm_ref, wo_ref, bo_ref, o_ref, *,
                      num_heads, scale, causal):
    E = q_ref.shape[-1]
    q = (q_ref[...].astype(jnp.float32) * scale).astype(jnp.bfloat16)
    kv = kv_ref[...]                                      # (Lk, 2E)
    k = kv[:, :E].astype(jnp.bfloat16)
    v = kv[:, E:].astype(jnp.bfloat16)
    _attn_core(q, k, v, kpm_ref, wo_ref, bo_ref, o_ref,
               num_heads=num_heads, causal=causal)


def pallas_self_attention(qkv, kpm, wo, bo, num_heads, *, causal=False,
                          out_dtype=jnp.bfloat16):
    """qkv: (B, L, 3E) fused projection; kpm: (B, L) int32 (1 = pad).
    Grid over batch ("parallel" -> v7x megacore split + pipelining); L is bounded
    by max_length (<= 50), so no Lq/Lk tiling is needed.
    TODO(synk): add a flash-style Lk grid axis with online-softmax scratch if this
    model is ever run with long sequences."""
    B, L, E3 = qkv.shape
    E = E3 // 3
    scale = 1.0 / float((E // num_heads) ** 0.5)
    kpm3 = kpm.reshape(B, 1, L)
    kernel = functools.partial(_mha_self_kernel, num_heads=num_heads,
                               scale=scale, causal=causal)
    return pl.pallas_call(
        kernel,
        out_shape=jax.ShapeDtypeStruct((B, L, E), out_dtype),
        grid=(B,),
        in_specs=[
            pl.BlockSpec((None, L, E3), lambda b: (b, 0, 0)),
            pl.BlockSpec((None, 1, L), lambda b: (b, 0, 0)),
            pl.BlockSpec((E, E), lambda b: (0, 0)),
            pl.BlockSpec((1, E), lambda b: (0, 0)),
        ],
        out_specs=pl.BlockSpec((None, L, E), lambda b: (b, 0, 0)),
        compiler_params=_cparams("parallel"),
    )(qkv, kpm3, wo, bo.reshape(1, E))


def pallas_cross_attention(q, kv, kpm, wo, bo, num_heads, *, causal=False,
                           out_dtype=jnp.bfloat16):
    """q: (B, Lq, E); kv: (B, Lk, 2E) fused projection of the memory; kpm: (B, Lk)."""
    B, Lq, E = q.shape
    Lk = kv.shape[1]
    scale = 1.0 / float((E // num_heads) ** 0.5)
    kpm3 = kpm.reshape(B, 1, Lk)
    kernel = functools.partial(_mha_cross_kernel, num_heads=num_heads,
                               scale=scale, causal=causal)
    return pl.pallas_call(
        kernel,
        out_shape=jax.ShapeDtypeStruct((B, Lq, E), out_dtype),
        grid=(B,),
        in_specs=[
            pl.BlockSpec((None, Lq, E), lambda b: (b, 0, 0)),
            pl.BlockSpec((None, Lk, 2 * E), lambda b: (b, 0, 0)),
            pl.BlockSpec((None, 1, Lk), lambda b: (b, 0, 0)),
            pl.BlockSpec((E, E), lambda b: (0, 0)),
            pl.BlockSpec((1, E), lambda b: (0, 0)),
        ],
        out_specs=pl.BlockSpec((None, Lq, E), lambda b: (b, 0, 0)),
        compiler_params=_cparams("parallel"),
    )(q, kv, kpm3, wo, bo.reshape(1, E))


# --------------------- final projection (fused permute) ---------------------

def _fc_out_kernel(x_ref, w_ref, b_ref, o_ref):
    y = jnp.dot(x_ref[...].astype(jnp.bfloat16), w_ref[...].astype(jnp.bfloat16),
                preferred_element_type=jnp.float32)
    o_ref[...] = (y + b_ref[...].astype(jnp.float32)).astype(o_ref.dtype)


def pallas_fc_out(y_bme, w, b, *, tile_n=512):
    """y_bme: (B, Lt, E) -> logits (Lt, B, V) f32.  The (B,Lt)->(Lt,B) permute is
    folded into the out_specs index_map, so the logits (usually the largest
    activation) are written to HBM exactly once; only the much smaller (B,Lt,E)
    slab is re-laid out seq-major beforehand."""
    B, Lt, E = y_bme.shape
    V = w.shape[1]
    tn = _pick_tile(V, tile_n, 128)
    y_sm = jnp.swapaxes(y_bme, 0, 1)                     # (Lt, B, E)
    return pl.pallas_call(
        _fc_out_kernel,
        out_shape=jax.ShapeDtypeStruct((Lt, B, V), jnp.float32),
        grid=(Lt, V // tn),
        in_specs=[
            pl.BlockSpec((None, B, E), lambda t, j: (t, 0, 0)),
            pl.BlockSpec((E, tn), lambda t, j: (0, j)),
            pl.BlockSpec((1, tn), lambda t, j: (0, j)),
        ],
        out_specs=pl.BlockSpec((None, B, tn), lambda t, j: (t, 0, j)),
        compiler_params=_cparams("parallel", "parallel"),
    )(y_sm, w, b.reshape(1, V))


# --------------------------- model building blocks ---------------------------

def multi_head_attention(x_q, x_kv, p, num_heads, kpm, causal=False):
    """x_q: (B, Lq, E), x_kv: (B, Lk, E).  Self-attn uses one fused QKV matmul,
    cross-attn a Q matmul plus one fused KV matmul; the QKV/KV slab is sliced
    in-kernel and the out-projection is fused into the attention kernel."""
    B, Lq, E = x_q.shape
    if 'qkv_w' in p:                                     # self-attention
        qkv = pallas_linear(x_q.reshape(B * Lq, E), p['qkv_w'], p['qkv_b'])
        qkv = qkv.reshape(B, Lq, 3 * E)
        o = pallas_self_attention(qkv, kpm, p['out_w'], p['out_b'],
                                  num_heads, causal=causal)
    else:                                                # cross-attention
        Lk = x_kv.shape[1]
        q = pallas_linear(x_q.reshape(B * Lq, E), p['q_w'], p['q_b']).reshape(B, Lq, E)
        kv = pallas_linear(x_kv.reshape(B * Lk, E), p['kv_w'], p['kv_b']).reshape(B, Lk, 2 * E)
        o = pallas_cross_attention(q, kv, kpm, p['out_w'], p['out_b'],
                                   num_heads, causal=causal)
    return o                                             # (B, Lq, E)


def encoder_layer(x, p, src_kpm, num_heads):
    # TODO(synk): dropout treated as identity (eval-mode semantics).
    B, L, E = x.shape
    attn = multi_head_attention(x, x, p['self_attn'], num_heads, src_kpm)
    x1 = pallas_add_layernorm(x.reshape(B * L, E), attn.reshape(B * L, E),
                              p['norm1_g'], p['norm1_b'])
    h = pallas_linear(x1, p['linear1_w'], p['linear1_b'], relu=True)
    h = pallas_linear(h, p['linear2_w'], p['linear2_b'])
    x2 = pallas_add_layernorm(x1, h, p['norm2_g'], p['norm2_b'])
    return x2.reshape(B, L, E)


def decoder_layer(x, memory, p, trg_kpm, mem_kpm, num_heads):
    B, L, E = x.shape
    sa = multi_head_attention(x, x, p['self_attn'], num_heads, trg_kpm, causal=True)
    x1 = pallas_add_layernorm(x.reshape(B * L, E), sa.reshape(B * L, E),
                              p['norm1_g'], p['norm1_b'])
    ca = multi_head_attention(x1.reshape(B, L, E), memory, p['cross_attn'],
                              num_heads, mem_kpm)
    x2 = pallas_add_layernorm(x1, ca.reshape(B * L, E), p['norm2_g'], p['norm2_b'])
    h = pallas_linear(x2, p['linear1_w'], p['linear1_b'], relu=True)
    h = pallas_linear(h, p['linear2_w'], p['linear2_b'])
    x3 = pallas_add_layernorm(x2, h, p['norm3_g'], p['norm3_b'])
    return x3.reshape(B, L, E)


def transformer_forward(params, src, trg, cfg):
    Ls, B = src.shape
    Lt, _ = trg.shape
    E = cfg['embed_size']
    H = cfg['heads']

    # Build embeddings directly batch-major -> no activation transposes.
    src_bt = src.T                                            # (B, Ls)
    trg_bt = trg.T                                            # (B, Lt)
    src_pos = jnp.broadcast_to(jnp.arange(Ls)[None, :], (B, Ls))
    trg_pos = jnp.broadcast_to(jnp.arange(Lt)[None, :], (B, Lt))

    embed_src = params['src_word_emb'][src_bt] + params['src_pos_emb'][src_pos]
    embed_src = embed_src.reshape(B, Ls * E)                  # == torch permute+reshape

    # ff1 = Sequential(Linear(max_length*E, mid), ReLU)
    h = pallas_linear(embed_src, params['ff1_w'], params['ff1_b'], relu=True)
    # Binary-layer section of the torch forward is commented out:
    mask_prob = None
    mask_breakpoint = None
    # ff2 = DecoderLayer(mid, max_length*E)
    h = pallas_linear(h, params['ff2_1_w'], params['ff2_1_b'], relu=True, residual=True)
    h = pallas_linear(h, params['ff2_2_w'], params['ff2_2_b'], relu=True, residual=True)
    h = pallas_linear(h, params['ff2_3_w'], params['ff2_3_b'])
    enc_in = h.reshape(B, Ls, E)                              # stay batch-major

    embed_trg = params['trg_word_emb'][trg_bt] + params['trg_pos_emb'][trg_pos]  # (B, Lt, E)

    # note: torch code uses make_src_mask (src_pad_idx) for BOTH src and trg
    src_kpm = (src_bt == cfg['src_pad_idx']).astype(jnp.int32)   # (B, Ls)
    trg_kpm = (trg_bt == cfg['src_pad_idx']).astype(jnp.int32)   # (B, Lt)

    x = enc_in
    for lp in params['encoder_layers']:
        x = encoder_layer(x, lp, src_kpm, H)
    enc_src = x

    y = embed_trg
    for lp in params['decoder_layers']:
        y = decoder_layer(y, enc_src, lp, trg_kpm, src_kpm, H)

    out = pallas_fc_out(y, params['fc_out_w'], params['fc_out_b'])   # (Lt, B, V) f32
    return out, mask_prob, mask_breakpoint


# ------------------------------ parameter init ------------------------------

def _dense_init(key, in_dim, out_dim):
    # stored (in, out) pre-transposed, bf16 weights (MXU feed), f32 bias
    w = (jax.random.normal(key, (in_dim, out_dim), jnp.float32) * 0.02).astype(jnp.bfloat16)
    b = jnp.zeros((out_dim,), jnp.float32)
    return w, b


def _mha_self_init(key, E):
    k1, k2 = jax.random.split(key)
    qkv_w, qkv_b = _dense_init(k1, E, 3 * E)      # fused QKV projection
    out_w, out_b = _dense_init(k2, E, E)
    return dict(qkv_w=qkv_w, qkv_b=qkv_b, out_w=out_w, out_b=out_b)


def _mha_cross_init(key, E):
    k1, k2, k3 = jax.random.split(key, 3)
    q_w, q_b = _dense_init(k1, E, E)
    kv_w, kv_b = _dense_init(k2, E, 2 * E)        # fused KV projection
    out_w, out_b = _dense_init(k3, E, E)
    return dict(q_w=q_w, q_b=q_b, kv_w=kv_w, kv_b=kv_b, out_w=out_w, out_b=out_b)


def init_transformer_params(key, cfg):
    E = cfg['embed_size']
    L = cfg['max_length']
    mid = cfg['mid_embedding_size']
    ff = cfg['forward_expansion'] * E
    keys = iter(jax.random.split(key, 64))
    p = {}
    p['src_word_emb'] = jax.random.normal(next(keys), (cfg['src_vocab_size'], E)) * 0.02
    p['src_pos_emb'] = jax.random.normal(next(keys), (L, E)) * 0.02
    p['trg_word_emb'] = jax.random.normal(next(keys), (cfg['trg_vocab_size'], E)) * 0.02
    p['trg_pos_emb'] = jax.random.normal(next(keys), (L, E)) * 0.02
    p['ff1_w'], p['ff1_b'] = _dense_init(next(keys), L * E, mid)
    p['ff2_1_w'], p['ff2_1_b'] = _dense_init(next(keys), mid, mid)
    p['ff2_2_w'], p['ff2_2_b'] = _dense_init(next(keys), mid, mid)
    p['ff2_3_w'], p['ff2_3_b'] = _dense_init(next(keys), mid, L * E)

    enc_layers = []
    for _ in range(cfg['num_layers']):
        lp = {'self_attn': _mha_self_init(next(keys), E)}
        lp['linear1_w'], lp['linear1_b'] = _dense_init(next(keys), E, ff)
        lp['linear2_w'], lp['linear2_b'] = _dense_init(next(keys), ff, E)
        for n in ('norm1', 'norm2'):
            lp[n + '_g'] = jnp.ones((E,), jnp.float32)
            lp[n + '_b'] = jnp.zeros((E,), jnp.float32)
        enc_layers.append(lp)
    p['encoder_layers'] = enc_layers

    dec_layers = []
    for _ in range(cfg['num_layers']):
        lp = {'self_attn': _mha_self_init(next(keys), E),
              'cross_attn': _mha_cross_init(next(keys), E)}
        lp['linear1_w'], lp['linear1_b'] = _dense_init(next(keys), E, ff)
        lp['linear2_w'], lp['linear2_b'] = _dense_init(next(keys), ff, E)
        for n in ('norm1', 'norm2', 'norm3'):
            lp[n + '_g'] = jnp.ones((E,), jnp.float32)
            lp[n + '_b'] = jnp.zeros((E,), jnp.float32)
        dec_layers.append(lp)
    p['decoder_layers'] = dec_layers

    p['fc_out_w'], p['fc_out_b'] = _dense_init(next(keys), E, cfg['trg_vocab_size'])
    return p


# ----------------------------------- main -----------------------------------

if __name__ == "__main__":
    cfg = dict(src_vocab_size=16, trg_vocab_size=16, src_pad_idx=0, trg_pad_idx=0,
               embed_size=32, num_layers=2, forward_expansion=4, heads=4,
               max_length=8, mid_embedding_size=64, hidden_size=128)

    key = jax.random.PRNGKey(0)
    kp, ks, kt = jax.random.split(key, 3)
    params = init_transformer_params(kp, cfg)

    B = 2
    Ls = cfg['max_length']   # ff1 input dim forces src_seq_length == max_length
    Lt = cfg['max_length']
    # tokens in [1, vocab) so no pad positions (padded key rows are safe anyway
    # since masking uses a finite -1e9 instead of -inf)
    src = jax.random.randint(ks, (Ls, B), 1, cfg['src_vocab_size'], dtype=jnp.int32)
    trg = jax.random.randint(kt, (Lt, B), 1, cfg['trg_vocab_size'], dtype=jnp.int32)

    fwd = jax.jit(lambda p, s, t: transformer_forward(p, s, t, cfg))
    out, mask_prob, mask_breakpoint = fwd(params, src, trg)
    out = jax.block_until_ready(out)

    assert out.shape == (Lt, B, cfg['trg_vocab_size'])
    assert out.dtype == jnp.float32
    assert bool(jnp.all(jnp.isfinite(out)))
    assert mask_prob is None and mask_breakpoint is None
    print("KERNEL_OK")
</pallas_src>

<mosaic_0001>
module attributes {stable_mosaic.version = 11 : i64} {
  func.func @_linear_kernel(%arg0: i32, %arg1: i32, %arg2: memref<2x256xf32, #tpu.memory_space<vmem>>, %arg3: memref<256x64xbf16, #tpu.memory_space<vmem>>, %arg4: memref<1x64xf32, #tpu.memory_space<vmem>>, %arg5: memref<2x64xbf16, #tpu.memory_space<vmem>>) attributes {dimension_semantics = [#tpu.dimension_semantics<parallel>, #tpu.dimension_semantics<parallel>], iteration_bounds = array<i64: 1, 1>, scalar_prefetch = 0 : i64, scratch_operands = 0 : i64, tpu.core_type = #tpu.core_type<tc>, window_params = [{transform_indices = @transform_0, window_bounds = array<i64: 2, 256>}, {transform_indices = @transform_1, window_bounds = array<i64: 256, 64>}, {transform_indices = @transform_2, window_bounds = array<i64: 1, 64>}, {transform_indices = @transform_3, window_bounds = array<i64: 2, 64>}]} {
    %c0 = arith.constant 0 : index
    %c0_0 = arith.constant 0 : index
    %0 = vector.load %arg2[%c0, %c0_0] : memref<2x256xf32, #tpu.memory_space<vmem>>, vector<2x256xf32>
    %1 = arith.truncf %0 : vector<2x256xf32> to vector<2x256xbf16>
    %c0_1 = arith.constant 0 : index
    %c0_2 = arith.constant 0 : index
    %2 = vector.load %arg3[%c0_1, %c0_2] : memref<256x64xbf16, #tpu.memory_space<vmem>>, vector<256x64xbf16>
    %cst = arith.constant dense<0.000000e+00> : vector<2x64xf32>
    %3 = tpu.matmul %1, %2, %cst {dimension_numbers = #tpu.dot_dimension_numbers<[1], [0], [0], [1], [0, 0, 1, 1], [], []>} : vector<2x256xbf16>, vector<256x64xbf16>, vector<2x64xf32> -> vector<2x64xf32>
    %c0_3 = arith.constant 0 : index
    %c0_4 = arith.constant 0 : index
    %4 = vector.load %arg4[%c0_3, %c0_4] : memref<1x64xf32, #tpu.memory_space<vmem>>, vector<1x64xf32>
    %5 = vector.broadcast %4 : vector<1x64xf32> to vector<2x64xf32>
    %6 = arith.addf %3, %5 : vector<2x64xf32>
    %cst_5 = arith.constant 0.000000e+00 : f32
    %7 = vector.broadcast %cst_5 : f32 to vector<2x64xf32>
    %8 = arith.maximumf %6, %7 : vector<2x64xf32>
    %9 = arith.truncf %8 : vector<2x64xf32> to vector<2x64xbf16>
    %c0_6 = arith.constant 0 : index
    %c0_7 = arith.constant 0 : index
    %10 = vector.load %arg5[%c0_6, %c0_7] : memref<2x64xbf16, #tpu.memory_space<vmem>>, vector<2x64xbf16>
    tpu.vector_store %arg5[%c0_6, %c0_7], %9 {strides = array<i32>} : memref<2x64xbf16, #tpu.memory_space<vmem>>, vector<2x64xbf16>,
    return
  }
  func.func @transform_0(%arg0: i32, %arg1: i32) -> (i32, i32) {
    %c0_i32 = arith.constant 0 : i32
    %c0_i32_0 = arith.constant 0 : i32
    return %arg0, %c0_i32 : i32, i32
  }
  func.func @transform_1(%arg0: i32, %arg1: i32) -> (i32, i32) {
    %c0_i32 = arith.constant 0 : i32
    %c0_i32_0 = arith.constant 0 : i32
    return %c0_i32, %arg1 : i32, i32
  }
  func.func @transform_2(%arg0: i32, %arg1: i32) -> (i32, i32) {
    %c0_i32 = arith.constant 0 : i32
    %c0_i32_0 = arith.constant 0 : i32
    return %c0_i32, %arg1 : i32, i32
  }
  func.func @transform_3(%arg0: i32, %arg1: i32) -> (i32, i32) {
    %c0_i32 = arith.constant 0 : i32
    return %arg0, %arg1 : i32, i32
  }
}

module attributes {stable_mosaic.version = 11 : i64} {
  func.func @_linear_kernel(%arg0: i32, %arg1: i32, %arg2: memref<16x32xbf16, #tpu.memory_space<vmem>>, %arg3: memref<32x96xbf16, #tpu.memory_space<vmem>>, %arg4: memref<1x96xf32, #tpu.memory_space<vmem>>, %arg5: memref<16x96xbf16, #tpu.memory_space<vmem>>) attributes {dimension_semantics = [#tpu.dimension_semantics<parallel>, #tpu.dimension_semantics<parallel>], iteration_bounds = array<i64: 1, 1>, scalar_prefetch = 0 : i64, scratch_operands = 0 : i64, tpu.core_type = #tpu.core_type<tc>, window_params = [{transform_indices = @transform_0, window_bounds = array<i64: 16, 32>}, {transform_indices = @transform_1, window_bounds = array<i64: 32, 96>}, {transform_indices = @transform_2, window_bounds = array<i64: 1, 96>}, {transform_indices = @transform_3, window_bounds = array<i64: 16, 96>}]} {
    %c0 = arith.constant 0 : index
    %c0_0 = arith.constant 0 : index
    %0 = vector.load %arg2[%c0, %c0_0] : memref<16x32xbf16, #tpu.memory_space<vmem>>, vector<16x32xbf16>
    %c0_1 = arith.constant 0 : index
    %c0_2 = arith.constant 0 : index
    %1 = vector.load %arg3[%c0_1, %c0_2] : memref<32x96xbf16, #tpu.memory_space<vmem>>, vector<32x96xbf16>
    %cst = arith.constant dense<0.000000e+00> : vector<16x96xf32>
    %2 = tpu.matmul %0, %1, %cst {dimension_numbers = #tpu.dot_dimension_numbers<[1], [0], [0], [1], [0, 0, 1, 1], [], []>} : vector<16x32xbf16>, vector<32x96xbf16>, vector<16x96xf32> -> vector<16x96xf32>
    %c0_3 = arith.constant 0 : index
    %c0_4 = arith.constant 0 : index
    %3 = vector.load %arg4[%c0_3, %c0_4] : memref<1x96xf32, #tpu.memory_space<vmem>>, vector<1x96xf32>
    %4 = vector.broadcast %3 : vector<1x96xf32> to vector<16x96xf32>
    %5 = arith.addf %2, %4 : vector<16x96xf32>
    %6 = arith.truncf %5 : vector<16x96xf32> to vector<16x96xbf16>
    %c0_5 = arith.constant 0 : index
    %c0_6 = arith.constant 0 : index
    %7 = vector.load %arg5[%c0_5, %c0_6] : memref<16x96xbf16, #tpu.memory_space<vmem>>, vector<16x96xbf16>
    tpu.vector_store %arg5[%c0_5, %c0_6], %6 {strides = array<i32>} : memref<16x96xbf16, #tpu.memory_space<vmem>>, vector<16x96xbf16>,
    return
  }
  func.func @transform_0(%arg0: i32, %arg1: i32) -> (i32, i32) {
    %c0_i32 = arith.constant 0 : i32
    %c0_i32_0 = arith.constant 0 : i32
    return %arg0, %c0_i32 : i32, i32
  }
  func.func @transform_1(%arg0: i32, %arg1: i32) -> (i32, i32) {
    %c0_i32 = arith.constant 0 : i32
    %c0_i32_0 = arith.constant 0 : i32
    return %c0_i32, %arg1 : i32, i32
  }
  func.func @transform_2(%arg0: i32, %arg1: i32) -> (i32, i32) {
    %c0_i32 = arith.constant 0 : i32
    %c0_i32_0 = arith.constant 0 : i32
    return %c0_i32, %arg1 : i32, i32
  }
  func.func @transform_3(%arg0: i32, %arg1: i32) -> (i32, i32) {
    %c0_i32 = arith.constant 0 : i32
    return %arg0, %arg1 : i32, i32
  }
}

module attributes {stable_mosaic.version = 11 : i64} {
  func.func @_linear_kernel(%arg0: i32, %arg1: i32, %arg2: memref<2x64xbf16, #tpu.memory_space<vmem>>, %arg3: memref<64x256xbf16, #tpu.memory_space<vmem>>, %arg4: memref<1x256xf32, #tpu.memory_space<vmem>>, %arg5: memref<2x256xbf16, #tpu.memory_space<vmem>>) attributes {dimension_semantics = [#tpu.dimension_semantics<parallel>, #tpu.dimension_semantics<parallel>], iteration_bounds = array<i64: 1, 1>, scalar_prefetch = 0 : i64, scratch_operands = 0 : i64, tpu.core_type = #tpu.core_type<tc>, window_params = [{transform_indices = @transform_0, window_bounds = array<i64: 2, 64>}, {transform_indices = @transform_1, window_bounds = array<i64: 64, 256>}, {transform_indices = @transform_2, window_bounds = array<i64: 1, 256>}, {transform_indices = @transform_3, window_bounds = array<i64: 2, 256>}]} {
    %c0 = arith.constant 0 : index
    %c0_0 = arith.constant 0 : index
    %0 = vector.load %arg2[%c0, %c0_0] : memref<2x64xbf16, #tpu.memory_space<vmem>>, vector<2x64xbf16>
    %c0_1 = arith.constant 0 : index
    %c0_2 = arith.constant 0 : index
    %1 = vector.load %arg3[%c0_1, %c0_2] : memref<64x256xbf16, #tpu.memory_space<vmem>>, vector<64x256xbf16>
    %cst = arith.constant dense<0.000000e+00> : vector<2x256xf32>
    %2 = tpu.matmul %0, %1, %cst {dimension_numbers = #tpu.dot_dimension_numbers<[1], [0], [0], [1], [0, 0, 1, 1], [], []>} : vector<2x64xbf16>, vector<64x256xbf16>, vector<2x256xf32> -> vector<2x256xf32>
    %c0_3 = arith.constant 0 : index
    %c0_4 = arith.constant 0 : index
    %3 = vector.load %arg4[%c0_3, %c0_4] : memref<1x256xf32, #tpu.memory_space<vmem>>, vector<1x256xf32>
    %4 = vector.broadcast %3 : vector<1x256xf32> to vector<2x256xf32>
    %5 = arith.addf %2, %4 : vector<2x256xf32>
    %6 = arith.truncf %5 : vector<2x256xf32> to vector<2x256xbf16>
    %c0_5 = arith.constant 0 : index
    %c0_6 = arith.constant 0 : index
    %7 = vector.load %arg5[%c0_5, %c0_6] : memref<2x256xbf16, #tpu.memory_space<vmem>>, vector<2x256xbf16>
    tpu.vector_store %arg5[%c0_5, %c0_6], %6 {strides = array<i32>} : memref<2x256xbf16, #tpu.memory_space<vmem>>, vector<2x256xbf16>,
    return
  }
  func.func @transform_0(%arg0: i32, %arg1: i32) -> (i32, i32) {
    %c0_i32 = arith.constant 0 : i32
    %c0_i32_0 = arith.constant 0 : i32
    return %arg0, %c0_i32 : i32, i32
  }
  func.func @transform_1(%arg0: i32, %arg1: i32) -> (i32, i32) {
    %c0_i32 = arith.constant 0 : i32
    %c0_i32_0 = arith.constant 0 : i32
    return %c0_i32, %arg1 : i32, i32
  }
  func.func @transform_2(%arg0: i32, %arg1: i32) -> (i32, i32) {
    %c0_i32 = arith.constant 0 : i32
    %c0_i32_0 = arith.constant 0 : i32
    return %c0_i32, %arg1 : i32, i32
  }
  func.func @transform_3(%arg0: i32, %arg1: i32) -> (i32, i32) {
    %c0_i32 = arith.constant 0 : i32
    return %arg0, %arg1 : i32, i32
  }
}

module attributes {stable_mosaic.version = 11 : i64} {
  func.func @_linear_kernel(%arg0: i32, %arg1: i32, %arg2: memref<2x64xbf16, #tpu.memory_space<vmem>>, %arg3: memref<64x64xbf16, #tpu.memory_space<vmem>>, %arg4: memref<1x64xf32, #tpu.memory_space<vmem>>, %arg5: memref<2x64xbf16, #tpu.memory_space<vmem>>) attributes {dimension_semantics = [#tpu.dimension_semantics<parallel>, #tpu.dimension_semantics<parallel>], iteration_bounds = array<i64: 1, 1>, scalar_prefetch = 0 : i64, scratch_operands = 0 : i64, tpu.core_type = #tpu.core_type<tc>, window_params = [{transform_indices = @transform_0, window_bounds = array<i64: 2, 64>}, {transform_indices = @transform_1, window_bounds = array<i64: 64, 64>}, {transform_indices = @transform_2, window_bounds = array<i64: 1, 64>}, {transform_indices = @transform_3, window_bounds = array<i64: 2, 64>}]} {
    %c0 = arith.constant 0 : index
    %c0_0 = arith.constant 0 : index
    %0 = vector.load %arg2[%c0, %c0_0] : memref<2x64xbf16, #tpu.memory_space<vmem>>, vector<2x64xbf16>
    %c0_1 = arith.constant 0 : index
    %c0_2 = arith.constant 0 : index
    %1 = vector.load %arg3[%c0_1, %c0_2] : memref<64x64xbf16, #tpu.memory_space<vmem>>, vector<64x64xbf16>
    %cst = arith.constant dense<0.000000e+00> : vector<2x64xf32>
    %2 = tpu.matmul %0, %1, %cst {dimension_numbers = #tpu.dot_dimension_numbers<[1], [0], [0], [1], [0, 0, 1, 1], [], []>} : vector<2x64xbf16>, vector<64x64xbf16>, vector<2x64xf32> -> vector<2x64xf32>
    %c0_3 = arith.constant 0 : index
    %c0_4 = arith.constant 0 : index
    %3 = vector.load %arg4[%c0_3, %c0_4] : memref<1x64xf32, #tpu.memory_space<vmem>>, vector<1x64xf32>
    %4 = vector.broadcast %3 : vector<1x64xf32> to vector<2x64xf32>
    %5 = arith.addf %2, %4 : vector<2x64xf32>
    %6 = arith.extf %0 : vector<2x64xbf16> to vector<2x64xf32>
    %7 = arith.addf %5, %6 : vector<2x64xf32>
    %cst_5 = arith.constant 0.000000e+00 : f32
    %8 = vector.broadcast %cst_5 : f32 to vector<2x64xf32>
    %9 = arith.maximumf %7, %8 : vector<2x64xf32>
    %10 = arith.truncf %9 : vector<2x64xf32> to vector<2x64xbf16>
    %c0_6 = arith.constant 0 : index
    %c0_7 = arith.constant 0 : index
    %11 = vector.load %arg5[%c0_6, %c0_7] : memref<2x64xbf16, #tpu.memory_space<vmem>>, vector<2x64xbf16>
    tpu.vector_store %arg5[%c0_6, %c0_7], %10 {strides = array<i32>} : memref<2x64xbf16, #tpu.memory_space<vmem>>, vector<2x64xbf16>,
    return
  }
  func.func @transform_0(%arg0: i32, %arg1: i32) -> (i32, i32) {
    %c0_i32 = arith.constant 0 : i32
    %c0_i32_0 = arith.constant 0 : i32
    return %arg0, %c0_i32 : i32, i32
  }
  func.func @transform_1(%arg0: i32, %arg1: i32) -> (i32, i32) {
    %c0_i32 = arith.constant 0 : i32
    %c0_i32_0 = arith.constant 0 : i32
    return %c0_i32, %arg1 : i32, i32
  }
  func.func @transform_2(%arg0: i32, %arg1: i32) -> (i32, i32) {
    %c0_i32 = arith.constant 0 : i32
    %c0_i32_0 = arith.constant 0 : i32
    return %c0_i32, %arg1 : i32, i32
  }
  func.func @transform_3(%arg0: i32, %arg1: i32) -> (i32, i32) {
    %c0_i32 = arith.constant 0 : i32
    return %arg0, %arg1 : i32, i32
  }
}

module attributes {stable_mosaic.version = 11 : i64} {
  func.func @_mha_self_kernel(%arg0: i32, %arg1: memref<1x8x96xbf16, #tpu.memory_space<vmem>>, %arg2: memref<1x1x8xi32, #tpu.memory_space<vmem>>, %arg3: memref<32x32xbf16, #tpu.memory_space<vmem>>, %arg4: memref<1x32xf32, #tpu.memory_space<vmem>>, %arg5: memref<1x8x32xbf16, #tpu.memory_space<vmem>>) attributes {dimension_semantics = [#tpu.dimension_semantics<parallel>], iteration_bounds = array<i64: 2>, scalar_prefetch = 0 : i64, scratch_operands = 0 : i64, tpu.core_type = #tpu.core_type<tc>, window_params = [{transform_indices = @transform_0, window_bounds = array<i64: 1, 8, 96>}, {transform_indices = @transform_1, window_bounds = array<i64: 1, 1, 8>}, {pipeline_mode = #tpu.pipeline_mode<synchronous>, transform_indices = @transform_2, window_bounds = array<i64: 32, 32>}, {pipeline_mode = #tpu.pipeline_mode<synchronous>, transform_indices = @transform_3, window_bounds = array<i64: 1, 32>}, {transform_indices = @transform_4, window_bounds = array<i64: 1, 8, 32>}]} {
    %c0 = arith.constant 0 : index
    %c0_0 = arith.constant 0 : index
    %c0_1 = arith.constant 0 : index
    %0 = vector.load %arg1[%c0, %c0_0, %c0_1] : memref<1x8x96xbf16, #tpu.memory_space<vmem>>, vector<1x8x96xbf16>
    %1 = vector.shape_cast %0 : vector<1x8x96xbf16> to vector<8x96xbf16>
    %2 = vector.extract_strided_slice %1 {offsets = [0, 0], sizes = [8, 32], strides = [1, 1]} : vector<8x96xbf16> to vector<8x32xbf16>
    %3 = arith.extf %2 : vector<8x32xbf16> to vector<8x32xf32>
    %cst = arith.constant 0.353553385 : f32
    %4 = vector.broadcast %cst : f32 to vector<8x32xf32>
    %5 = arith.mulf %3, %4 : vector<8x32xf32>
    %6 = arith.truncf %5 : vector<8x32xf32> to vector<8x32xbf16>
    %7 = vector.extract_strided_slice %1 {offsets = [0, 32], sizes = [8, 32], strides = [1, 1]} : vector<8x96xbf16> to vector<8x32xbf16>
    %8 = vector.extract_strided_slice %1 {offsets = [0, 64], sizes = [8, 32], strides = [1, 1]} : vector<8x96xbf16> to vector<8x32xbf16>
    %9 = vector.shape_cast %6 : vector<8x32xbf16> to vector<8x4x8xbf16>
    %10 = tpu.transpose %9, [1, 0, 2] : vector<8x4x8xbf16> -> vector<4x8x8xbf16>
    %11 = vector.shape_cast %7 : vector<8x32xbf16> to vector<8x4x8xbf16>
    %12 = tpu.transpose %11, [1, 0, 2] : vector<8x4x8xbf16> -> vector<4x8x8xbf16>
    %13 = vector.shape_cast %8 : vector<8x32xbf16> to vector<8x4x8xbf16>
    %14 = tpu.transpose %13, [1, 0, 2] : vector<8x4x8xbf16> -> vector<4x8x8xbf16>
    "tpu.trace_start"() <{level = 10 : i32, message = "hqd,hkd->hqk"}> : () -> ()
    %cst_2 = arith.constant dense<0.000000e+00> : vector<4x8x8xf32>
    %15 = tpu.matmul %10, %12, %cst_2 {dimension_numbers = #tpu.dot_dimension_numbers<[2], [2], [1], [1], [0, 0, 0, 1, 1, 1], [0], [0]>} : vector<4x8x8xbf16>, vector<4x8x8xbf16>, vector<4x8x8xf32> -> vector<4x8x8xf32>
    "tpu.trace_stop"() : () -> ()
    %c0_3 = arith.constant 0 : index
    %c0_4 = arith.constant 0 : index
    %c0_5 = arith.constant 0 : index
    %16 = vector.load %arg2[%c0_3, %c0_4, %c0_5] : memref<1x1x8xi32, #tpu.memory_space<vmem>>, vector<1x1x8xi32>
    %17 = vector.shape_cast %16 : vector<1x1x8xi32> to vector<1x8xi32>
    %c0_i32 = arith.constant 0 : i32
    %18 = vector.broadcast %c0_i32 : i32 to vector<1x8xi32>
    %19 = arith.cmpi ne, %17, %18 : vector<1x8xi32>
    %20 = vector.shape_cast %19 : vector<1x8xi1> to vector<1x1x8xi1>
    %cst_6 = arith.constant -1.000000e+09 : f32
    %21 = vector.shape_cast %20 : vector<1x1x8xi1> to vector<1x1x8xi1>
    %22 = vector.broadcast %21 : vector<1x1x8xi1> to vector<4x8x8xi1>
    %23 = vector.broadcast %cst_6 : f32 to vector<4x8x8xf32>
    %24 = arith.select %22, %23, %15 : vector<4x8x8xi1>, vector<4x8x8xf32>
    %cst_7 = arith.constant dense<0xFF800000> : vector<4x8xf32>
    %25 = vector.multi_reduction <maximumf>, %24, %cst_7 [2] : vector<4x8x8xf32> to vector<4x8xf32>
    %26 = vector.shape_cast %25 : vector<4x8xf32> to vector<4x8x1xf32>
    %27 = vector.broadcast %26 : vector<4x8x1xf32> to vector<4x8x8xf32>
    %28 = arith.subf %24, %27 : vector<4x8x8xf32>
    %29 = math.exp %28 : vector<4x8x8xf32>
    %cst_8 = arith.constant dense<0.000000e+00> : vector<4x8xf32>
    %30 = vector.multi_reduction <add>, %29, %cst_8 [2] : vector<4x8x8xf32> to vector<4x8xf32>
    %31 = vector.shape_cast %30 : vector<4x8xf32> to vector<4x8x1xf32>
    %32 = arith.truncf %29 : vector<4x8x8xf32> to vector<4x8x8xbf16>
    "tpu.trace_start"() <{level = 10 : i32, message = "hqk,hkd->hqd"}> : () -> ()
    %cst_9 = arith.constant dense<0.000000e+00> : vector<4x8x8xf32>
    %33 = tpu.matmul %32, %14, %cst_9 {dimension_numbers = #tpu.dot_dimension_numbers<[2], [1], [1], [2], [0, 0, 0, 1, 1, 2], [0], [0]>} : vector<4x8x8xbf16>, vector<4x8x8xbf16>, vector<4x8x8xf32> -> vector<4x8x8xf32>
    "tpu.trace_stop"() : () -> ()
    %34 = tpu.reciprocal %31 {approx = true} : vector<4x8x1xf32> -> vector<4x8x1xf32>
    %35 = vector.broadcast %34 : vector<4x8x1xf32> to vector<4x8x8xf32>
    %36 = arith.mulf %33, %35 : vector<4x8x8xf32>
    %37 = tpu.transpose %36, [1, 0, 2] : vector<4x8x8xf32> -> vector<8x4x8xf32>
    %38 = vector.shape_cast %37 : vector<8x4x8xf32> to vector<8x32xf32>
    %39 = arith.truncf %38 : vector<8x32xf32> to vector<8x32xbf16>
    %c0_10 = arith.constant 0 : index
    %c0_11 = arith.constant 0 : index
    %40 = vector.load %arg3[%c0_10, %c0_11] : memref<32x32xbf16, #tpu.memory_space<vmem>>, vector<32x32xbf16>
    %cst_12 = arith.constant dense<0.000000e+00> : vector<8x32xf32>
    %41 = tpu.matmul %39, %40, %cst_12 {dimension_numbers = #tpu.dot_dimension_numbers<[1], [0], [0], [1], [0, 0, 1, 1], [], []>} : vector<8x32xbf16>, vector<32x32xbf16>, vector<8x32xf32> -> vector<8x32xf32>
    %c0_13 = arith.constant 0 : index
    %c0_14 = arith.constant 0 : index
    %42 = vector.load %arg4[%c0_13, %c0_14] : memref<1x32xf32, #tpu.memory_space<vmem>>, vector<1x32xf32>
    %43 = vector.broadcast %42 : vector<1x32xf32> to vector<8x32xf32>
    %44 = arith.addf %41, %43 : vector<8x32xf32>
    %45 = arith.truncf %44 : vector<8x32xf32> to vector<8x32xbf16>
    %c0_15 = arith.constant 0 : index
    %c0_16 = arith.constant 0 : index
    %c0_17 = arith.constant 0 : index
    %46 = vector.load %arg5[%c0_15, %c0_16, %c0_17] : memref<1x8x32xbf16, #tpu.memory_space<vmem>>, vector<1x8x32xbf16>
    %47 = vector.shape_cast %46 : vector<1x8x32xbf16> to vector<8x32xbf16>
    %48 = vector.shape_cast %45 : vector<8x32xbf16> to vector<1x8x32xbf16>
    tpu.vector_store %arg5[%c0_15, %c0_16, %c0_17], %48 {strides = array<i32>} : memref<1x8x32xbf16, #tpu.memory_space<vmem>>, vector<1x8x32xbf16>,
    return
  }
  func.func @transform_0(%arg0: i32) -> (i32, i32, i32) {
    %c0_i32 = arith.constant 0 : i32
    %c0_i32_0 = arith.constant 0 : i32
    %c0_i32_1 = arith.constant 0 : i32
    return %arg0, %c0_i32, %c0_i32_0 : i32, i32, i32
  }
  func.func @transform_1(%arg0: i32) -> (i32, i32, i32) {
    %c0_i32 = arith.constant 0 : i32
    %c0_i32_0 = arith.constant 0 : i32
    %c0_i32_1 = arith.constant 0 : i32
    return %arg0, %c0_i32, %c0_i32_0 : i32, i32, i32
  }
  func.func @transform_2(%arg0: i32) -> (i32, i32) {
    %c0_i32 = arith.constant 0 : i32
    %c0_i32_0 = arith.constant 0 : i32
    %c0_i32_1 = arith.constant 0 : i32
    return %c0_i32, %c0_i32_0 : i32, i32
  }
  func.func @transform_3(%arg0: i32) -> (i32, i32) {
    %c0_i32 = arith.constant 0 : i32
    %c0_i32_0 = arith.constant 0 : i32
    %c0_i32_1 = arith.constant 0 : i32
    return %c0_i32, %c0_i32_0 : i32, i32
  }
  func.func @transform_4(%arg0: i32) -> (i32, i32, i32) {
    %c0_i32 = arith.constant 0 : i32
    %c0_i32_0 = arith.constant 0 : i32
    %c0_i32_1 = arith.constant 0 : i32
    return %arg0, %c0_i32, %c0_i32_0 : i32, i32, i32
  }
}

module attributes {stable_mosaic.version = 11 : i64} {
  func.func @_add_layernorm_kernel(%arg0: i32, %arg1: memref<16x32xbf16, #tpu.memory_space<vmem>>, %arg2: memref<16x32xbf16, #tpu.memory_space<vmem>>, %arg3: memref<1x32xf32, #tpu.memory_space<vmem>>, %arg4: memref<1x32xf32, #tpu.memory_space<vmem>>, %arg5: memref<16x32xbf16, #tpu.memory_space<vmem>>) attributes {dimension_semantics = [#tpu.dimension_semantics<parallel>], iteration_bounds = array<i64: 1>, scalar_prefetch = 0 : i64, scratch_operands = 0 : i64, tpu.core_type = #tpu.core_type<tc>, window_params = [{transform_indices = @transform_0, window_bounds = array<i64: 16, 32>}, {transform_indices = @transform_1, window_bounds = array<i64: 16, 32>}, {pipeline_mode = #tpu.pipeline_mode<synchronous>, transform_indices = @transform_2, window_bounds = array<i64: 1, 32>}, {pipeline_mode = #tpu.pipeline_mode<synchronous>, transform_indices = @transform_3, window_bounds = array<i64: 1, 32>}, {transform_indices = @transform_4, window_bounds = array<i64: 16, 32>}]} {
    %c0 = arith.constant 0 : index
    %c0_0 = arith.constant 0 : index
    %0 = vector.load %arg1[%c0, %c0_0] : memref<16x32xbf16, #tpu.memory_space<vmem>>, vector<16x32xbf16>
    %1 = arith.extf %0 : vector<16x32xbf16> to vector<16x32xf32>
    %c0_1 = arith.constant 0 : index
    %c0_2 = arith.constant 0 : index
    %2 = vector.load %arg2[%c0_1, %c0_2] : memref<16x32xbf16, #tpu.memory_space<vmem>>, vector<16x32xbf16>
    %3 = arith.extf %2 : vector<16x32xbf16> to vector<16x32xf32>
    %4 = arith.addf %1, %3 : vector<16x32xf32>
    %cst = arith.constant dense<0.000000e+00> : vector<16xf32>
    %5 = vector.multi_reduction <add>, %4, %cst [1] : vector<16x32xf32> to vector<16xf32>
    %6 = vector.shape_cast %5 : vector<16xf32> to vector<16x1xf32>
    %cst_3 = arith.constant 3.200000e+01 : f32
    %7 = vector.broadcast %cst_3 : f32 to vector<16x1xf32>
    %8 = arith.divf %6, %7 : vector<16x1xf32>
    %9 = vector.broadcast %8 : vector<16x1xf32> to vector<16x32xf32>
    %10 = arith.subf %4, %9 : vector<16x32xf32>
    %11 = arith.mulf %10, %10 : vector<16x32xf32>
    %cst_4 = arith.constant dense<0.000000e+00> : vector<16xf32>
    %12 = vector.multi_reduction <add>, %11, %cst_4 [1] : vector<16x32xf32> to vector<16xf32>
    %13 = vector.shape_cast %12 : vector<16xf32> to vector<16x1xf32>
    %cst_5 = arith.constant 3.200000e+01 : f32
    %14 = vector.broadcast %cst_5 : f32 to vector<16x1xf32>
    %15 = arith.divf %13, %14 : vector<16x1xf32>
    %16 = vector.broadcast %8 : vector<16x1xf32> to vector<16x32xf32>
    %17 = arith.subf %4, %16 : vector<16x32xf32>
    %cst_6 = arith.constant 9.99999974E-6 : f32
    %18 = vector.broadcast %cst_6 : f32 to vector<16x1xf32>
    %19 = arith.addf %15, %18 : vector<16x1xf32>
    %20 = math.rsqrt %19 : vector<16x1xf32>
    %21 = vector.broadcast %20 : vector<16x1xf32> to vector<16x32xf32>
    %22 = arith.mulf %17, %21 : vector<16x32xf32>
    %c0_7 = arith.constant 0 : index
    %c0_8 = arith.constant 0 : index
    %23 = vector.load %arg3[%c0_7, %c0_8] : memref<1x32xf32, #tpu.memory_space<vmem>>, vector<1x32xf32>
    %24 = vector.broadcast %23 : vector<1x32xf32> to vector<16x32xf32>
    %25 = arith.mulf %22, %24 : vector<16x32xf32>
    %c0_9 = arith.constant 0 : index
    %c0_10 = arith.constant 0 : index
    %26 = vector.load %arg4[%c0_9, %c0_10] : memref<1x32xf32, #tpu.memory_space<vmem>>, vector<1x32xf32>
    %27 = vector.broadcast %26 : vector<1x32xf32> to vector<16x32xf32>
    %28 = arith.addf %25, %27 : vector<16x32xf32>
    %29 = arith.truncf %28 : vector<16x32xf32> to vector<16x32xbf16>
    %c0_11 = arith.constant 0 : index
    %c0_12 = arith.constant 0 : index
    %30 = vector.load %arg5[%c0_11, %c0_12] : memref<16x32xbf16, #tpu.memory_space<vmem>>, vector<16x32xbf16>
    tpu.vector_store %arg5[%c0_11, %c0_12], %29 {strides = array<i32>} : memref<16x32xbf16, #tpu.memory_space<vmem>>, vector<16x32xbf16>,
    return
  }
  func.func @transform_0(%arg0: i32) -> (i32, i32) {
    %c0_i32 = arith.constant 0 : i32
    %c0_i32_0 = arith.constant 0 : i32
    return %arg0, %c0_i32 : i32, i32
  }
  func.func @transform_1(%arg0: i32) -> (i32, i32) {
    %c0_i32 = arith.constant 0 : i32
    %c0_i32_0 = arith.constant 0 : i32
    return %arg0, %c0_i32 : i32, i32
  }
  func.func @transform_2(%arg0: i32) -> (i32, i32) {
    %c0_i32 = arith.constant 0 : i32
    %c0_i32_0 = arith.constant 0 : i32
    %c0_i32_1 = arith.constant 0 : i32
    return %c0_i32, %c0_i32_0 : i32, i32
  }
  func.func @transform_3(%arg0: i32) -> (i32, i32) {
    %c0_i32 = arith.constant 0 : i32
    %c0_i32_0 = arith.constant 0 : i32
    %c0_i32_1 = arith.constant 0 : i32
    return %c0_i32, %c0_i32_0 : i32, i32
  }
  func.func @transform_4(%arg0: i32) -> (i32, i32) {
    %c0_i32 = arith.constant 0 : i32
    %c0_i32_0 = arith.constant 0 : i32
    return %arg0, %c0_i32 : i32, i32
  }
}

module attributes {stable_mosaic.version = 11 : i64} {
  func.func @_linear_kernel(%arg0: i32, %arg1: i32, %arg2: memref<16x32xbf16, #tpu.memory_space<vmem>>, %arg3: memref<32x128xbf16, #tpu.memory_space<vmem>>, %arg4: memref<1x128xf32, #tpu.memory_space<vmem>>, %arg5: memref<16x128xbf16, #tpu.memory_space<vmem>>) attributes {dimension_semantics = [#tpu.dimension_semantics<parallel>, #tpu.dimension_semantics<parallel>], iteration_bounds = array<i64: 1, 1>, scalar_prefetch = 0 : i64, scratch_operands = 0 : i64, tpu.core_type = #tpu.core_type<tc>, window_params = [{transform_indices = @transform_0, window_bounds = array<i64: 16, 32>}, {transform_indices = @transform_1, window_bounds = array<i64: 32, 128>}, {transform_indices = @transform_2, window_bounds = array<i64: 1, 128>}, {transform_indices = @transform_3, window_bounds = array<i64: 16, 128>}]} {
    %c0 = arith.constant 0 : index
    %c0_0 = arith.constant 0 : index
    %0 = vector.load %arg2[%c0, %c0_0] : memref<16x32xbf16, #tpu.memory_space<vmem>>, vector<16x32xbf16>
    %c0_1 = arith.constant 0 : index
    %c0_2 = arith.constant 0 : index
    %1 = vector.load %arg3[%c0_1, %c0_2] : memref<32x128xbf16, #tpu.memory_space<vmem>>, vector<32x128xbf16>
    %cst = arith.constant dense<0.000000e+00> : vector<16x128xf32>
    %2 = tpu.matmul %0, %1, %cst {dimension_numbers = #tpu.dot_dimension_numbers<[1], [0], [0], [1], [0, 0, 1, 1], [], []>} : vector<16x32xbf16>, vector<32x128xbf16>, vector<16x128xf32> -> vector<16x128xf32>
    %c0_3 = arith.constant 0 : index
    %c0_4 = arith.constant 0 : index
    %3 = vector.load %arg4[%c0_3, %c0_4] : memref<1x128xf32, #tpu.memory_space<vmem>>, vector<1x128xf32>
    %4 = vector.broadcast %3 : vector<1x128xf32> to vector<16x128xf32>
    %5 = arith.addf %2, %4 : vector<16x128xf32>
    %cst_5 = arith.constant 0.000000e+00 : f32
    %6 = vector.broadcast %cst_5 : f32 to vector<16x128xf32>
    %7 = arith.maximumf %5, %6 : vector<16x128xf32>
    %8 = arith.truncf %7 : vector<16x128xf32> to vector<16x128xbf16>
    %c0_6 = arith.constant 0 : index
    %c0_7 = arith.constant 0 : index
    %9 = vector.load %arg5[%c0_6, %c0_7] : memref<16x128xbf16, #tpu.memory_space<vmem>>, vector<16x128xbf16>
    tpu.vector_store %arg5[%c0_6, %c0_7], %8 {strides = array<i32>} : memref<16x128xbf16, #tpu.memory_space<vmem>>, vector<16x128xbf16>,
    return
  }
  func.func @transform_0(%arg0: i32, %arg1: i32) -> (i32, i32) {
    %c0_i32 = arith.constant 0 : i32
    %c0_i32_0 = arith.constant 0 : i32
    return %arg0, %c0_i32 : i32, i32
  }
  func.func @transform_1(%arg0: i32, %arg1: i32) -> (i32, i32) {
    %c0_i32 = arith.constant 0 : i32
    %c0_i32_0 = arith.constant 0 : i32
    return %c0_i32, %arg1 : i32, i32
  }
  func.func @transform_2(%arg0: i32, %arg1: i32) -> (i32, i32) {
    %c0_i32 = arith.constant 0 : i32
    %c0_i32_0 = arith.constant 0 : i32
    return %c0_i32, %arg1 : i32, i32
  }
  func.func @transform_3(%arg0: i32, %arg1: i32) -> (i32, i32) {
    %c0_i32 = arith.constant 0 : i32
    return %arg0, %arg1 : i32, i32
  }
}

module attributes {stable_mosaic.version = 11 : i64} {
  func.func @_linear_kernel(%arg0: i32, %arg1: i32, %arg2: memref<16x128xbf16, #tpu.memory_space<vmem>>, %arg3: memref<128x32xbf16, #tpu.memory_space<vmem>>, %arg4: memref<1x32xf32, #tpu.memory_space<vmem>>, %arg5: memref<16x32xbf16, #tpu.memory_space<vmem>>) attributes {dimension_semantics = [#tpu.dimension_semantics<parallel>, #tpu.dimension_semantics<parallel>], iteration_bounds = array<i64: 1, 1>, scalar_prefetch = 0 : i64, scratch_operands = 0 : i64, tpu.core_type = #tpu.core_type<tc>, window_params = [{transform_indices = @transform_0, window_bounds = array<i64: 16, 128>}, {transform_indices = @transform_1, window_bounds = array<i64: 128, 32>}, {transform_indices = @transform_2, window_bounds = array<i64: 1, 32>}, {transform_indices = @transform_3, window_bounds = array<i64: 16, 32>}]} {
    %c0 = arith.constant 0 : index
    %c0_0 = arith.constant 0 : index
    %0 = vector.load %arg2[%c0, %c0_0] : memref<16x128xbf16, #tpu.memory_space<vmem>>, vector<16x128xbf16>
    %c0_1 = arith.constant 0 : index
    %c0_2 = arith.constant 0 : index
    %1 = vector.load %arg3[%c0_1, %c0_2] : memref<128x32xbf16, #tpu.memory_space<vmem>>, vector<128x32xbf16>
    %cst = arith.constant dense<0.000000e+00> : vector<16x32xf32>
    %2 = tpu.matmul %0, %1, %cst {dimension_numbers = #tpu.dot_dimension_numbers<[1], [0], [0], [1], [0, 0, 1, 1], [], []>} : vector<16x128xbf16>, vector<128x32xbf16>, vector<16x32xf32> -> vector<16x32xf32>
    %c0_3 = arith.constant 0 : index
    %c0_4 = arith.constant 0 : index
    %3 = vector.load %arg4[%c0_3, %c0_4] : memref<1x32xf32, #tpu.memory_space<vmem>>, vector<1x32xf32>
    %4 = vector.broadcast %3 : vector<1x32xf32> to vector<16x32xf32>
    %5 = arith.addf %2, %4 : vector<16x32xf32>
    %6 = arith.truncf %5 : vector<16x32xf32> to vector<16x32xbf16>
    %c0_5 = arith.constant 0 : index
    %c0_6 = arith.constant 0 : index
    %7 = vector.load %arg5[%c0_5, %c0_6] : memref<16x32xbf16, #tpu.memory_space<vmem>>, vector<16x32xbf16>
    tpu.vector_store %arg5[%c0_5, %c0_6], %6 {strides = array<i32>} : memref<16x32xbf16, #tpu.memory_space<vmem>>, vector<16x32xbf16>,
    return
  }
  func.func @transform_0(%arg0: i32, %arg1: i32) -> (i32, i32) {
    %c0_i32 = arith.constant 0 : i32
    %c0_i32_0 = arith.constant 0 : i32
    return %arg0, %c0_i32 : i32, i32
  }
  func.func @transform_1(%arg0: i32, %arg1: i32) -> (i32, i32) {
    %c0_i32 = arith.constant 0 : i32
    %c0_i32_0 = arith.constant 0 : i32
    return %c0_i32, %arg1 : i32, i32
  }
  func.func @transform_2(%arg0: i32, %arg1: i32) -> (i32, i32) {
    %c0_i32 = arith.constant 0 : i32
    %c0_i32_0 = arith.constant 0 : i32
    return %c0_i32, %arg1 : i32, i32
  }
  func.func @transform_3(%arg0: i32, %arg1: i32) -> (i32, i32) {
    %c0_i32 = arith.constant 0 : i32
    return %arg0, %arg1 : i32, i32
  }
}

module attributes {stable_mosaic.version = 11 : i64} {
  func.func @_linear_kernel(%arg0: i32, %arg1: i32, %arg2: memref<16x32xbf16, #tpu.memory_space<vmem>>, %arg3: memref<32x64xbf16, #tpu.memory_space<vmem>>, %arg4: memref<1x64xf32, #tpu.memory_space<vmem>>, %arg5: memref<16x64xbf16, #tpu.memory_space<vmem>>) attributes {dimension_semantics = [#tpu.dimension_semantics<parallel>, #tpu.dimension_semantics<parallel>], iteration_bounds = array<i64: 1, 1>, scalar_prefetch = 0 : i64, scratch_operands = 0 : i64, tpu.core_type = #tpu.core_type<tc>, window_params = [{transform_indices = @transform_0, window_bounds = array<i64: 16, 32>}, {transform_indices = @transform_1, window_bounds = array<i64: 32, 64>}, {transform_indices = @transform_2, window_bounds = array<i64: 1, 64>}, {transform_indices = @transform_3, window_bounds = array<i64: 16, 64>}]} {
    %c0 = arith.constant 0 : index
    %c0_0 = arith.constant 0 : index
    %0 = vector.load %arg2[%c0, %c0_0] : memref<16x32xbf16, #tpu.memory_space<vmem>>, vector<16x32xbf16>
    %c0_1 = arith.constant 0 : index
    %c0_2 = arith.constant 0 : index
    %1 = vector.load %arg3[%c0_1, %c0_2] : memref<32x64xbf16, #tpu.memory_space<vmem>>, vector<32x64xbf16>
    %cst = arith.constant dense<0.000000e+00> : vector<16x64xf32>
    %2 = tpu.matmul %0, %1, %cst {dimension_numbers = #tpu.dot_dimension_numbers<[1], [0], [0], [1], [0, 0, 1, 1], [], []>} : vector<16x32xbf16>, vector<32x64xbf16>, vector<16x64xf32> -> vector<16x64xf32>
    %c0_3 = arith.constant 0 : index
    %c0_4 = arith.constant 0 : index
    %3 = vector.load %arg4[%c0_3, %c0_4] : memref<1x64xf32, #tpu.memory_space<vmem>>, vector<1x64xf32>
    %4 = vector.broadcast %3 : vector<1x64xf32> to vector<16x64xf32>
    %5 = arith.addf %2, %4 : vector<16x64xf32>
    %6 = arith.truncf %5 : vector<16x64xf32> to vector<16x64xbf16>
    %c0_5 = arith.constant 0 : index
    %c0_6 = arith.constant 0 : index
    %7 = vector.load %arg5[%c0_5, %c0_6] : memref<16x64xbf16, #tpu.memory_space<vmem>>, vector<16x64xbf16>
    tpu.vector_store %arg5[%c0_5, %c0_6], %6 {strides = array<i32>} : memref<16x64xbf16, #tpu.memory_space<vmem>>, vector<16x64xbf16>,
    return
  }
  func.func @transform_0(%arg0: i32, %arg1: i32) -> (i32, i32) {
    %c0_i32 = arith.constant 0 : i32
    %c0_i32_0 = arith.constant 0 : i32
    return %arg0, %c0_i32 : i32, i32
  }
  func.func @transform_1(%arg0: i32, %arg1: i32) -> (i32, i32) {
    %c0_i32 = arith.constant 0 : i32
    %c0_i32_0 = arith.constant 0 : i32
    return %c0_i32, %arg1 : i32, i32
  }
  func.func @transform_2(%arg0: i32, %arg1: i32) -> (i32, i32) {
    %c0_i32 = arith.constant 0 : i32
    %c0_i32_0 = arith.constant 0 : i32
    return %c0_i32, %arg1 : i32, i32
  }
  func.func @transform_3(%arg0: i32, %arg1: i32) -> (i32, i32) {
    %c0_i32 = arith.constant 0 : i32
    return %arg0, %arg1 : i32, i32
  }
}

module attributes {stable_mosaic.version = 11 : i64} {
  func.func @_linear_kernel(%arg0: i32, %arg1: i32, %arg2: memref<16x32xf32, #tpu.memory_space<vmem>>, %arg3: memref<32x96xbf16, #tpu.memory_space<vmem>>, %arg4: memref<1x96xf32, #tpu.memory_space<vmem>>, %arg5: memref<16x96xbf16, #tpu.memory_space<vmem>>) attributes {dimension_semantics = [#tpu.dimension_semantics<parallel>, #tpu.dimension_semantics<parallel>], iteration_bounds = array<i64: 1, 1>, scalar_prefetch = 0 : i64, scratch_operands = 0 : i64, tpu.core_type = #tpu.core_type<tc>, window_params = [{transform_indices = @transform_0, window_bounds = array<i64: 16, 32>}, {transform_indices = @transform_1, window_bounds = array<i64: 32, 96>}, {transform_indices = @transform_2, window_bounds = array<i64: 1, 96>}, {transform_indices = @transform_3, window_bounds = array<i64: 16, 96>}]} {
    %c0 = arith.constant 0 : index
    %c0_0 = arith.constant 0 : index
    %0 = vector.load %arg2[%c0, %c0_0] : memref<16x32xf32, #tpu.memory_space<vmem>>, vector<16x32xf32>
    %1 = arith.truncf %0 : vector<16x32xf32> to vector<16x32xbf16>
    %c0_1 = arith.constant 0 : index
    %c0_2 = arith.constant 0 : index
    %2 = vector.load %arg3[%c0_1, %c0_2] : memref<32x96xbf16, #tpu.memory_space<vmem>>, vector<32x96xbf16>
    %cst = arith.constant dense<0.000000e+00> : vector<16x96xf32>
    %3 = tpu.matmul %1, %2, %cst {dimension_numbers = #tpu.dot_dimension_numbers<[1], [0], [0], [1], [0, 0, 1, 1], [], []>} : vector<16x32xbf16>, vector<32x96xbf16>, vector<16x96xf32> -> vector<16x96xf32>
    %c0_3 = arith.constant 0 : index
    %c0_4 = arith.constant 0 : index
    %4 = vector.load %arg4[%c0_3, %c0_4] : memref<1x96xf32, #tpu.memory_space<vmem>>, vector<1x96xf32>
    %5 = vector.broadcast %4 : vector<1x96xf32> to vector<16x96xf32>
    %6 = arith.addf %3, %5 : vector<16x96xf32>
    %7 = arith.truncf %6 : vector<16x96xf32> to vector<16x96xbf16>
    %c0_5 = arith.constant 0 : index
    %c0_6 = arith.constant 0 : index
    %8 = vector.load %arg5[%c0_5, %c0_6] : memref<16x96xbf16, #tpu.memory_space<vmem>>, vector<16x96xbf16>
    tpu.vector_store %arg5[%c0_5, %c0_6], %7 {strides = array<i32>} : memref<16x96xbf16, #tpu.memory_space<vmem>>, vector<16x96xbf16>,
    return
  }
  func.func @transform_0(%arg0: i32, %arg1: i32) -> (i32, i32) {
    %c0_i32 = arith.constant 0 : i32
    %c0_i32_0 = arith.constant 0 : i32
    return %arg0, %c0_i32 : i32, i32
  }
  func.func @transform_1(%arg0: i32, %arg1: i32) -> (i32, i32) {
    %c0_i32 = arith.constant 0 : i32
    %c0_i32_0 = arith.constant 0 : i32
    return %c0_i32, %arg1 : i32, i32
  }
  func.func @transform_2(%arg0: i32, %arg1: i32) -> (i32, i32) {
    %c0_i32 = arith.constant 0 : i32
    %c0_i32_0 = arith.constant 0 : i32
    return %c0_i32, %arg1 : i32, i32
  }
  func.func @transform_3(%arg0: i32, %arg1: i32) -> (i32, i32) {
    %c0_i32 = arith.constant 0 : i32
    return %arg0, %arg1 : i32, i32
  }
}

module attributes {stable_mosaic.version = 11 : i64} {
  func.func @_mha_self_kernel(%arg0: i32, %arg1: memref<1x8x96xbf16, #tpu.memory_space<vmem>>, %arg2: memref<1x1x8xi32, #tpu.memory_space<vmem>>, %arg3: memref<32x32xbf16, #tpu.memory_space<vmem>>, %arg4: memref<1x32xf32, #tpu.memory_space<vmem>>, %arg5: memref<1x8x32xbf16, #tpu.memory_space<vmem>>) attributes {dimension_semantics = [#tpu.dimension_semantics<parallel>], iteration_bounds = array<i64: 2>, scalar_prefetch = 0 : i64, scratch_operands = 0 : i64, tpu.core_type = #tpu.core_type<tc>, window_params = [{transform_indices = @transform_0, window_bounds = array<i64: 1, 8, 96>}, {transform_indices = @transform_1, window_bounds = array<i64: 1, 1, 8>}, {pipeline_mode = #tpu.pipeline_mode<synchronous>, transform_indices = @transform_2, window_bounds = array<i64: 32, 32>}, {pipeline_mode = #tpu.pipeline_mode<synchronous>, transform_indices = @transform_3, window_bounds = array<i64: 1, 32>}, {transform_indices = @transform_4, window_bounds = array<i64: 1, 8, 32>}]} {
    %c0 = arith.constant 0 : index
    %c0_0 = arith.constant 0 : index
    %c0_1 = arith.constant 0 : index
    %0 = vector.load %arg1[%c0, %c0_0, %c0_1] : memref<1x8x96xbf16, #tpu.memory_space<vmem>>, vector<1x8x96xbf16>
    %1 = vector.shape_cast %0 : vector<1x8x96xbf16> to vector<8x96xbf16>
    %2 = vector.extract_strided_slice %1 {offsets = [0, 0], sizes = [8, 32], strides = [1, 1]} : vector<8x96xbf16> to vector<8x32xbf16>
    %3 = arith.extf %2 : vector<8x32xbf16> to vector<8x32xf32>
    %cst = arith.constant 0.353553385 : f32
    %4 = vector.broadcast %cst : f32 to vector<8x32xf32>
    %5 = arith.mulf %3, %4 : vector<8x32xf32>
    %6 = arith.truncf %5 : vector<8x32xf32> to vector<8x32xbf16>
    %7 = vector.extract_strided_slice %1 {offsets = [0, 32], sizes = [8, 32], strides = [1, 1]} : vector<8x96xbf16> to vector<8x32xbf16>
    %8 = vector.extract_strided_slice %1 {offsets = [0, 64], sizes = [8, 32], strides = [1, 1]} : vector<8x96xbf16> to vector<8x32xbf16>
    %9 = vector.shape_cast %6 : vector<8x32xbf16> to vector<8x4x8xbf16>
    %10 = tpu.transpose %9, [1, 0, 2] : vector<8x4x8xbf16> -> vector<4x8x8xbf16>
    %11 = vector.shape_cast %7 : vector<8x32xbf16> to vector<8x4x8xbf16>
    %12 = tpu.transpose %11, [1, 0, 2] : vector<8x4x8xbf16> -> vector<4x8x8xbf16>
    %13 = vector.shape_cast %8 : vector<8x32xbf16> to vector<8x4x8xbf16>
    %14 = tpu.transpose %13, [1, 0, 2] : vector<8x4x8xbf16> -> vector<4x8x8xbf16>
    "tpu.trace_start"() <{level = 10 : i32, message = "hqd,hkd->hqk"}> : () -> ()
    %cst_2 = arith.constant dense<0.000000e+00> : vector<4x8x8xf32>
    %15 = tpu.matmul %10, %12, %cst_2 {dimension_numbers = #tpu.dot_dimension_numbers<[2], [2], [1], [1], [0, 0, 0, 1, 1, 1], [0], [0]>} : vector<4x8x8xbf16>, vector<4x8x8xbf16>, vector<4x8x8xf32> -> vector<4x8x8xf32>
    "tpu.trace_stop"() : () -> ()
    %c0_3 = arith.constant 0 : index
    %c0_4 = arith.constant 0 : index
    %c0_5 = arith.constant 0 : index
    %16 = vector.load %arg2[%c0_3, %c0_4, %c0_5] : memref<1x1x8xi32, #tpu.memory_space<vmem>>, vector<1x1x8xi32>
    %17 = vector.shape_cast %16 : vector<1x1x8xi32> to vector<1x8xi32>
    %c0_i32 = arith.constant 0 : i32
    %18 = vector.broadcast %c0_i32 : i32 to vector<1x8xi32>
    %19 = arith.cmpi ne, %17, %18 : vector<1x8xi32>
    %20 = vector.shape_cast %19 : vector<1x8xi1> to vector<1x1x8xi1>
    %cst_6 = arith.constant -1.000000e+09 : f32
    %21 = vector.shape_cast %20 : vector<1x1x8xi1> to vector<1x1x8xi1>
    %22 = vector.broadcast %21 : vector<1x1x8xi1> to vector<4x8x8xi1>
    %23 = vector.broadcast %cst_6 : f32 to vector<4x8x8xf32>
    %24 = arith.select %22, %23, %15 : vector<4x8x8xi1>, vector<4x8x8xf32>
    %25 = tpu.iota {dimensions = array<i32: 0>} : vector<8x8xi32>
    %26 = tpu.iota {dimensions = array<i32: 1>} : vector<8x8xi32>
    %27 = arith.cmpi sgt, %26, %25 : vector<8x8xi32>
    %28 = vector.shape_cast %27 : vector<8x8xi1> to vector<1x8x8xi1>
    %cst_7 = arith.constant -1.000000e+09 : f32
    %29 = vector.shape_cast %28 : vector<1x8x8xi1> to vector<1x8x8xi1>
    %30 = vector.broadcast %29 : vector<1x8x8xi1> to vector<4x8x8xi1>
    %31 = vector.broadcast %cst_7 : f32 to vector<4x8x8xf32>
    %32 = arith.select %30, %31, %24 : vector<4x8x8xi1>, vector<4x8x8xf32>
    %cst_8 = arith.constant dense<0xFF800000> : vector<4x8xf32>
    %33 = vector.multi_reduction <maximumf>, %32, %cst_8 [2] : vector<4x8x8xf32> to vector<4x8xf32>
    %34 = vector.shape_cast %33 : vector<4x8xf32> to vector<4x8x1xf32>
    %35 = vector.broadcast %34 : vector<4x8x1xf32> to vector<4x8x8xf32>
    %36 = arith.subf %32, %35 : vector<4x8x8xf32>
    %37 = math.exp %36 : vector<4x8x8xf32>
    %cst_9 = arith.constant dense<0.000000e+00> : vector<4x8xf32>
    %38 = vector.multi_reduction <add>, %37, %cst_9 [2] : vector<4x8x8xf32> to vector<4x8xf32>
    %39 = vector.shape_cast %38 : vector<4x8xf32> to vector<4x8x1xf32>
    %40 = arith.truncf %37 : vector<4x8x8xf32> to vector<4x8x8xbf16>
    "tpu.trace_start"() <{level = 10 : i32, message = "hqk,hkd->hqd"}> : () -> ()
    %cst_10 = arith.constant dense<0.000000e+00> : vector<4x8x8xf32>
    %41 = tpu.matmul %40, %14, %cst_10 {dimension_numbers = #tpu.dot_dimension_numbers<[2], [1], [1], [2], [0, 0, 0, 1, 1, 2], [0], [0]>} : vector<4x8x8xbf16>, vector<4x8x8xbf16>, vector<4x8x8xf32> -> vector<4x8x8xf32>
    "tpu.trace_stop"() : () -> ()
    %42 = tpu.reciprocal %39 {approx = true} : vector<4x8x1xf32> -> vector<4x8x1xf32>
    %43 = vector.broadcast %42 : vector<4x8x1xf32> to vector<4x8x8xf32>
    %44 = arith.mulf %41, %43 : vector<4x8x8xf32>
    %45 = tpu.transpose %44, [1, 0, 2] : vector<4x8x8xf32> -> vector<8x4x8xf32>
    %46 = vector.shape_cast %45 : vector<8x4x8xf32> to vector<8x32xf32>
    %47 = arith.truncf %46 : vector<8x32xf32> to vector<8x32xbf16>
    %c0_11 = arith.constant 0 : index
    %c0_12 = arith.constant 0 : index
    %48 = vector.load %arg3[%c0_11, %c0_12] : memref<32x32xbf16, #tpu.memory_space<vmem>>, vector<32x32xbf16>
    %cst_13 = arith.constant dense<0.000000e+00> : vector<8x32xf32>
    %49 = tpu.matmul %47, %48, %cst_13 {dimension_numbers = #tpu.dot_dimension_numbers<[1], [0], [0], [1], [0, 0, 1, 1], [], []>} : vector<8x32xbf16>, vector<32x32xbf16>, vector<8x32xf32> -> vector<8x32xf32>
    %c0_14 = arith.constant 0 : index
    %c0_15 = arith.constant 0 : index
    %50 = vector.load %arg4[%c0_14, %c0_15] : memref<1x32xf32, #tpu.memory_space<vmem>>, vector<1x32xf32>
    %51 = vector.broadcast %50 : vector<1x32xf32> to vector<8x32xf32>
    %52 = arith.addf %49, %51 : vector<8x32xf32>
    %53 = arith.truncf %52 : vector<8x32xf32> to vector<8x32xbf16>
    %c0_16 = arith.constant 0 : index
    %c0_17 = arith.constant 0 : index
    %c0_18 = arith.constant 0 : index
    %54 = vector.load %arg5[%c0_16, %c0_17, %c0_18] : memref<1x8x32xbf16, #tpu.memory_space<vmem>>, vector<1x8x32xbf16>
    %55 = vector.shape_cast %54 : vector<1x8x32xbf16> to vector<8x32xbf16>
    %56 = vector.shape_cast %53 : vector<8x32xbf16> to vector<1x8x32xbf16>
    tpu.vector_store %arg5[%c0_16, %c0_17, %c0_18], %56 {strides = array<i32>} : memref<1x8x32xbf16, #tpu.memory_space<vmem>>, vector<1x8x32xbf16>,
    return
  }
  func.func @transform_0(%arg0: i32) -> (i32, i32, i32) {
    %c0_i32 = arith.constant 0 : i32
    %c0_i32_0 = arith.constant 0 : i32
    %c0_i32_1 = arith.constant 0 : i32
    return %arg0, %c0_i32, %c0_i32_0 : i32, i32, i32
  }
  func.func @transform_1(%arg0: i32) -> (i32, i32, i32) {
    %c0_i32 = arith.constant 0 : i32
    %c0_i32_0 = arith.constant 0 : i32
    %c0_i32_1 = arith.constant 0 : i32
    return %arg0, %c0_i32, %c0_i32_0 : i32, i32, i32
  }
  func.func @transform_2(%arg0: i32) -> (i32, i32) {
    %c0_i32 = arith.constant 0 : i32
    %c0_i32_0 = arith.constant 0 : i32
    %c0_i32_1 = arith.constant 0 : i32
    return %c0_i32, %c0_i32_0 : i32, i32
  }
  func.func @transform_3(%arg0: i32) -> (i32, i32) {
    %c0_i32 = arith.constant 0 : i32
    %c0_i32_0 = arith.constant 0 : i32
    %c0_i32_1 = arith.constant 0 : i32
    return %c0_i32, %c0_i32_0 : i32, i32
  }
  func.func @transform_4(%arg0: i32) -> (i32, i32, i32) {
    %c0_i32 = arith.constant 0 : i32
    %c0_i32_0 = arith.constant 0 : i32
    %c0_i32_1 = arith.constant 0 : i32
    return %arg0, %c0_i32, %c0_i32_0 : i32, i32, i32
  }
}

module attributes {stable_mosaic.version = 11 : i64} {
  func.func @_add_layernorm_kernel(%arg0: i32, %arg1: memref<16x32xf32, #tpu.memory_space<vmem>>, %arg2: memref<16x32xbf16, #tpu.memory_space<vmem>>, %arg3: memref<1x32xf32, #tpu.memory_space<vmem>>, %arg4: memref<1x32xf32, #tpu.memory_space<vmem>>, %arg5: memref<16x32xbf16, #tpu.memory_space<vmem>>) attributes {dimension_semantics = [#tpu.dimension_semantics<parallel>], iteration_bounds = array<i64: 1>, scalar_prefetch = 0 : i64, scratch_operands = 0 : i64, tpu.core_type = #tpu.core_type<tc>, window_params = [{transform_indices = @transform_0, window_bounds = array<i64: 16, 32>}, {transform_indices = @transform_1, window_bounds = array<i64: 16, 32>}, {pipeline_mode = #tpu.pipeline_mode<synchronous>, transform_indices = @transform_2, window_bounds = array<i64: 1, 32>}, {pipeline_mode = #tpu.pipeline_mode<synchronous>, transform_indices = @transform_3, window_bounds = array<i64: 1, 32>}, {transform_indices = @transform_4, window_bounds = array<i64: 16, 32>}]} {
    %c0 = arith.constant 0 : index
    %c0_0 = arith.constant 0 : index
    %0 = vector.load %arg1[%c0, %c0_0] : memref<16x32xf32, #tpu.memory_space<vmem>>, vector<16x32xf32>
    %c0_1 = arith.constant 0 : index
    %c0_2 = arith.constant 0 : index
    %1 = vector.load %arg2[%c0_1, %c0_2] : memref<16x32xbf16, #tpu.memory_space<vmem>>, vector<16x32xbf16>
    %2 = arith.extf %1 : vector<16x32xbf16> to vector<16x32xf32>
    %3 = arith.addf %0, %2 : vector<16x32xf32>
    %cst = arith.constant dense<0.000000e+00> : vector<16xf32>
    %4 = vector.multi_reduction <add>, %3, %cst [1] : vector<16x32xf32> to vector<16xf32>
    %5 = vector.shape_cast %4 : vector<16xf32> to vector<16x1xf32>
    %cst_3 = arith.constant 3.200000e+01 : f32
    %6 = vector.broadcast %cst_3 : f32 to vector<16x1xf32>
    %7 = arith.divf %5, %6 : vector<16x1xf32>
    %8 = vector.broadcast %7 : vector<16x1xf32> to vector<16x32xf32>
    %9 = arith.subf %3, %8 : vector<16x32xf32>
    %10 = arith.mulf %9, %9 : vector<16x32xf32>
    %cst_4 = arith.constant dense<0.000000e+00> : vector<16xf32>
    %11 = vector.multi_reduction <add>, %10, %cst_4 [1] : vector<16x32xf32> to vector<16xf32>
    %12 = vector.shape_cast %11 : vector<16xf32> to vector<16x1xf32>
    %cst_5 = arith.constant 3.200000e+01 : f32
    %13 = vector.broadcast %cst_5 : f32 to vector<16x1xf32>
    %14 = arith.divf %12, %13 : vector<16x1xf32>
    %15 = vector.broadcast %7 : vector<16x1xf32> to vector<16x32xf32>
    %16 = arith.subf %3, %15 : vector<16x32xf32>
    %cst_6 = arith.constant 9.99999974E-6 : f32
    %17 = vector.broadcast %cst_6 : f32 to vector<16x1xf32>
    %18 = arith.addf %14, %17 : vector<16x1xf32>
    %19 = math.rsqrt %18 : vector<16x1xf32>
    %20 = vector.broadcast %19 : vector<16x1xf32> to vector<16x32xf32>
    %21 = arith.mulf %16, %20 : vector<16x32xf32>
    %c0_7 = arith.constant 0 : index
    %c0_8 = arith.constant 0 : index
    %22 = vector.load %arg3[%c0_7, %c0_8] : memref<1x32xf32, #tpu.memory_space<vmem>>, vector<1x32xf32>
    %23 = vector.broadcast %22 : vector<1x32xf32> to vector<16x32xf32>
    %24 = arith.mulf %21, %23 : vector<16x32xf32>
    %c0_9 = arith.constant 0 : index
    %c0_10 = arith.constant 0 : index
    %25 = vector.load %arg4[%c0_9, %c0_10] : memref<1x32xf32, #tpu.memory_space<vmem>>, vector<1x32xf32>
    %26 = vector.broadcast %25 : vector<1x32xf32> to vector<16x32xf32>
    %27 = arith.addf %24, %26 : vector<16x32xf32>
    %28 = arith.truncf %27 : vector<16x32xf32> to vector<16x32xbf16>
    %c0_11 = arith.constant 0 : index
    %c0_12 = arith.constant 0 : index
    %29 = vector.load %arg5[%c0_11, %c0_12] : memref<16x32xbf16, #tpu.memory_space<vmem>>, vector<16x32xbf16>
    tpu.vector_store %arg5[%c0_11, %c0_12], %28 {strides = array<i32>} : memref<16x32xbf16, #tpu.memory_space<vmem>>, vector<16x32xbf16>,
    return
  }
  func.func @transform_0(%arg0: i32) -> (i32, i32) {
    %c0_i32 = arith.constant 0 : i32
    %c0_i32_0 = arith.constant 0 : i32
    return %arg0, %c0_i32 : i32, i32
  }
  func.func @transform_1(%arg0: i32) -> (i32, i32) {
    %c0_i32 = arith.constant 0 : i32
    %c0_i32_0 = arith.constant 0 : i32
    return %arg0, %c0_i32 : i32, i32
  }
  func.func @transform_2(%arg0: i32) -> (i32, i32) {
    %c0_i32 = arith.constant 0 : i32
    %c0_i32_0 = arith.constant 0 : i32
    %c0_i32_1 = arith.constant 0 : i32
    return %c0_i32, %c0_i32_0 : i32, i32
  }
  func.func @transform_3(%arg0: i32) -> (i32, i32) {
    %c0_i32 = arith.constant 0 : i32
    %c0_i32_0 = arith.constant 0 : i32
    %c0_i32_1 = arith.constant 0 : i32
    return %c0_i32, %c0_i32_0 : i32, i32
  }
  func.func @transform_4(%arg0: i32) -> (i32, i32) {
    %c0_i32 = arith.constant 0 : i32
    %c0_i32_0 = arith.constant 0 : i32
    return %arg0, %c0_i32 : i32, i32
  }
}

module attributes {stable_mosaic.version = 11 : i64} {
  func.func @_linear_kernel(%arg0: i32, %arg1: i32, %arg2: memref<16x32xbf16, #tpu.memory_space<vmem>>, %arg3: memref<32x32xbf16, #tpu.memory_space<vmem>>, %arg4: memref<1x32xf32, #tpu.memory_space<vmem>>, %arg5: memref<16x32xbf16, #tpu.memory_space<vmem>>) attributes {dimension_semantics = [#tpu.dimension_semantics<parallel>, #tpu.dimension_semantics<parallel>], iteration_bounds = array<i64: 1, 1>, scalar_prefetch = 0 : i64, scratch_operands = 0 : i64, tpu.core_type = #tpu.core_type<tc>, window_params = [{transform_indices = @transform_0, window_bounds = array<i64: 16, 32>}, {transform_indices = @transform_1, window_bounds = array<i64: 32, 32>}, {transform_indices = @transform_2, window_bounds = array<i64: 1, 32>}, {transform_indices = @transform_3, window_bounds = array<i64: 16, 32>}]} {
    %c0 = arith.constant 0 : index
    %c0_0 = arith.constant 0 : index
    %0 = vector.load %arg2[%c0, %c0_0] : memref<16x32xbf16, #tpu.memory_space<vmem>>, vector<16x32xbf16>
    %c0_1 = arith.constant 0 : index
    %c0_2 = arith.constant 0 : index
    %1 = vector.load %arg3[%c0_1, %c0_2] : memref<32x32xbf16, #tpu.memory_space<vmem>>, vector<32x32xbf16>
    %cst = arith.constant dense<0.000000e+00> : vector<16x32xf32>
    %2 = tpu.matmul %0, %1, %cst {dimension_numbers = #tpu.dot_dimension_numbers<[1], [0], [0], [1], [0, 0, 1, 1], [], []>} : vector<16x32xbf16>, vector<32x32xbf16>, vector<16x32xf32> -> vector<16x32xf32>
    %c0_3 = arith.constant 0 : index
    %c0_4 = arith.constant 0 : index
    %3 = vector.load %arg4[%c0_3, %c0_4] : memref<1x32xf32, #tpu.memory_space<vmem>>, vector<1x32xf32>
    %4 = vector.broadcast %3 : vector<1x32xf32> to vector<16x32xf32>
    %5 = arith.addf %2, %4 : vector<16x32xf32>
    %6 = arith.truncf %5 : vector<16x32xf32> to vector<16x32xbf16>
    %c0_5 = arith.constant 0 : index
    %c0_6 = arith.constant 0 : index
    %7 = vector.load %arg5[%c0_5, %c0_6] : memref<16x32xbf16, #tpu.memory_space<vmem>>, vector<16x32xbf16>
    tpu.vector_store %arg5[%c0_5, %c0_6], %6 {strides = array<i32>} : memref<16x32xbf16, #tpu.memory_space<vmem>>, vector<16x32xbf16>,
    return
  }
  func.func @transform_0(%arg0: i32, %arg1: i32) -> (i32, i32) {
    %c0_i32 = arith.constant 0 : i32
    %c0_i32_0 = arith.constant 0 : i32
    return %arg0, %c0_i32 : i32, i32
  }
  func.func @transform_1(%arg0: i32, %arg1: i32) -> (i32, i32) {
    %c0_i32 = arith.constant 0 : i32
    %c0_i32_0 = arith.constant 0 : i32
    return %c0_i32, %arg1 : i32, i32
  }
  func.func @transform_2(%arg0: i32, %arg1: i32) -> (i32, i32) {
    %c0_i32 = arith.constant 0 : i32
    %c0_i32_0 = arith.constant 0 : i32
    return %c0_i32, %arg1 : i32, i32
  }
  func.func @transform_3(%arg0: i32, %arg1: i32) -> (i32, i32) {
    %c0_i32 = arith.constant 0 : i32
    return %arg0, %arg1 : i32, i32
  }
}

module attributes {stable_mosaic.version = 11 : i64} {
  func.func @_mha_cross_kernel(%arg0: i32, %arg1: memref<1x8x32xbf16, #tpu.memory_space<vmem>>, %arg2: memref<1x8x64xbf16, #tpu.memory_space<vmem>>, %arg3: memref<1x1x8xi32, #tpu.memory_space<vmem>>, %arg4: memref<32x32xbf16, #tpu.memory_space<vmem>>, %arg5: memref<1x32xf32, #tpu.memory_space<vmem>>, %arg6: memref<1x8x32xbf16, #tpu.memory_space<vmem>>) attributes {dimension_semantics = [#tpu.dimension_semantics<parallel>], iteration_bounds = array<i64: 2>, scalar_prefetch = 0 : i64, scratch_operands = 0 : i64, tpu.core_type = #tpu.core_type<tc>, window_params = [{transform_indices = @transform_0, window_bounds = array<i64: 1, 8, 32>}, {transform_indices = @transform_1, window_bounds = array<i64: 1, 8, 64>}, {transform_indices = @transform_2, window_bounds = array<i64: 1, 1, 8>}, {pipeline_mode = #tpu.pipeline_mode<synchronous>, transform_indices = @transform_3, window_bounds = array<i64: 32, 32>}, {pipeline_mode = #tpu.pipeline_mode<synchronous>, transform_indices = @transform_4, window_bounds = array<i64: 1, 32>}, {transform_indices = @transform_5, window_bounds = array<i64: 1, 8, 32>}]} {
    %c0 = arith.constant 0 : index
    %c0_0 = arith.constant 0 : index
    %c0_1 = arith.constant 0 : index
    %0 = vector.load %arg1[%c0, %c0_0, %c0_1] : memref<1x8x32xbf16, #tpu.memory_space<vmem>>, vector<1x8x32xbf16>
    %1 = vector.shape_cast %0 : vector<1x8x32xbf16> to vector<8x32xbf16>
    %2 = arith.extf %1 : vector<8x32xbf16> to vector<8x32xf32>
    %cst = arith.constant 0.353553385 : f32
    %3 = vector.broadcast %cst : f32 to vector<8x32xf32>
    %4 = arith.mulf %2, %3 : vector<8x32xf32>
    %5 = arith.truncf %4 : vector<8x32xf32> to vector<8x32xbf16>
    %c0_2 = arith.constant 0 : index
    %c0_3 = arith.constant 0 : index
    %c0_4 = arith.constant 0 : index
    %6 = vector.load %arg2[%c0_2, %c0_3, %c0_4] : memref<1x8x64xbf16, #tpu.memory_space<vmem>>, vector<1x8x64xbf16>
    %7 = vector.shape_cast %6 : vector<1x8x64xbf16> to vector<8x64xbf16>
    %8 = vector.extract_strided_slice %7 {offsets = [0, 0], sizes = [8, 32], strides = [1, 1]} : vector<8x64xbf16> to vector<8x32xbf16>
    %9 = vector.extract_strided_slice %7 {offsets = [0, 32], sizes = [8, 32], strides = [1, 1]} : vector<8x64xbf16> to vector<8x32xbf16>
    %10 = vector.shape_cast %5 : vector<8x32xbf16> to vector<8x4x8xbf16>
    %11 = tpu.transpose %10, [1, 0, 2] : vector<8x4x8xbf16> -> vector<4x8x8xbf16>
    %12 = vector.shape_cast %8 : vector<8x32xbf16> to vector<8x4x8xbf16>
    %13 = tpu.transpose %12, [1, 0, 2] : vector<8x4x8xbf16> -> vector<4x8x8xbf16>
    %14 = vector.shape_cast %9 : vector<8x32xbf16> to vector<8x4x8xbf16>
    %15 = tpu.transpose %14, [1, 0, 2] : vector<8x4x8xbf16> -> vector<4x8x8xbf16>
    "tpu.trace_start"() <{level = 10 : i32, message = "hqd,hkd->hqk"}> : () -> ()
    %cst_5 = arith.constant dense<0.000000e+00> : vector<4x8x8xf32>
    %16 = tpu.matmul %11, %13, %cst_5 {dimension_numbers = #tpu.dot_dimension_numbers<[2], [2], [1], [1], [0, 0, 0, 1, 1, 1], [0], [0]>} : vector<4x8x8xbf16>, vector<4x8x8xbf16>, vector<4x8x8xf32> -> vector<4x8x8xf32>
    "tpu.trace_stop"() : () -> ()
    %c0_6 = arith.constant 0 : index
    %c0_7 = arith.constant 0 : index
    %c0_8 = arith.constant 0 : index
    %17 = vector.load %arg3[%c0_6, %c0_7, %c0_8] : memref<1x1x8xi32, #tpu.memory_space<vmem>>, vector<1x1x8xi32>
    %18 = vector.shape_cast %17 : vector<1x1x8xi32> to vector<1x8xi32>
    %c0_i32 = arith.constant 0 : i32
    %19 = vector.broadcast %c0_i32 : i32 to vector<1x8xi32>
    %20 = arith.cmpi ne, %18, %19 : vector<1x8xi32>
    %21 = vector.shape_cast %20 : vector<1x8xi1> to vector<1x1x8xi1>
    %cst_9 = arith.constant -1.000000e+09 : f32
    %22 = vector.shape_cast %21 : vector<1x1x8xi1> to vector<1x1x8xi1>
    %23 = vector.broadcast %22 : vector<1x1x8xi1> to vector<4x8x8xi1>
    %24 = vector.broadcast %cst_9 : f32 to vector<4x8x8xf32>
    %25 = arith.select %23, %24, %16 : vector<4x8x8xi1>, vector<4x8x8xf32>
    %cst_10 = arith.constant dense<0xFF800000> : vector<4x8xf32>
    %26 = vector.multi_reduction <maximumf>, %25, %cst_10 [2] : vector<4x8x8xf32> to vector<4x8xf32>
    %27 = vector.shape_cast %26 : vector<4x8xf32> to vector<4x8x1xf32>
    %28 = vector.broadcast %27 : vector<4x8x1xf32> to vector<4x8x8xf32>
    %29 = arith.subf %25, %28 : vector<4x8x8xf32>
    %30 = math.exp %29 : vector<4x8x8xf32>
    %cst_11 = arith.constant dense<0.000000e+00> : vector<4x8xf32>
    %31 = vector.multi_reduction <add>, %30, %cst_11 [2] : vector<4x8x8xf32> to vector<4x8xf32>
    %32 = vector.shape_cast %31 : vector<4x8xf32> to vector<4x8x1xf32>
    %33 = arith.truncf %30 : vector<4x8x8xf32> to vector<4x8x8xbf16>
    "tpu.trace_start"() <{level = 10 : i32, message = "hqk,hkd->hqd"}> : () -> ()
    %cst_12 = arith.constant dense<0.000000e+00> : vector<4x8x8xf32>
    %34 = tpu.matmul %33, %15, %cst_12 {dimension_numbers = #tpu.dot_dimension_numbers<[2], [1], [1], [2], [0, 0, 0, 1, 1, 2], [0], [0]>} : vector<4x8x8xbf16>, vector<4x8x8xbf16>, vector<4x8x8xf32> -> vector<4x8x8xf32>
    "tpu.trace_stop"() : () -> ()
    %35 = tpu.reciprocal %32 {approx = true} : vector<4x8x1xf32> -> vector<4x8x1xf32>
    %36 = vector.broadcast %35 : vector<4x8x1xf32> to vector<4x8x8xf32>
    %37 = arith.mulf %34, %36 : vector<4x8x8xf32>
    %38 = tpu.transpose %37, [1, 0, 2] : vector<4x8x8xf32> -> vector<8x4x8xf32>
    %39 = vector.shape_cast %38 : vector<8x4x8xf32> to vector<8x32xf32>
    %40 = arith.truncf %39 : vector<8x32xf32> to vector<8x32xbf16>
    %c0_13 = arith.constant 0 : index
    %c0_14 = arith.constant 0 : index
    %41 = vector.load %arg4[%c0_13, %c0_14] : memref<32x32xbf16, #tpu.memory_space<vmem>>, vector<32x32xbf16>
    %cst_15 = arith.constant dense<0.000000e+00> : vector<8x32xf32>
    %42 = tpu.matmul %40, %41, %cst_15 {dimension_numbers = #tpu.dot_dimension_numbers<[1], [0], [0], [1], [0, 0, 1, 1], [], []>} : vector<8x32xbf16>, vector<32x32xbf16>, vector<8x32xf32> -> vector<8x32xf32>
    %c0_16 = arith.constant 0 : index
    %c0_17 = arith.constant 0 : index
    %43 = vector.load %arg5[%c0_16, %c0_17] : memref<1x32xf32, #tpu.memory_space<vmem>>, vector<1x32xf32>
    %44 = vector.broadcast %43 : vector<1x32xf32> to vector<8x32xf32>
    %45 = arith.addf %42, %44 : vector<8x32xf32>
    %46 = arith.truncf %45 : vector<8x32xf32> to vector<8x32xbf16>
    %c0_18 = arith.constant 0 : index
    %c0_19 = arith.constant 0 : index
    %c0_20 = arith.constant 0 : index
    %47 = vector.load %arg6[%c0_18, %c0_19, %c0_20] : memref<1x8x32xbf16, #tpu.memory_space<vmem>>, vector<1x8x32xbf16>
    %48 = vector.shape_cast %47 : vector<1x8x32xbf16> to vector<8x32xbf16>
    %49 = vector.shape_cast %46 : vector<8x32xbf16> to vector<1x8x32xbf16>
    tpu.vector_store %arg6[%c0_18, %c0_19, %c0_20], %49 {strides = array<i32>} : memref<1x8x32xbf16, #tpu.memory_space<vmem>>, vector<1x8x32xbf16>,
    return
  }
  func.func @transform_0(%arg0: i32) -> (i32, i32, i32) {
    %c0_i32 = arith.constant 0 : i32
    %c0_i32_0 = arith.constant 0 : i32
    %c0_i32_1 = arith.constant 0 : i32
    return %arg0, %c0_i32, %c0_i32_0 : i32, i32, i32
  }
  func.func @transform_1(%arg0: i32) -> (i32, i32, i32) {
    %c0_i32 = arith.constant 0 : i32
    %c0_i32_0 = arith.constant 0 : i32
    %c0_i32_1 = arith.constant 0 : i32
    return %arg0, %c0_i32, %c0_i32_0 : i32, i32, i32
  }
  func.func @transform_2(%arg0: i32) -> (i32, i32, i32) {
    %c0_i32 = arith.constant 0 : i32
    %c0_i32_0 = arith.constant 0 : i32
    %c0_i32_1 = arith.constant 0 : i32
    return %arg0, %c0_i32, %c0_i32_0 : i32, i32, i32
  }
  func.func @transform_3(%arg0: i32) -> (i32, i32) {
    %c0_i32 = arith.constant 0 : i32
    %c0_i32_0 = arith.constant 0 : i32
    %c0_i32_1 = arith.constant 0 : i32
    return %c0_i32, %c0_i32_0 : i32, i32
  }
  func.func @transform_4(%arg0: i32) -> (i32, i32) {
    %c0_i32 = arith.constant 0 : i32
    %c0_i32_0 = arith.constant 0 : i32
    %c0_i32_1 = arith.constant 0 : i32
    return %c0_i32, %c0_i32_0 : i32, i32
  }
  func.func @transform_5(%arg0: i32) -> (i32, i32, i32) {
    %c0_i32 = arith.constant 0 : i32
    %c0_i32_0 = arith.constant 0 : i32
    %c0_i32_1 = arith.constant 0 : i32
    return %arg0, %c0_i32, %c0_i32_0 : i32, i32, i32
  }
}

module attributes {stable_mosaic.version = 11 : i64} {
  func.func @_fc_out_kernel(%arg0: i32, %arg1: i32, %arg2: memref<1x2x32xbf16, #tpu.memory_space<vmem>>, %arg3: memref<32x16xbf16, #tpu.memory_space<vmem>>, %arg4: memref<1x16xf32, #tpu.memory_space<vmem>>, %arg5: memref<1x2x16xf32, #tpu.memory_space<vmem>>) attributes {dimension_semantics = [#tpu.dimension_semantics<parallel>, #tpu.dimension_semantics<parallel>], iteration_bounds = array<i64: 8, 1>, scalar_prefetch = 0 : i64, scratch_operands = 0 : i64, tpu.core_type = #tpu.core_type<tc>, window_params = [{transform_indices = @transform_0, window_bounds = array<i64: 1, 2, 32>}, {transform_indices = @transform_1, window_bounds = array<i64: 32, 16>}, {transform_indices = @transform_2, window_bounds = array<i64: 1, 16>}, {transform_indices = @transform_3, window_bounds = array<i64: 1, 2, 16>}]} {
    %c0 = arith.constant 0 : index
    %c0_0 = arith.constant 0 : index
    %c0_1 = arith.constant 0 : index
    %0 = vector.load %arg2[%c0, %c0_0, %c0_1] : memref<1x2x32xbf16, #tpu.memory_space<vmem>>, vector<1x2x32xbf16>
    %1 = vector.shape_cast %0 : vector<1x2x32xbf16> to vector<2x32xbf16>
    %c0_2 = arith.constant 0 : index
    %c0_3 = arith.constant 0 : index
    %2 = vector.load %arg3[%c0_2, %c0_3] : memref<32x16xbf16, #tpu.memory_space<vmem>>, vector<32x16xbf16>
    %cst = arith.constant dense<0.000000e+00> : vector<2x16xf32>
    %3 = tpu.matmul %1, %2, %cst {dimension_numbers = #tpu.dot_dimension_numbers<[1], [0], [0], [1], [0, 0, 1, 1], [], []>} : vector<2x32xbf16>, vector<32x16xbf16>, vector<2x16xf32> -> vector<2x16xf32>
    %c0_4 = arith.constant 0 : index
    %c0_5 = arith.constant 0 : index
    %4 = vector.load %arg4[%c0_4, %c0_5] : memref<1x16xf32, #tpu.memory_space<vmem>>, vector<1x16xf32>
    %5 = vector.broadcast %4 : vector<1x16xf32> to vector<2x16xf32>
    %6 = arith.addf %3, %5 : vector<2x16xf32>
    %c0_6 = arith.constant 0 : index
    %c0_7 = arith.constant 0 : index
    %c0_8 = arith.constant 0 : index
    %7 = vector.load %arg5[%c0_6, %c0_7, %c0_8] : memref<1x2x16xf32, #tpu.memory_space<vmem>>, vector<1x2x16xf32>
    %8 = vector.shape_cast %7 : vector<1x2x16xf32> to vector<2x16xf32>
    %9 = vector.shape_cast %6 : vector<2x16xf32> to vector<1x2x16xf32>
    tpu.vector_store %arg5[%c0_6, %c0_7, %c0_8], %9 {strides = array<i32>} : memref<1x2x16xf32, #tpu.memory_space<vmem>>, vector<1x2x16xf32>,
    return
  }
  func.func @transform_0(%arg0: i32, %arg1: i32) -> (i32, i32, i32) {
    %c0_i32 = arith.constant 0 : i32
    %c0_i32_0 = arith.constant 0 : i32
    %c0_i32_1 = arith.constant 0 : i32
    return %arg0, %c0_i32, %c0_i32_0 : i32, i32, i32
  }
  func.func @transform_1(%arg0: i32, %arg1: i32) -> (i32, i32) {
    %c0_i32 = arith.constant 0 : i32
    %c0_i32_0 = arith.constant 0 : i32
    return %c0_i32, %arg1 : i32, i32
  }
  func.func @transform_2(%arg0: i32, %arg1: i32) -> (i32, i32) {
    %c0_i32 = arith.constant 0 : i32
    %c0_i32_0 = arith.constant 0 : i32
    return %c0_i32, %arg1 : i32, i32
  }
  func.func @transform_3(%arg0: i32, %arg1: i32) -> (i32, i32, i32) {
    %c0_i32 = arith.constant 0 : i32
    %c0_i32_0 = arith.constant 0 : i32
    return %arg0, %c0_i32, %arg1 : i32, i32, i32
  }
}

</mosaic_0001>

<bundles_post_ra>
// kernel: _lambda_.37
= control target key start
LH: loop header
LB: loop body
LE: loop exit
PB: predicated region body
PF: predicated region fallthrough
CT: control target
= control target key end

     0   :  { %vm206_vm0 = vcmask 516096   ;;  %s345_s1 = inlined_call_operand.vmem [shape: bf16[256,64], index: 1, kind: input, shape index: {}]   ;;  %s346_s0 = inlined_call_operand.vmem [shape: f32[2,256], index: 0, kind: input, shape index: {}]   ;;  %s347_s2 = inlined_call_operand.vmem [shape: f32[1,64], index: 2, kind: input, shape index: {}]   ;;  %s348_s3 = inlined_call_operand.vmem [shape: bf16[2,64], index: 3, kind: output, shape index: {}]  }
   0x1   :  { %v252_v0 = vld [vmem:[%s345_s1 + $0x40] sm:$0xff]   ;;  %v254_v2 = vld [vmem:[%s345_s1 + $0x48] sm:$0xff]   ;;  %v256_v4 = vld [vmem:[%s345_s1 + $0x50] sm:$0xff]  }
   0x2   :  { %v253_v1 = vld [vmem:[%s345_s1] sm:$0xff]   ;;  %230 = vmatprep.subr.bf16.mxu0 %v252_v0  ;;  %v255_v3 = vld [vmem:[%s345_s1 + $0x8] sm:$0xff]   ;;  %v257_v5 = vld [vmem:[%s345_s1 + $0x10] sm:$0xff]  }
   0x3   :  { %231 = vmatpush3.bf16.msra.mxu0 %v253_v1  ;;  %v258_v6 = vld [vmem:[%s345_s1 + $0x58] sm:$0xff]   ;;  %v260_v8 = vld [vmem:[%s345_s1 + $0x60] sm:$0xff]   ;;  %v262_v10 = vld [vmem:[%s345_s1 + $0x68] sm:$0xff]  }
   0x4   :  { %232 = vmatprep.subr.bf16.mxu0 %v254_v2  ;;  %v259_v7 = vld [vmem:[%s345_s1 + $0x18] sm:$0xff]   ;;  %v261_v9 = vld [vmem:[%s345_s1 + $0x20] sm:$0xff]   ;;  %v263_v13 = vld [vmem:[%s345_s1 + $0x28] sm:$0xff]  }
   0x5   :  { %v212_v11 = vld.sshfl [vmem:[%s346_s0] sm:$0x33 pattern:$0x76325410]  ;;  %v264_v15 = vld [vmem:[%s345_s1 + $0x70] sm:$0xff]   ;;  %v266_v17 = vld [vmem:[%s345_s1 + $0x78] sm:$0xff]  }
   0x6   :  { %v24_v12 = vcombine.high %v212_v11, %v212_v11  ;;  %v265_v16 = vld [vmem:[%s345_s1 + $0x30] sm:$0xff]   ;;  %v267_v18 = vld [vmem:[%s345_s1 + $0x38] sm:$0xff]   ;;  %v27_v19 = vpack.c.bf16 %v212_v11, %v212_v11  ;;  %v213_v21 = vld [vmem:[%s347_s2] ss:$0 sm:$0xff] }
   0x7   :  { %233 = vmatpush3.bf16.msra.mxu0 %v255_v3 }
   0x8   :  { %234 = vmatprep.subr.bf16.mxu0 %v256_v4  ;;  %v28_v14 = vpack.c.bf16 %v24_v12, %v24_v12 }
   0xa   :  { %196 = vmatprep.mubr.bf16.mxu0 %v28_v14 }
   0xb   :  { %235 = vmatpush3.bf16.msra.mxu0 %v257_v5 }
   0xc   :  { %236 = vmatprep.subr.bf16.mxu0 %v258_v6 }
   0xf   :  { %237 = vmatpush3.bf16.msra.mxu0 %v259_v7 }
  0x10   :  { %238 = vmatprep.subr.bf16.mxu0 %v260_v8 }
  0x13   :  { %239 = vmatpush3.bf16.msra.mxu0 %v261_v9 }
  0x14   :  { %240 = vmatprep.subr.bf16.mxu0 %v262_v10 }
  0x17   :  { %241 = vmatpush3.bf16.msra.mxu0 %v263_v13 }
  0x18   :  { %242 = vmatprep.subr.bf16.mxu0 %v264_v15 }
  0x1b   :  { %243 = vmatpush3.bf16.msra.mxu0 %v265_v16 }
  0x1c   :  { %244 = vmatprep.subr.bf16.mxu0 %v266_v17 }
  0x1f   :  { %245 = vmatpush3.bf16.msra.mxu0 %v267_v18 }
  0x22   :  { %197 = vmatmul.mubr.bf16.vlgmr.msra.gmra.mrb[0].mxu0 %v27_v19 }
  0xf5   :  { %v246_v20 = vpop.f32.mrb[0].mxu0 }
  0xf6   :  { %v247_v22 = vpop.f32.mrb[1].mxu0 }
  0xf7   :  { %v248_v23 = vadd.f32 %v247_v22, %v246_v20  ;;  %v249_v24 = vpop.f32.mrb[2].mxu0 }
  0xf8   :  { %v250_v25 = vpop.f32.mrb[3].mxu0 }
  0xf9   :  { %v199_v26 = vadd.f32 %v248_v23, %v213_v21 }
  0xfb   :  { %v204_v27 = vmax.f32 %v199_v26, 0.0 }
  0xfd   :  { %v205_v28 = vpack.c.bf16 %v204_v27, %v204_v27 }
  0xff   :  { %207 = vst.msk [vmem:[%s348_s3] sm:$0x1] %vm206_vm0, %v205_v28 }

// kernel: _lambda_.41
= control target key start
LH: loop header
LB: loop body
LE: loop exit
PB: predicated region body
PF: predicated region fallthrough
CT: control target
= control target key end

     0   :  { %v130_v0 = vmov 0.0   ;;  %vm131_vm0 = vmmov 0   ;;  %vm45_vm1 = vcmask 261120   ;;  %vm98_vm2 = vcmask 781312   ;;  %s170_s1 = inlined_call_operand.vmem [shape: bf16[32,96], index: 1, kind: input, shape index: {}]   ;;  %s171_s0 = inlined_call_operand.vmem [shape: bf16[16,32], index: 0, kind: input, shape index: {}]   ;;  %s172_s2 = inlined_call_operand.vmem [shape: f32[1,96], index: 2, kind: input, shape index: {}]   ;;  %s173_s3 = inlined_call_operand.vmem [shape: bf16[16,96], index: 3, kind: output, shape index: {}]  }
   0x1   :  { %117 = vmatprep.subr.bf16.mxu0 %v130_v0  ;;  %v127_v1 = vld [vmem:[%s170_s1] sm:$0xff]   ;;  %121 = vmatprep.mubr.msk.bf16.mxu0 %vm131_vm0, %v130_v0  ;;  %v128_v2 = vld [vmem:[%s170_s1 + $0x8] sm:$0xff]  }
   0x2   :  { %118 = vmatpush3.bf16.msra.mxu0 %v127_v1  ;;  %v129_v3 = vld [vmem:[%s171_s0] sm:$0xff]  }
   0x3   :  { %119 = vmatprep.subr.bf16.mxu0 %v130_v0  ;;  %v105_v4 = vld [vmem:[%s172_s2] ss:$0 sm:$0xff] }
   0x6   :  { %120 = vmatpush3.bf16.msra.mxu0 %v128_v2 }
   0x9   :  { %122 = vmatmul.mubr.msk.bf16.vlgmr.msra.gmra.mrb[0].mxu0 %vm45_vm1, %v129_v3 }
  0xdc   :  { %v83_v5 = vpop.f32.mrb[0].mxu0 }
  0xdd   :  { %v84_v6 = vadd.f32 %v105_v4, %v83_v5  ;;  %v123_v7 = vpop.f32.mrb[1].mxu0 }
  0xde   :  { %v86_v8 = vpop.f32.mrb[2].mxu0 }
  0xdf   :  { %v112_v9 = vpack.c.bf16 %v84_v6, %v84_v6  ;;  %v87_v10 = vadd.f32 %v105_v4, %v86_v8  ;;  %v124_v11 = vpop.f32.mrb[3].mxu0 }
  0xe1   :  { %99 = vst.msk [vmem:[%s173_s3] sm:$0xf] %vm98_vm2, %v112_v9  ;;  %v113_v12 = vpack.c.bf16 %v87_v10, %v87_v10 }
  0xe3   :  { %100 = vst.msk [vmem:[%s173_s3 + $0x4] sm:$0xf] %vm98_vm2, %v113_v12 }

// kernel: _lambda_.40
= control target key start
LH: loop header
LB: loop body
LE: loop exit
PB: predicated region body
PF: predicated region fallthrough
CT: control target
= control target key end

     0   :  { %v171_v1 = vmov 0   ;;  %vm76_vm0 = vcmask 523264   ;;  %v26_v10 = vlaneseq  ;;  %v172_v15 = vmov 1966171168   ;;  %s226_s1 = inlined_call_operand.vmem [shape: bf16[64,256], index: 1, kind: input, shape index: {}]   ;;  %s227_s0 = inlined_call_operand.vmem [shape: bf16[2,64], index: 0, kind: input, shape index: {}]   ;;  %s228_s2 = inlined_call_operand.vmem [shape: f32[1,256], index: 2, kind: input, shape index: {}]   ;;  %s229_s3 = inlined_call_operand.vmem [shape: bf16[2,256], index: 3, kind: output, shape index: {}]  }
   0x1   :  { %v159_v0 = vld [vmem:[%s226_s1 + $0x4] ss:$8 sps:$4 sm:$0xff]   ;;  %112 = vmatprep.mubr.bf16.mxu0 %v171_v1  ;;  %v161_v2 = vld [vmem:[%s226_s1] ss:$8 sps:$4 sm:$0xff]   ;;  %v162_v3 = vld [vmem:[%s226_s1 + $0x14] ss:$8 sps:$4 sm:$0xff]   ;;  %v127_v16 = vunpack.c.l.s4 %v172_v15 }
   0x2   :  { %80 = vmatprep.subr.bf16.mxu0 %v159_v0  ;;  %v164_v4 = vld [vmem:[%s226_s1 + $0x10] ss:$8 sps:$4 sm:$0xff]   ;;  %v165_v5 = vld [vmem:[%s226_s1 + $0x24] ss:$8 sps:$4 sm:$0xff]   ;;  %v167_v6 = vld [vmem:[%s226_s1 + $0x20] ss:$8 sps:$4 sm:$0xff]  }
   0x3   :  { %81 = vmatpush1.bf16.msra.mxu0 %v161_v2  ;;  %v168_v7 = vld [vmem:[%s226_s1 + $0x34] ss:$8 sps:$4 sm:$0xff]   ;;  %v170_v8 = vld [vmem:[%s226_s1 + $0x30] ss:$8 sps:$4 sm:$0xff]   ;;  %v15_v9 = vld [vmem:[%s227_s0] sm:$0x1]  ;;  %v128_v19 = vunpack.c.0.s8 %v127_v16 }
   0x4   :  { %82 = vmatprep.subr.bf16.mxu0 %v162_v3  ;;  %v27_v11 = vshrl.u32 %v26_v10, 7  ;;  %v24_v13 = vld [vmem:[%s228_s2] sm:$0x3] }
   0x6   :  { %v28_v12 = vsub.s32 0, %v27_v11  ;;  %v32_v14 = vsub.s32 1, %v27_v11  ;;  %v131_v24 = vsub.s32 %v128_v19, %v27_v11 }
   0x7   :  { %83 = vmatpush1.bf16.msra.mxu0 %v164_v4 }
   0x8   :  { %84 = vmatprep.subr.bf16.mxu0 %v165_v5  ;;  %v29_v17 = vrot.slane %v24_v13, %v28_v12  ;;  %v33_v18 = vrot.slane %v24_v13, %v32_v14 }
   0xb   :  { %85 = vmatpush1.bf16.msra.mxu0 %v167_v6 }
   0xc   :  { %86 = vmatprep.subr.bf16.mxu0 %v168_v7 }
   0xf   :  { %87 = vmatpush1.bf16.msra.mxu0 %v170_v8 }
  0x12   :  { %154 = vmatmul.mubr.msk.bf16.vlgmr.msra.gmra.mrb[0].mxu0 %vm76_vm0, %v15_v9 }
  0xe5   :  { %v114_v20 = vpop.f32.mrb[0].mxu0 }
  0xe6   :  { %v115_v21 = vadd.f32 %v114_v20, %v29_v17  ;;  %v116_v22 = vpop.f32.mrb[1].mxu0 }
  0xe7   :  { %v117_v23 = vadd.f32 %v116_v22, %v33_v18  ;;  %v118_v25 = vpop.f32.mrb[2].mxu0 }
  0xe8   :  { %v119_v26 = vpop.f32.mrb[3].mxu0 }
  0xe9   :  { %v155_v27 = vpack.c.bf16 %v117_v23, %v115_v21 }
  0xeb   :  { %v132_v28 = vrot.slane %v155_v27, %v131_v24 }
  0xed   :  { %156 = vst.sshfl [vmem:[%s229_s3] sm:$0x5 pattern:$0x73625140] %v132_v28 }

// kernel: _lambda_.38
= control target key start
LH: loop header
LB: loop body
LE: loop exit
PB: predicated region body
PF: predicated region fallthrough
CT: control target
= control target key end

     0   :  { %v138_v0 = vmov 0.0   ;;  %vm139_vm0 = vmmov 0   ;;  %vm55_vm1 = vcmask 523264   ;;  %vm103_vm2 = vcmask 516096   ;;  %s181_s1 = inlined_call_operand.vmem [shape: bf16[64,64], index: 1, kind: input, shape index: {}]   ;;  %s182_s0 = inlined_call_operand.vmem [shape: bf16[2,64], index: 0, kind: input, shape index: {}]   ;;  %s183_s2 = inlined_call_operand.vmem [shape: f32[1,64], index: 2, kind: input, shape index: {}]   ;;  %s184_s3 = inlined_call_operand.vmem [shape: bf16[2,64], index: 3, kind: output, shape index: {}]  }
   0x1   :  { %120 = vmatprep.subr.bf16.mxu0 %v138_v0  ;;  %v134_v1 = vld [vmem:[%s181_s1] sm:$0xff]   ;;  %128 = vmatprep.mubr.msk.bf16.mxu0 %vm139_vm0, %v138_v0  ;;  %v135_v2 = vld [vmem:[%s181_s1 + $0x8] sm:$0xff]   ;;  %v136_v3 = vld [vmem:[%s181_s1 + $0x10] sm:$0xff]  }
   0x2   :  { %121 = vmatpush3.bf16.msra.mxu0 %v134_v1  ;;  %v137_v4 = vld [vmem:[%s181_s1 + $0x18] sm:$0xff]   ;;  %v15_v5 = vld [vmem:[%s182_s0] sm:$0x1] }
   0x3   :  { %122 = vmatprep.subr.bf16.mxu0 %v138_v0  ;;  %v109_v6 = vld [vmem:[%s183_s2] ss:$0 sm:$0xff]  ;;  %v99_v7 = vunpack.c.l.bf16 %v15_v5 }
   0x6   :  { %123 = vmatpush3.bf16.msra.mxu0 %v135_v2 }
   0x7   :  { %124 = vmatprep.subr.bf16.mxu0 %v138_v0 }
   0xa   :  { %125 = vmatpush3.bf16.msra.mxu0 %v136_v3 }
   0xb   :  { %126 = vmatprep.subr.bf16.mxu0 %v138_v0 }
   0xe   :  { %127 = vmatpush3.bf16.msra.mxu0 %v137_v4 }
  0x11   :  { %129 = vmatmul.mubr.msk.bf16.vlgmr.msra.gmra.mrb[0].mxu0 %vm55_vm1, %v15_v5 }
  0xe4   :  { %v93_v8 = vpop.f32.mrb[0].mxu0 }
  0xe5   :  { %v94_v9 = vadd.f32 %v109_v6, %v93_v8  ;;  %v130_v10 = vpop.f32.mrb[1].mxu0 }
  0xe6   :  { %v96_v11 = vpop.f32.mrb[2].mxu0 }
  0xe7   :  { %v100_v12 = vadd.f32 %v99_v7, %v94_v9  ;;  %v131_v13 = vpop.f32.mrb[3].mxu0 }
  0xe9   :  { %v101_v14 = vmax.f32 %v100_v12, 0.0 }
  0xeb   :  { %v102_v15 = vpack.c.bf16 %v101_v14, %v101_v14 }
  0xed   :  { %104 = vst.msk [vmem:[%s184_s3] sm:$0x1] %vm103_vm2, %v102_v15 }

// kernel: _lambda_.45
= control target key start
LH: loop header
LB: loop body
LE: loop exit
PB: predicated region body
PF: predicated region fallthrough
CT: control target
= control target key end

     0   :  { %v204_v0 = vmov 0.0   ;;  %vm205_vm0 = vmmov 0   ;;  %vm143_vm1 = vcmask 257024   ;;  %s262_s1 = inlined_call_operand.vmem [shape: bf16[128,32], index: 1, kind: input, shape index: {}]   ;;  %s263_s0 = inlined_call_operand.vmem [shape: bf16[16,128], index: 0, kind: input, shape index: {}]   ;;  %s264_s2 = inlined_call_operand.vmem [shape: f32[1,32], index: 2, kind: input, shape index: {}]   ;;  %s265_s3 = inlined_call_operand.vmem [shape: bf16[16,32], index: 3, kind: output, shape index: {}]  }
   0x1   :  { %173 = vmatprep.subr.bf16.mxu0 %v204_v0  ;;  %v195_v1 = vld [vmem:[%s262_s1] sm:$0xff]   ;;  %189 = vmatprep.mubr.msk.bf16.mxu0 %vm205_vm0, %v204_v0  ;;  %v196_v2 = vld [vmem:[%s262_s1 + $0x8] sm:$0xff]   ;;  %v197_v3 = vld [vmem:[%s262_s1 + $0x10] sm:$0xff]  }
   0x2   :  { %174 = vmatpush3.bf16.msra.mxu0 %v195_v1  ;;  %v198_v4 = vld [vmem:[%s262_s1 + $0x18] sm:$0xff]   ;;  %v199_v5 = vld [vmem:[%s262_s1 + $0x20] sm:$0xff]   ;;  %v200_v6 = vld [vmem:[%s262_s1 + $0x28] sm:$0xff]  }
   0x3   :  { %175 = vmatprep.subr.bf16.mxu0 %v204_v0  ;;  %v201_v7 = vld [vmem:[%s262_s1 + $0x30] sm:$0xff]   ;;  %v202_v8 = vld [vmem:[%s262_s1 + $0x38] sm:$0xff]   ;;  %v203_v9 = vld [vmem:[%s263_s0] sm:$0xff]  }
   0x4   :  { %v150_v10 = vld [vmem:[%s264_s2] ss:$0 sm:$0xff] }
   0x6   :  { %176 = vmatpush3.bf16.msra.mxu0 %v196_v2 }
   0x7   :  { %177 = vmatprep.subr.bf16.mxu0 %v204_v0 }
   0xa   :  { %178 = vmatpush3.bf16.msra.mxu0 %v197_v3 }
   0xb   :  { %179 = vmatprep.subr.bf16.mxu0 %v204_v0 }
   0xe   :  { %180 = vmatpush3.bf16.msra.mxu0 %v198_v4 }
   0xf   :  { %181 = vmatprep.subr.bf16.mxu0 %v204_v0 }
  0x12   :  { %182 = vmatpush3.bf16.msra.mxu0 %v199_v5 }
  0x13   :  { %183 = vmatprep.subr.bf16.mxu0 %v204_v0 }
  0x16   :  { %184 = vmatpush3.bf16.msra.mxu0 %v200_v6 }
  0x17   :  { %185 = vmatprep.subr.bf16.mxu0 %v204_v0 }
  0x1a   :  { %186 = vmatpush3.bf16.msra.mxu0 %v201_v7 }
  0x1b   :  { %187 = vmatprep.subr.bf16.mxu0 %v204_v0 }
  0x1e   :  { %188 = vmatpush3.bf16.msra.mxu0 %v202_v8 }
  0x21   :  { %190 = vmatmul.mubr.bf16.vlgmr.msra.gmra.mrb[0].mxu0 %v203_v9 }
  0xf4   :  { %v128_v11 = vpop.f32.mrb[0].mxu0 }
  0xf5   :  { %v129_v12 = vadd.f32 %v150_v10, %v128_v11  ;;  %v191_v13 = vpop.f32.mrb[1].mxu0 }
  0xf6   :  { %v131_v14 = vpop.f32.mrb[2].mxu0 }
  0xf7   :  { %v162_v15 = vpack.c.bf16 %v129_v12, %v129_v12  ;;  %v132_v16 = vadd.f32 %v150_v10, %v131_v14  ;;  %v192_v17 = vpop.f32.mrb[3].mxu0 }
  0xf9   :  { %144 = vst.msk [vmem:[%s265_s3] sm:$0xf] %vm143_vm1, %v162_v15  ;;  %v163_v18 = vpack.c.bf16 %v132_v16, %v132_v16 }
  0xfb   :  { %145 = vst.msk [vmem:[%s265_s3 + $0x4] sm:$0xf] %vm143_vm1, %v163_v18 }

// kernel: _lambda_.43
= control target key start
LH: loop header
LB: loop body
LE: loop exit
PB: predicated region body
PF: predicated region fallthrough
CT: control target
= control target key end

     0   :  { %vm27_vm0 = vcmask 261120   ;;  %vm81_vm1 = vcmask 257024   ;;  %s153_s0 = inlined_call_operand.vmem [shape: bf16[16,32], index: 0, kind: input, shape index: {}]   ;;  %s154_s1 = inlined_call_operand.vmem [shape: bf16[16,32], index: 1, kind: input, shape index: {}]   ;;  %s155_s2 = inlined_call_operand.vmem [shape: f32[1,32], index: 2, kind: input, shape index: {}]   ;;  %s156_s3 = inlined_call_operand.vmem [shape: f32[1,32], index: 3, kind: input, shape index: {}]   ;;  %s157_s4 = inlined_call_operand.vmem [shape: bf16[16,32], index: 4, kind: output, shape index: {}]  }
   0x1   :  { %v95_v0 = vld [vmem:[%s153_s0] sm:$0xff]  }
   0x2   :  { %v99_v1 = vld [vmem:[%s154_s1] sm:$0xff]   ;;  %v96_v2 = vunpack.c.l.bf16 %v95_v0  ;;  %v97_v4 = vunpack.c.h.bf16 %v95_v0 }
   0x3   :  { %v100_v3 = vunpack.c.l.bf16 %v99_v1  ;;  %v101_v5 = vunpack.c.h.bf16 %v99_v1  ;;  %v88_v27 = vld [vmem:[%s155_s2] ss:$0 sm:$0xff] }
   0x4   :  { %v89_v29 = vld [vmem:[%s156_s3] ss:$0 sm:$0xff] }
   0x5   :  { %v25_v6 = vadd.f32 %v100_v3, %v96_v2  ;;  %v26_v7 = vadd.f32 %v101_v5, %v97_v4 }
   0x7   :  { %v28_v8 = vsel %vm27_vm0, %v25_v6, 0.0  ;;  %v31_v9 = vsel %vm27_vm0, %v26_v7, 0.0 }
   0x8   :  { %29 = vadd.xlane.f32.xlu0 %v28_v8 }
   0xc   :  { %32 = vadd.xlane.f32.xlu0 %v31_v9 }
  0x95   :  { %v30_v10 = vpop.xlane.xlu0 %29 }
  0x96   :  { %v35_v11 = vmul.f32 0.03125, %v30_v10 }
  0x98   :  { %v37_v12 = vsub.f32 %v25_v6, %v35_v11 }
  0x99   :  { %v33_v13 = vpop.xlane.xlu0 %32 }
  0x9a   :  { %v36_v14 = vmul.f32 0.03125, %v33_v13  ;;  %v39_v15 = vmul.f32 %v37_v12, %v37_v12 }
  0x9c   :  { %v38_v16 = vsub.f32 %v26_v7, %v36_v14  ;;  %v41_v17 = vsel %vm27_vm0, %v39_v15, 0.0 }
  0x9d   :  { %42 = vadd.xlane.f32.xlu1 %v41_v17 }
  0x9e   :  { %v40_v18 = vmul.f32 %v38_v16, %v38_v16 }
  0xa0   :  { %v44_v19 = vsel %vm27_vm0, %v40_v18, 0.0 }
  0xa1   :  { %45 = vadd.xlane.f32.xlu1 %v44_v19 }
 0x12a   :  { %v43_v20 = vpop.xlane.xlu1 %42 }
 0x12b   :  { %v47_v21 = vmul.f32 0.03125, %v43_v20 }
 0x12d   :  { %v49_v22 = vadd.f32 1e-05, %v47_v21 }
 0x12e   :  { %v46_v23 = vpop.xlane.xlu1 %45 }
 0x12f   :  { %102 = vrsqrt.f32 %v49_v22  ;;  %v48_v24 = vmul.f32 0.03125, %v46_v23 }
 0x131   :  { %v50_v25 = vadd.f32 1e-05, %v48_v24 }
 0x133   :  { %104 = vrsqrt.f32 %v50_v25 }
 0x139   :  { %v103_v26 = vpop.eup %102 }
 0x13a   :  { %v53_v28 = vmul.f32 %v103_v26, %v37_v12 }
 0x13c   :  { %v62_v30 = vmul.f32 %v88_v27, %v53_v28 }
 0x13d   :  { %v105_v31 = vpop.eup %104 }
 0x13e   :  { %v71_v32 = vadd.f32 %v89_v29, %v62_v30  ;;  %v54_v33 = vmul.f32 %v105_v31, %v38_v16 }
 0x140   :  { %v92_v34 = vpack.c.bf16 %v71_v32, %v71_v32  ;;  %v63_v35 = vmul.f32 %v88_v27, %v54_v33 }
 0x142   :  { %82 = vst.msk [vmem:[%s157_s4] sm:$0xf] %vm81_vm1, %v92_v34  ;;  %v72_v36 = vadd.f32 %v89_v29, %v63_v35 }
 0x144   :  { %v93_v37 = vpack.c.bf16 %v72_v36, %v72_v36 }
 0x146   :  { %83 = vst.msk [vmem:[%s157_s4 + $0x4] sm:$0xf] %vm81_vm1, %v93_v37 }

// kernel: _lambda_.44
= control target key start
LH: loop header
LB: loop body
LE: loop exit
PB: predicated region body
PF: predicated region fallthrough
CT: control target
= control target key end

     0   :  { %v136_v0 = vmov 0.0   ;;  %vm137_vm0 = vmmov 0   ;;  %vm45_vm1 = vcmask 261120   ;;  %s173_s1 = inlined_call_operand.vmem [shape: bf16[32,128], index: 1, kind: input, shape index: {}]   ;;  %s174_s0 = inlined_call_operand.vmem [shape: bf16[16,32], index: 0, kind: input, shape index: {}]   ;;  %s175_s2 = inlined_call_operand.vmem [shape: f32[1,128], index: 2, kind: input, shape index: {}]   ;;  %s176_s3 = inlined_call_operand.vmem [shape: bf16[16,128], index: 3, kind: output, shape index: {}]  }
   0x1   :  { %123 = vmatprep.subr.bf16.mxu0 %v136_v0  ;;  %v133_v1 = vld [vmem:[%s173_s1] sm:$0xff]   ;;  %127 = vmatprep.mubr.msk.bf16.mxu0 %vm137_vm0, %v136_v0  ;;  %v134_v2 = vld [vmem:[%s173_s1 + $0x8] sm:$0xff]  }
   0x2   :  { %124 = vmatpush3.bf16.msra.mxu0 %v133_v1  ;;  %v135_v3 = vld [vmem:[%s174_s0] sm:$0xff]  }
   0x3   :  { %125 = vmatprep.subr.bf16.mxu0 %v136_v0  ;;  %v106_v4 = vld [vmem:[%s175_s2] ss:$0 sm:$0xff] }
   0x6   :  { %126 = vmatpush3.bf16.msra.mxu0 %v134_v2 }
   0x9   :  { %128 = vmatmul.mubr.msk.bf16.vlgmr.msra.gmra.mrb[0].mxu0 %vm45_vm1, %v135_v3 }
  0xdc   :  { %v83_v5 = vpop.f32.mrb[0].mxu0 }
  0xdd   :  { %v84_v6 = vadd.f32 %v106_v4, %v83_v5  ;;  %v129_v7 = vpop.f32.mrb[1].mxu0 }
  0xde   :  { %v86_v8 = vpop.f32.mrb[2].mxu0 }
  0xdf   :  { %v87_v9 = vadd.f32 %v106_v4, %v86_v8  ;;  %v130_v10 = vpop.f32.mrb[3].mxu0  ;;  %v90_v11 = vmax.f32 %v84_v6, 0.0 }
  0xe1   :  { %v91_v12 = vmax.f32 %v87_v9, 0.0 }
  0xe3   :  { %v118_v13 = vpack.c.bf16 %v91_v12, %v90_v11 }
  0xe5   :  { %119 = vst [vmem:[%s176_s3] sm:$0xff] %v118_v13  }

// kernel: _lambda_.42
= control target key start
LH: loop header
LB: loop body
LE: loop exit
PB: predicated region body
PF: predicated region fallthrough
CT: control target
= control target key end

     0   :  { %s1590_s15 = smov 0   ;;  %s1782_s0 = inlined_call_operand.vmem [shape: bf16[2,8,96], index: 0, kind: input, shape index: {}]   ;;  %s1783_s1 = inlined_call_operand.vmem [shape: s32[2,1,8], index: 1, kind: input, shape index: {}]   ;;  %s1784_s2 = inlined_call_operand.vmem [shape: bf16[32,32], index: 2, kind: input, shape index: {}]   ;;  %s1785_s3 = inlined_call_operand.vmem [shape: f32[1,32], index: 3, kind: input, shape index: {}]   ;;  %s1786_s4 = inlined_call_operand.vmem [shape: bf16[2,8,32], index: 4, kind: output, shape index: {}]  }
   0x1 LB: > { %s1403_s16 = sadd.s32 4294967295, %s1550_s15   ;;  %p1407_p0 = scmp.ge.s32.totalorder %s1550_s15, 1  ;;  %s1550_s15 = sphi %s1590_s15, %s14_s15  }
   0x2   : > { %p169_p1 = scmp.lt.s32.totalorder %s1550_s15, 3 }
   0x4   : > { %p170_p2 = pnand %p1407_p0, %p169_p1 }
   0x5   : > { %p196_p3 = scmp.lt.s32.totalorder (!%p170_p2), %s1403_s16, 1  ;;  %s1552_s21 = smov (!%p170_p2), 120   ;;  %v1557_v7 = vmov (!%p170_p2), 0.0   ;;  %vm1558_vm0 = vmmov (!%p170_p2), 0   ;;  %v1559_v8 = vmov (!%p170_p2), 1983009808   ;;  %v222_v10 = vlaneseq (!%p170_p2) }
   0x6   : > { %173 = sbr.rel (%p170_p2) target bundleno = 1282 (0x502), region = 36  ;;  %s1553_s22 = smov (!%p170_p2), 104   ;;  %1449 = vmatprep.subr.bf16.mxu0 (!%p170_p2), %v1557_v7  ;;  %1455 = vmatprep.subr.bf16.mxu1 (!%p170_p2), %v1557_v7  ;;  %v220_v9 = vunpack.c.l.s4 (!%p170_p2), %v1559_v8  ;;  %v1560_v14 = vmov (!%p170_p2), 1934713408   ;;  %v1561_v59 = vmov (!%p170_p2), 0   ;;  %vm687_vm1 = vcmask (!%p170_p2), 64512  }
   0x7   : > { %s1554_s23 = smov (!%p170_p2), 112   ;;  %s1555_s24 = smov (!%p170_p2), 96   ;;  %1451 = vmatprep.mubr.msk.bf16.mxu0 (!%p170_p2), %vm1558_vm0, %v1557_v7  ;;  %1457 = vmatprep.mubr.msk.bf16.mxu1 (!%p170_p2), %vm1558_vm0, %v1557_v7  ;;  %v1620_v13 = vshrl.u32 (!%p170_p2), %v222_v10, 7  ;;  %v237_v15 = vunpack.c.l.s4 (!%p170_p2), %v1560_v14  ;;  %vm927_vm4 = vcmask (!%p170_p2), 1043456   ;;  %vm1266_vm5 = vcmask (!%p170_p2), 130048  }
   0x8   : > { %s1556_s25 = smov (!%p170_p2), 64   ;;  %v221_v12 = vunpack.c.0.s8 (!%p170_p2), %v220_v9  ;;  %s1562_s7 = smov (!%p170_p2), 16   ;;  %vm1268_vm6 = vcmask (!%p170_p2), 195584   ;;  %vm1294_vm7 = vcmask (!%p170_p2), 261120   ;;  %vm1339_vm8 = vcmask (!%p170_p2), 257024  }
   0x9   : > { %v238_v21 = vunpack.c.0.s8 (!%p170_p2), %v237_v15  ;;  %s1563_s8 = smov (!%p170_p2), 8   ;;  %s1564_s9 = smov (!%p170_p2), 24  }
   0xa   : > { %v1623_v19 = vsub.s32 (!%p170_p2), %v221_v12, %v1620_v13 }
   0xb   : > { %v1627_v29 = vsub.s32 (!%p170_p2), %v238_v21, %v1620_v13 }
   0xd   : > { %s1788_s16 = smov (!%p196_p3, %s1403_s16), 1 }
   0xe   : > { %s1408_s17 = sshll.u32 %s1788_s16, 2  ;;  %s202_s28 = scalar_lea.vmem %s1783_s1, %s1788_s16 }
   0xf   : > { %s199_s20 = scalar_lea.vmem %s1782_s0, %s1408_s17  ;;  %s206_s14 = scalar_lea.vmem %s1786_s4, %s1408_s17 }
  0x10   : > { %v208_v0 = vld [vmem:[%s199_s20] sm:$0xf] }
  0x11   : > { %381 = vrot.lane.b32.xlu0 %v208_v0, %s1552_s21  ;;  %385 = vrot.lane.b32.xlu1 %v208_v0, %s1553_s22  ;;  %v209_v1 = vunpack.c.l.bf16 %v208_v0 }
  0x13   : > { %v210_v3 = vmul.f32 0.35355338, %v209_v1 }
  0x15   : > { %383 = vrot.lane.b32.xlu0 %v208_v0, %s1554_s23  ;;  %387 = vrot.lane.b32.xlu1 %v208_v0, %s1555_s24  ;;  %v211_v6 = vpack.c.bf16 %v210_v3, %v210_v3 }
  0x17   : > { %v225_v34 = vrot.slane %v211_v6, %v1623_v19 }
  0x83   : > { %v382_v2 = vpop.permute.xlu0 %381  ;;  %v1606_v4 = vpop.permute.xlu1 %385 }
  0x84   : > { %389 = vrot.lane.b32.xlu0 %v382_v2, %s1555_s24 }
  0x87   : > { %v1608_v5 = vpop.permute.xlu0 %383  ;;  %v388_v11 = vpop.permute.xlu1 %387 }
  0x88   : > { %393 = vrot.lane.b32.xlu0 %v1606_v4, %s1555_s24  ;;  %391 = vrot.lane.b32.xlu1 %v1608_v5, %s1555_s24  ;;  %v398_v17 = vshrl.u32 %v388_v11, 16 }
  0x8c   : > { %213 = vrot.lane.b32.xlu1 %v211_v6, %s1552_s21  ;;  %215 = vrot.lane.b32.xlu0 %v211_v6, %s1554_s23 }
  0x90   : > { %217 = vrot.lane.b32.xlu1 %v211_v6, %s1553_s22  ;;  %537 = vrot.lane.b32.xlu0 %v208_v0, %s1556_s25 }
  0x94   : > { %539 = vrot.lane.b32.xlu1 %v382_v2, %s1556_s25 }
  0xf6   : > { %v390_v16 = vpop.permute.xlu0 %389 }
  0xf7   : > { %v399_v18 = vshrl.u32 %v390_v16, 16  ;;  %v397_v20 = vpack.i.b16 %v390_v16, %v388_v11 }
  0xf9   : > { %v400_v24 = vpack.i.b16 %v399_v18, %v398_v17  ;;  %v414_v28 = vrot.slane %v397_v20, %v1623_v19 }
  0xfa   : > { %v392_v22 = vpop.permute.xlu1 %391  ;;  %v394_v23 = vpop.permute.xlu0 %393 }
  0xfb   : > { %v404_v25 = vshrl.u32 %v392_v22, 16  ;;  %v403_v26 = vpack.i.b16 %v394_v23, %v392_v22  ;;  %v405_v27 = vshrl.u32 %v394_v23, 16  ;;  %v448_v35 = vrot.slane %v400_v24, %v1623_v19 }
  0xfd   : > { %v406_v30 = vpack.i.b16 %v405_v27, %v404_v25  ;;  %v422_v31 = vrot.slane %v403_v26, %v1623_v19 }
  0xfe   : > { %v214_v32 = vpop.permute.xlu1 %213  ;;  %v216_v33 = vpop.permute.xlu0 %215 }
  0xff   : > { %v423_v36 = vcombine.low %v414_v28, %v422_v31  ;;  %v424_v37 = vcombine.high %v414_v28, %v422_v31  ;;  %v456_v38 = vrot.slane %v406_v30, %v1623_v19  ;;  %v233_v39 = vrot.slane %v216_v33, %v1623_v19 }
 0x100   : > { %v259_v55 = vrot.slane %v214_v32, %v1623_v19 }
 0x101   : > { %v431_v40 = vrot.slane %v423_v36, %v1627_v29  ;;  %v438_v41 = vrot.slane %v424_v37, %v1627_v29  ;;  %v457_v42 = vcombine.low %v448_v35, %v456_v38  ;;  %v458_v43 = vcombine.high %v448_v35, %v456_v38 }
 0x102   : > { %v234_v44 = vcombine.low %v225_v34, %v233_v39  ;;  %v235_v45 = vcombine.high %v225_v34, %v233_v39  ;;  %v218_v46 = vpop.permute.xlu1 %217 }
 0x103   : > { %v465_v47 = vrot.slane %v457_v42, %v1627_v29  ;;  %v472_v48 = vrot.slane %v458_v43, %v1627_v29  ;;  %v475_v49 = vcombine.low %v431_v40, %v438_v41  ;;  %v1410_v50 = vcombine.high %v431_v40, %v438_v41 }
 0x104   : > { %v242_v51 = vrot.slane %v234_v44, %v1627_v29  ;;  %v249_v52 = vrot.slane %v235_v45, %v1627_v29  ;;  %v267_v53 = vrot.slane %v218_v46, %v1623_v19 }
 0x105   : > { %v500_v54 = vcombine.low %v465_v47, %v472_v48  ;;  %v482_v56 = vrot.slane %v475_v49, %v1623_v19  ;;  %v490_v57 = vrot.slane %v1410_v50, %v1623_v19  ;;  %v1411_v58 = vcombine.high %v465_v47, %v472_v48 }
 0x106   : > { %v250_v60 = vcombine.high %v242_v51, %v1561_v59  ;;  %v251_v61 = vcombine.high %v249_v52, %v1561_v59  ;;  %v268_v62 = vcombine.low %v259_v55, %v267_v53  ;;  %v269_v63 = vcombine.high %v259_v55, %v267_v53 }
 0x107   : > { %v491_v0 = vcombine.low %v482_v56, %v490_v57  ;;  %v507_v1 = vrot.slane %v500_v54, %v1623_v19  ;;  %v290_v2 = vshrl.u32 %v242_v51, 16  ;;  %v306_v9 = vshrl.u32 %v249_v52, 16 }
 0x108   : > { %v276_v3 = vrot.slane %v268_v62, %v1627_v29  ;;  %v283_v6 = vrot.slane %v269_v63, %v1627_v29  ;;  %v298_v8 = vshrl.u32 %v250_v60, 16  ;;  %v314_v10 = vshrl.u32 %v251_v61, 16 }
 0x109   : > { %v515_v11 = vrot.slane %v1411_v58, %v1623_v19  ;;  %v498_v20 = vrot.slane %v491_v0, %v1627_v29 }
 0x10a   : > { %v284_v12 = vcombine.high %v276_v3, %v1561_v59  ;;  %v285_v14 = vcombine.high %v283_v6, %v1561_v59  ;;  %v288_v15 = vpack.i.b16 %v276_v3, %v242_v51  ;;  %v291_v16 = vshrl.u32 %v276_v3, 16 }
 0x10b   : > { %v304_v17 = vpack.i.b16 %v283_v6, %v249_v52  ;;  %v307_v18 = vshrl.u32 %v283_v6, 16  ;;  %v516_v21 = vcombine.low %v507_v1, %v515_v11  ;;  %v528_v38 = vshrl.u32 %v498_v20, 16 }
 0x10c   : > { %v292_v22 = vpack.i.b16 %v291_v16, %v290_v2  ;;  %v296_v23 = vpack.i.b16 %v284_v12, %v250_v60  ;;  %v299_v24 = vshrl.u32 %v284_v12, 16  ;;  %v312_v25 = vpack.i.b16 %v285_v14, %v251_v61 }
 0x10d   : > { %v308_v26 = vpack.i.b16 %v307_v18, %v306_v9  ;;  %v315_v27 = vshrl.u32 %v285_v14, 16  ;;  %v318_v28 = vcombine.low %v288_v15, %v304_v17  ;;  %v523_v30 = vrot.slane %v516_v21, %v1627_v29 }
 0x10e   : > { %v300_v31 = vpack.i.b16 %v299_v24, %v298_v8  ;;  %v326_v32 = vcombine.low %v296_v23, %v312_v25  ;;  %v499_v47 = vcombine.high %v498_v20, %v1561_v59  ;;  %v872_v8 = vld [vmem:[%s202_s28] sm:$0x1]  ;;  %v877_v9 = vsub.s32 0, %v1620_v13 }
 0x10f   : > { %v316_v33 = vpack.i.b16 %v315_v27, %v314_v10  ;;  %v343_v34 = vcombine.low %v292_v22, %v308_v26  ;;  %v527_v35 = vpack.i.b16 %v523_v30, %v498_v20  ;;  %v325_v36 = vrot.slane %v318_v28, %v1623_v19 }
 0x110   : > { %v333_v37 = vrot.slane %v326_v32, %v1623_v19  ;;  %v529_v39 = vshrl.u32 %v523_v30, 16  ;;  %v524_v42 = vcombine.high %v523_v30, %v1561_v59  ;;  %v534_v54 = vshrl.u32 %v499_v47, 16 }
 0x111   : > { %v351_v40 = vcombine.low %v300_v31, %v316_v33  ;;  %v692_v41 = vsel %vm687_vm1, %v527_v35, 0  ;;  %v350_v45 = vrot.slane %v343_v34, %v1623_v19  ;;  %vm873_vm2 = vcmp.ne.s32.totalorder %v872_v8, 0 }
 0x112   : > { %1450 = vmatpush3.bf16.xpose.msra.mxu0 %v692_v41  ;;  %v530_v43 = vpack.i.b16 %v529_v39, %v528_v38  ;;  %v334_v44 = vcombine.low %v325_v36, %v333_v37  ;;  %v535_v51 = vshrl.u32 %v524_v42, 16  ;;  %v533_v53 = vpack.i.b16 %v524_v42, %v499_v47  ;;  %v538_v38 = vpop.permute.xlu0 %537  ;;  %v540_v39 = vpop.permute.xlu1 %539 }
 0x113   : > { %1461 = vmatprep.subr.bf16.mxu0 %v1557_v7  ;;  %v358_v46 = vrot.slane %v351_v40, %v1623_v19  ;;  %v874_v10 = vsel %vm873_vm2, 1, %v1561_v59  ;;  %v548_v41 = vshrl.u32 %v538_v38, 16 }
 0x114   : > { %v738_v48 = vsel %vm687_vm1, %v530_v43, 0  ;;  %v341_v49 = vrot.slane %v334_v44, %v1627_v29  ;;  %v536_v58 = vpack.i.b16 %v535_v51, %v534_v54  ;;  %v784_v60 = vsel %vm687_vm1, %v533_v53, 0 }
 0x115   : > { %1456 = vmatpush3.bf16.xpose.msra.mxu1 %v738_v48  ;;  %v359_v50 = vcombine.low %v350_v45, %v358_v46  ;;  %v878_v11 = vrot.slane %v874_v10, %v877_v9  ;;  %v547_v46 = vpack.i.b16 %v540_v39, %v538_v38 }
 0x116   : > { %1467 = vmatprep.subr.bf16.mxu1 %v1557_v7  ;;  %v371_v56 = vshrl.u32 %v341_v49, 16  ;;  %v830_v63 = vsel %vm687_vm1, %v536_v58, 0  ;;  %v342_v0 = vcombine.high %v341_v49, %v1561_v59 }
 0x117   : > { %v366_v52 = vrot.slane %v359_v50, %v1627_v29  ;;  %vm879_vm3 = vcmp.eq.s32.totalorder %v878_v11, 1  ;;  %v564_v53 = vrot.slane %v547_v46, %v1623_v19 }
 0x118   : > { %v377_v3 = vshrl.u32 %v342_v0, 16 }
 0x119   : > { %v370_v55 = vpack.i.b16 %v366_v52, %v341_v49  ;;  %v372_v57 = vshrl.u32 %v366_v52, 16  ;;  %v367_v62 = vcombine.high %v366_v52, %v1561_v59 }
 0x11b   : > { %1452 = vmatmul.mubr.msk.bf16.vlgmr.msra.gmra.mrb[0].mxu0 %vm687_vm1, %v370_v55  ;;  %v373_v61 = vpack.i.b16 %v372_v57, %v371_v56  ;;  %v378_v1 = vshrl.u32 %v367_v62, 16  ;;  %v376_v2 = vpack.i.b16 %v367_v62, %v342_v0 }
 0x11c   : > { %1462 = vmatpush3.bf16.xpose.msra.mxu0 %v784_v60  ;;  %1463 = vmatprep.mubr.msk.bf16.mxu0 %vm1558_vm0, %v1557_v7 }
 0x11d   : > { %1458 = vmatmul.mubr.msk.bf16.vlgmr.msra.gmra.mrb[0].mxu1 %vm687_vm1, %v373_v61  ;;  %1473 = vmatprep.subr.bf16.mxu0 %v1557_v7  ;;  %v379_v6 = vpack.i.b16 %v378_v1, %v377_v3 }
 0x11e   : > { %1468 = vmatpush3.bf16.xpose.msra.mxu1 %v830_v63  ;;  %1469 = vmatprep.mubr.msk.bf16.mxu1 %vm1558_vm0, %v1557_v7 }
 0x11f   : > { %1479 = vmatprep.subr.bf16.mxu1 %v1557_v7 }
 0x123   : > { %1464 = vmatmul.mubr.msk.bf16.vlgmr.msra.gmra.mrb[4].mxu0 %vm687_vm1, %v376_v2 }
 0x124   : > { %1475 = vmatprep.mubr.msk.bf16.mxu0 %vm1558_vm0, %v1557_v7 }
 0x125   : > { %1470 = vmatmul.mubr.msk.bf16.vlgmr.msra.gmra.mrb[4].mxu1 %vm687_vm1, %v379_v6 }
 0x126   : > { %1481 = vmatprep.mubr.msk.bf16.mxu1 %vm1558_vm0, %v1557_v7 }
 0x1ee   : > { %v728_v12 = vpop.f32.mrb[0].mxu0 }
 0x1ef   : > { %v880_v14 = vsel %vm879_vm3, -1e+09, %v728_v12  ;;  %v1453_v15 = vpop.f32.mrb[1].mxu0 }
 0x1f0   : > { %v731_v16 = vpop.f32.mrb[2].mxu0  ;;  %v774_v17 = vpop.f32.mrb[0].mxu1  ;;  %v884_v18 = vsel %vm687_vm1, %v880_v14, -inf }
 0x1f1   : > { %v881_v20 = vsel %vm879_vm3, -1e+09, %v774_v17  ;;  %v1459_v21 = vpop.f32.mrb[1].mxu1  ;;  %885 = vmax.xlane.f32.xlu0 %v884_v18  ;;  %v1454_v22 = vpop.f32.mrb[3].mxu0 }
 0x1f2   : > { %v777_v23 = vpop.f32.mrb[2].mxu1  ;;  %v887_v13 = vsel %vm687_vm1, %v881_v20, -inf }
 0x1f3   : > { %888 = vmax.xlane.f32.xlu1 %v887_v13  ;;  %v1460_v24 = vpop.f32.mrb[3].mxu1 }
 0x1f6   : > { %v820_v25 = vpop.f32.mrb[4].mxu0 }
 0x1f7   : > { %v1465_v26 = vpop.f32.mrb[5].mxu0  ;;  %v1699_v34 = vsel %vm879_vm3, -1e+09, %v820_v25 }
 0x1f8   : > { %v823_v27 = vpop.f32.mrb[6].mxu0  ;;  %v866_v28 = vpop.f32.mrb[4].mxu1  ;;  %v890_v36 = vsel %vm687_vm1, %v1699_v34, -inf }
 0x1f9   : > { %v1466_v30 = vpop.f32.mrb[7].mxu0  ;;  %v1471_v31 = vpop.f32.mrb[5].mxu1  ;;  %v1702_v35 = vsel %vm879_vm3, -1e+09, %v866_v28 }
 0x1fa   : > { %v869_v32 = vpop.f32.mrb[6].mxu1  ;;  %v893_v37 = vsel %vm687_vm1, %v1702_v35, -inf }
 0x1fb   : > { %v1472_v33 = vpop.f32.mrb[7].mxu1 }
 0x204   : > { %543 = vrot.lane.b32.xlu1 %v1606_v4, %s1556_s25 }
 0x207   : > { %541 = vrot.lane.b32.xlu0 %v1608_v5, %s1556_s25  ;;  %v549_v5 = vshrl.u32 %v540_v39, 16 }
 0x209   : > { %v550_v48 = vpack.i.b16 %v549_v5, %v548_v41 }
 0x20b   : > { %v598_v56 = vrot.slane %v550_v48, %v1623_v19 }
 0x226   : > { %891 = vmax.xlane.f32.xlu0 %v890_v36 }
 0x228   : > { %894 = vmax.xlane.f32.xlu1 %v893_v37 }
 0x27e   : > { %v886_v4 = vpop.xlane.xlu0 %885 }
 0x27f   : > { %v896_v40 = vsub.f32 %v880_v14, %v886_v4 }
 0x280   : > { %v889_v42 = vpop.xlane.xlu1 %888 }
 0x281   : > { %v900_v43 = vmul.f32 1.442695, %v896_v40  ;;  %v897_v44 = vsub.f32 %v881_v20, %v889_v42 }
 0x282   : > { %v542_v45 = vpop.permute.xlu0 %541 }
 0x283   : > { %1528 = vpow2.f32 %v900_v43  ;;  %v902_v47 = vmul.f32 1.442695, %v897_v44  ;;  %v554_v50 = vshrl.u32 %v542_v45, 16 }
 0x284   : > { %v544_v49 = vpop.permute.xlu1 %543 }
 0x285   : > { %1530 = vpow2.f32 %v902_v47  ;;  %v553_v51 = vpack.i.b16 %v544_v49, %v542_v45  ;;  %v555_v52 = vshrl.u32 %v544_v49, 16 }
 0x287   : > { %v556_v54 = vpack.i.b16 %v555_v52, %v554_v50  ;;  %v572_v55 = vrot.slane %v553_v51, %v1623_v19 }
 0x289   : > { %v573_v57 = vcombine.low %v564_v53, %v572_v55  ;;  %v574_v58 = vcombine.high %v564_v53, %v572_v55  ;;  %v606_v60 = vrot.slane %v556_v54, %v1623_v19 }
 0x28b   : > { %v581_v61 = vrot.slane %v573_v57, %v1627_v29  ;;  %v588_v62 = vrot.slane %v574_v58, %v1627_v29  ;;  %v607_v63 = vcombine.low %v598_v56, %v606_v60  ;;  %v608_v0 = vcombine.high %v598_v56, %v606_v60 }
 0x28d   : > { %v1529_v1 = vpop.eup %1528  ;;  %v615_v2 = vrot.slane %v607_v63, %v1627_v29  ;;  %v622_v3 = vrot.slane %v608_v0, %v1627_v29  ;;  %v625_v6 = vcombine.low %v581_v61, %v588_v62  ;;  %v1412_v8 = vcombine.high %v581_v61, %v588_v62 }
 0x28e   : > { %v908_v9 = vsel %vm687_vm1, %v1529_v1, 0.0  ;;  %v920_v37 = vpack.c.bf16 %v1529_v1, %v1529_v1 }
 0x28f   : > { %v1531_v10 = vpop.eup %1530  ;;  %v632_v11 = vrot.slane %v625_v6, %v1623_v19  ;;  %v640_v12 = vrot.slane %v1412_v8, %v1623_v19  ;;  %v650_v14 = vcombine.low %v615_v2, %v622_v3  ;;  %v1413_v15 = vcombine.high %v615_v2, %v622_v3  ;;  %909 = vadd.xlane.f32.xlu0 %v908_v9 }
 0x290   : > { %v911_v20 = vsel %vm687_vm1, %v1531_v10, 0.0  ;;  %v921_v4 = vpack.c.bf16 %v1531_v10, %v1531_v10 }
 0x291   : > { %v657_v16 = vrot.slane %v650_v14, %v1623_v19  ;;  %v665_v17 = vrot.slane %v1413_v15, %v1623_v19  ;;  %v641_v18 = vcombine.low %v632_v11, %v640_v12 }
 0x293   : > { %912 = vadd.xlane.f32.xlu0 %v911_v20  ;;  %v648_v21 = vrot.slane %v641_v18, %v1627_v29  ;;  %v666_v22 = vcombine.low %v657_v16, %v665_v17 }
 0x295   : > { %v673_v23 = vrot.slane %v666_v22, %v1627_v29  ;;  %v649_v13 = vcombine.high %v648_v21, %v1561_v59  ;;  %v678_v25 = vshrl.u32 %v648_v21, 16 }
 0x297   : > { %v677_v24 = vpack.i.b16 %v673_v23, %v648_v21  ;;  %v679_v26 = vshrl.u32 %v673_v23, 16  ;;  %v674_v27 = vcombine.high %v673_v23, %v1561_v59  ;;  %v684_v28 = vshrl.u32 %v649_v13, 16 }
 0x299   : > { %v929_v30 = vsel %vm927_vm4, %v677_v24, 0  ;;  %v680_v31 = vpack.i.b16 %v679_v26, %v678_v25  ;;  %v683_v32 = vpack.i.b16 %v674_v27, %v649_v13  ;;  %v685_v33 = vshrl.u32 %v674_v27, 16 }
 0x29a   : > { %1474 = vmatpush3.bf16.msra.mxu0 %v929_v30 }
 0x29b   : > { %v975_v36 = vsel %vm927_vm4, %v680_v31, 0  ;;  %1485 = vmatprep.subr.bf16.mxu0 %v1557_v7  ;;  %v686_v38 = vpack.i.b16 %v685_v33, %v684_v28  ;;  %v1021_v39 = vsel %vm927_vm4, %v683_v32, 0  ;;  %v1527_v31 = vld [vmem:[%s1784_s2 + $0x8] sm:$0xff]  }
 0x29c   : > { %1480 = vmatpush3.bf16.msra.mxu1 %v975_v36 }
 0x29d   : > { %1476 = vmatmul.mubr.msk.bf16.vlgmr.msra.gmra.mrb[8].mxu0 %vm687_vm1, %v920_v37  ;;  %1491 = vmatprep.subr.bf16.mxu1 %v1557_v7  ;;  %v1067_v59 = vsel %vm927_vm4, %v686_v38, 0 }
 0x29e   : > { %1486 = vmatpush3.bf16.msra.mxu0 %v1021_v39  ;;  %1487 = vmatprep.mubr.msk.bf16.mxu0 %vm1558_vm0, %v1557_v7 }
 0x29f   : > { %1482 = vmatmul.mubr.msk.bf16.vlgmr.msra.gmra.mrb[8].mxu1 %vm687_vm1, %v921_v4  ;;  %1497 = vmatprep.subr.bf16.mxu0 %v1557_v7 }
 0x2a0   : > { %1492 = vmatpush3.bf16.msra.mxu1 %v1067_v59  ;;  %1493 = vmatprep.mubr.msk.bf16.mxu1 %vm1558_vm0, %v1557_v7 }
 0x2b3   : > { %v892_v40 = vpop.xlane.xlu0 %891 }
 0x2b4   : > { %v898_v41 = vsub.f32 %v1699_v34, %v892_v40  ;;  %v1526_v34 = vld [vmem:[%s1784_s2] sm:$0xff]  }
 0x2b5   : > { %v895_v5 = vpop.xlane.xlu1 %894 }
 0x2b6   : > { %v904_v42 = vmul.f32 1.442695, %v898_v41  ;;  %v899_v43 = vsub.f32 %v1702_v35, %v895_v5 }
 0x2b8   : > { %1532 = vpow2.f32 %v904_v42  ;;  %v906_v44 = vmul.f32 1.442695, %v899_v43 }
 0x2ba   : > { %1534 = vpow2.f32 %v906_v44 }
 0x2c2   : > { %v1533_v45 = vpop.eup %1532 }
 0x2c3   : > { %v914_v46 = vsel %vm687_vm1, %v1533_v45, 0.0  ;;  %v922_v47 = vpack.c.bf16 %v1533_v45, %v1533_v45 }
 0x2c4   : > { %v1535_v48 = vpop.eup %1534  ;;  %915 = vadd.xlane.f32.xlu1 %v914_v46 }
 0x2c5   : > { %1488 = vmatmul.mubr.msk.bf16.vlgmr.msra.gmra.mrb[12].mxu0 %vm687_vm1, %v922_v47  ;;  %v917_v49 = vsel %vm687_vm1, %v1535_v48, 0.0  ;;  %v923_v50 = vpack.c.bf16 %v1535_v48, %v1535_v48 }
 0x2c6   : > { %918 = vadd.xlane.f32.xlu0 %v917_v49  ;;  %1501 = vmatprep.mubr.msk.bf16.mxu0 %vm1558_vm0, %v1557_v7 }
 0x2c7   : > { %1494 = vmatmul.mubr.msk.bf16.vlgmr.msra.gmra.mrb[12].mxu1 %vm687_vm1, %v923_v50  ;;  %1498 = vmatpush3.bf16.msra.mxu0 %v1526_v34 }
 0x2c8   : > { %1499 = vmatprep.subr.bf16.mxu0 %v1557_v7 }
 0x2cb   : > { %1500 = vmatpush3.bf16.msra.mxu0 %v1527_v31 }
 0x31c   : > { %v910_v58 = vpop.xlane.xlu0 %909 }
 0x31d   : > { %1536 = vrcp.f32 %v910_v58  ;;  %v1424_v58 = vld [vmem:[%s1785_s3] ss:$0 sm:$0xff] }
 0x320   : > { %v913_v60 = vpop.xlane.xlu0 %912 }
 0x327   : > { %v1537_v63 = vpop.eup %1536 }
 0x351   : > { %v916_v61 = vpop.xlane.xlu1 %915 }
 0x352   : > { %1538 = vrcp.f32 %v916_v61 }
 0x353   : > { %v919_v62 = vpop.xlane.xlu0 %918  ;;  %1540 = vrcp.f32 %v913_v60 }
 0x354   : > { %1542 = vrcp.f32 %v919_v62 }
 0x35c   : > { %v1539_v0 = vpop.eup %1538 }
 0x35d   : > { %v1541_v7 = vpop.eup %1540 }
 0x35e   : > { %v1543_v8 = vpop.eup %1542 }
 0x370   : > { %v965_v35 = vpop.f32.mrb[8].mxu0 }
 0x371   : > { %v1477_v51 = vpop.f32.mrb[9].mxu0  ;;  %v1113_v2 = vmul.f32 %v1537_v63, %v965_v35 }
 0x372   : > { %v968_v52 = vpop.f32.mrb[10].mxu0  ;;  %v1011_v53 = vpop.f32.mrb[8].mxu1 }
 0x373   : > { %v1478_v54 = vpop.f32.mrb[11].mxu0  ;;  %v1483_v55 = vpop.f32.mrb[9].mxu1  ;;  %v1114_v11 = vmul.f32 %v1541_v7, %v1011_v53 }
 0x374   : > { %v1014_v56 = vpop.f32.mrb[10].mxu1 }
 0x375   : > { %v1484_v57 = vpop.f32.mrb[11].mxu1 }
 0x398   : > { %v1057_v1 = vpop.f32.mrb[12].mxu0 }
 0x399   : > { %v1115_v3 = vmul.f32 %v1539_v0, %v1057_v1  ;;  %v1489_v6 = vpop.f32.mrb[13].mxu0 }
 0x39a   : > { %v1060_v9 = vpop.f32.mrb[14].mxu0  ;;  %v1103_v10 = vpop.f32.mrb[12].mxu1 }
 0x39b   : > { %v1117_v12 = vcombine.low %v1113_v2, %v1115_v3  ;;  %v1118_v14 = vcombine.high %v1113_v2, %v1115_v3  ;;  %v1116_v15 = vmul.f32 %v1543_v8, %v1103_v10  ;;  %v1490_v16 = vpop.f32.mrb[15].mxu0  ;;  %v1495_v17 = vpop.f32.mrb[13].mxu1 }
 0x39c   : > { %v1106_v18 = vpop.f32.mrb[14].mxu1 }
 0x39d   : > { %v1133_v20 = vcombine.low %v1114_v11, %v1116_v15  ;;  %v1134_v21 = vcombine.high %v1114_v11, %v1116_v15  ;;  %v1496_v22 = vpop.f32.mrb[15].mxu1  ;;  %v1125_v23 = vrot.slane %v1117_v12, %v1623_v19  ;;  %v1132_v13 = vrot.slane %v1118_v14, %v1623_v19 }
 0x39f   : > { %v1141_v24 = vrot.slane %v1133_v20, %v1623_v19  ;;  %v1148_v25 = vrot.slane %v1134_v21, %v1623_v19 }
 0x3a1   : > { %v1149_v26 = vcombine.low %v1125_v23, %v1141_v24  ;;  %v1150_v27 = vcombine.high %v1125_v23, %v1141_v24  ;;  %v1165_v28 = vcombine.low %v1132_v13, %v1148_v25  ;;  %v1166_v30 = vcombine.high %v1132_v13, %v1148_v25 }
 0x3a3   : > { %v1157_v32 = vrot.slane %v1149_v26, %v1627_v29  ;;  %v1164_v33 = vrot.slane %v1150_v27, %v1627_v29  ;;  %v1173_v36 = vrot.slane %v1165_v28, %v1627_v29  ;;  %v1180_v37 = vrot.slane %v1166_v30, %v1627_v29 }
 0x3a5   : > { %v1185_v38 = vcombine.low %v1157_v32, %v1164_v33  ;;  %v1422_v39 = vcombine.high %v1157_v32, %v1164_v33  ;;  %v1201_v4 = vcombine.low %v1173_v36, %v1180_v37  ;;  %v1423_v59 = vcombine.high %v1173_v36, %v1180_v37 }
 0x3a7   : > { %v1192_v40 = vrot.slane %v1185_v38, %v1623_v19  ;;  %v1200_v41 = vrot.slane %v1422_v39, %v1623_v19  ;;  %v1208_v5 = vrot.slane %v1201_v4, %v1623_v19  ;;  %v1216_v42 = vrot.slane %v1423_v59, %v1623_v19 }
 0x3a9   : > { %v1218_v43 = vcombine.high %v1192_v40, %v1200_v41  ;;  %v1234_v44 = vcombine.high %v1208_v5, %v1216_v42  ;;  %v1217_v45 = vcombine.low %v1192_v40, %v1200_v41  ;;  %v1233_v46 = vcombine.low %v1208_v5, %v1216_v42 }
 0x3ab   : > { %v1232_v47 = vrot.slane %v1218_v43, %v1627_v29  ;;  %v1248_v48 = vrot.slane %v1234_v44, %v1627_v29  ;;  %v1225_v49 = vrot.slane %v1217_v45, %v1627_v29  ;;  %v1241_v50 = vrot.slane %v1233_v46, %v1627_v29 }
 0x3ad   : > { %v1251_v34 = vcombine.low %v1232_v47, %v1248_v48  ;;  %v1250_v35 = vcombine.high %v1225_v49, %v1241_v50  ;;  %v1252_v51 = vcombine.high %v1232_v47, %v1248_v48  ;;  %v1249_v52 = vcombine.low %v1225_v49, %v1241_v50 }
 0x3af   : > { %1258 = vrot.lane.b32.xlu0 %v1251_v34, %s1562_s7  ;;  %1254 = vrot.lane.b32.xlu1 %v1250_v35, %s1563_s8 }
 0x3b3   : > { %1262 = vrot.lane.b32.xlu1 %v1252_v51, %s1564_s9 }
 0x421   : > { %v1255_v19 = vpop.permute.xlu1 %1254  ;;  %v1259_v53 = vpop.permute.xlu0 %1258 }
 0x422   : > { %v1265_v54 = vsel %vm687_vm1, %v1249_v52, %v1255_v19 }
 0x423   : > { %v1267_v56 = vsel %vm1266_vm5, %v1265_v54, %v1259_v53 }
 0x425   : > { %v1263_v55 = vpop.permute.xlu1 %1262 }
 0x426   : > { %v1269_v29 = vsel %vm1268_vm6, %v1267_v56, %v1263_v55 }
 0x427   : > { %v1270_v57 = vpack.c.bf16 %v1269_v29, %v1269_v29 }
 0x429   : > { %1502 = vmatmul.mubr.msk.bf16.vlgmr.msra.gmra.mrb[16].mxu0 %vm1294_vm7, %v1270_v57 }
 0x4fc   : > { %v1332_v60 = vpop.f32.mrb[16].mxu0 }
 0x4fd   : > { %v1333_v61 = vadd.f32 %v1424_v58, %v1332_v60  ;;  %v1503_v62 = vpop.f32.mrb[17].mxu0 }
 0x4fe   : > { %v1335_v63 = vpop.f32.mrb[18].mxu0 }
 0x4ff   : > { %v1338_v0 = vpack.c.bf16 %v1333_v61, %v1333_v61  ;;  %v1504_v1 = vpop.f32.mrb[19].mxu0 }
 0x501   : > { %1340 = vst.msk [vmem:[%s206_s14] sm:$0xf] %vm1339_vm8, %v1338_v0 }
 0x502 PF: > { %s14_s15 = sadd.s32 1, %s1550_s15  }
 0x503   : > { %p11_p4 = scmp.ge.s32.totalorder %s14_s15, 4  }
 0x505   :  { %13 = sbr.rel (!%p11_p4) target bundleno = 1 (0x1), region = 69 }

// kernel: _lambda_.57
= control target key start
LH: loop header
LB: loop body
LE: loop exit
PB: predicated region body
PF: predicated region fallthrough
CT: control target
= control target key end

     0   :  { %v130_v0 = vmov 0.0   ;;  %vm131_vm0 = vmmov 0   ;;  %vm45_vm1 = vcmask 261120   ;;  %vm98_vm2 = vcmask 519168   ;;  %s170_s1 = inlined_call_operand.vmem [shape: bf16[32,64], index: 1, kind: input, shape index: {}]   ;;  %s171_s0 = inlined_call_operand.vmem [shape: bf16[16,32], index: 0, kind: input, shape index: {}]   ;;  %s172_s2 = inlined_call_operand.vmem [shape: f32[1,64], index: 2, kind: input, shape index: {}]   ;;  %s173_s3 = inlined_call_operand.vmem [shape: bf16[16,64], index: 3, kind: output, shape index: {}]  }
   0x1   :  { %117 = vmatprep.subr.bf16.mxu0 %v130_v0  ;;  %v127_v1 = vld [vmem:[%s170_s1] sm:$0xff]   ;;  %121 = vmatprep.mubr.msk.bf16.mxu0 %vm131_vm0, %v130_v0  ;;  %v128_v2 = vld [vmem:[%s170_s1 + $0x8] sm:$0xff]  }
   0x2   :  { %118 = vmatpush3.bf16.msra.mxu0 %v127_v1  ;;  %v129_v3 = vld [vmem:[%s171_s0] sm:$0xff]  }
   0x3   :  { %119 = vmatprep.subr.bf16.mxu0 %v130_v0  ;;  %v105_v4 = vld [vmem:[%s172_s2] ss:$0 sm:$0xff] }
   0x6   :  { %120 = vmatpush3.bf16.msra.mxu0 %v128_v2 }
   0x9   :  { %122 = vmatmul.mubr.msk.bf16.vlgmr.msra.gmra.mrb[0].mxu0 %vm45_vm1, %v129_v3 }
  0xdc   :  { %v83_v5 = vpop.f32.mrb[0].mxu0 }
  0xdd   :  { %v84_v6 = vadd.f32 %v105_v4, %v83_v5  ;;  %v123_v7 = vpop.f32.mrb[1].mxu0 }
  0xde   :  { %v86_v8 = vpop.f32.mrb[2].mxu0 }
  0xdf   :  { %v112_v9 = vpack.c.bf16 %v84_v6, %v84_v6  ;;  %v87_v10 = vadd.f32 %v105_v4, %v86_v8  ;;  %v124_v11 = vpop.f32.mrb[3].mxu0 }
  0xe1   :  { %99 = vst.msk [vmem:[%s173_s3] sm:$0xf] %vm98_vm2, %v112_v9  ;;  %v113_v12 = vpack.c.bf16 %v87_v10, %v87_v10 }
  0xe3   :  { %100 = vst.msk [vmem:[%s173_s3 + $0x4] sm:$0xf] %vm98_vm2, %v113_v12 }

// kernel: _lambda_.53
= control target key start
LH: loop header
LB: loop body
LE: loop exit
PB: predicated region body
PF: predicated region fallthrough
CT: control target
= control target key end

     0   :  { %v124_v0 = vmov 0.0   ;;  %vm125_vm0 = vmmov 0   ;;  %vm41_vm1 = vcmask 261120   ;;  %vm94_vm2 = vcmask 781312   ;;  %s167_s1 = inlined_call_operand.vmem [shape: bf16[32,96], index: 1, kind: input, shape index: {}]   ;;  %s168_s0 = inlined_call_operand.vmem [shape: f32[16,32], index: 0, kind: input, shape index: {}]   ;;  %s169_s2 = inlined_call_operand.vmem [shape: f32[1,96], index: 2, kind: input, shape index: {}]   ;;  %s170_s3 = inlined_call_operand.vmem [shape: bf16[16,96], index: 3, kind: output, shape index: {}]  }
   0x1   :  { %112 = vmatprep.subr.bf16.mxu0 %v124_v0  ;;  %v122_v1 = vld [vmem:[%s167_s1] sm:$0xff]   ;;  %116 = vmatprep.mubr.msk.bf16.mxu0 %vm125_vm0, %v124_v0  ;;  %v123_v2 = vld [vmem:[%s167_s1 + $0x8] sm:$0xff]  }
   0x2   :  { %113 = vmatpush3.bf16.msra.mxu0 %v122_v1  ;;  %v15_v3 = vld [vmem:[%s168_s0] sm:$0xff]  ;;  %v16_v4 = vld [vmem:[%s168_s0 + $0x8] sm:$0xff] }
   0x3   :  { %114 = vmatprep.subr.bf16.mxu0 %v124_v0  ;;  %v17_v5 = vpack.c.bf16 %v16_v4, %v15_v3  ;;  %v101_v6 = vld [vmem:[%s169_s2] ss:$0 sm:$0xff] }
   0x6   :  { %115 = vmatpush3.bf16.msra.mxu0 %v123_v2 }
   0x9   :  { %117 = vmatmul.mubr.msk.bf16.vlgmr.msra.gmra.mrb[0].mxu0 %vm41_vm1, %v17_v5 }
  0xdc   :  { %v79_v7 = vpop.f32.mrb[0].mxu0 }
  0xdd   :  { %v80_v8 = vadd.f32 %v101_v6, %v79_v7  ;;  %v118_v9 = vpop.f32.mrb[1].mxu0 }
  0xde   :  { %v82_v10 = vpop.f32.mrb[2].mxu0 }
  0xdf   :  { %v107_v11 = vpack.c.bf16 %v80_v8, %v80_v8  ;;  %v83_v12 = vadd.f32 %v101_v6, %v82_v10  ;;  %v119_v13 = vpop.f32.mrb[3].mxu0 }
  0xe1   :  { %95 = vst.msk [vmem:[%s170_s3] sm:$0xf] %vm94_vm2, %v107_v11  ;;  %v108_v14 = vpack.c.bf16 %v83_v12, %v83_v12 }
  0xe3   :  { %96 = vst.msk [vmem:[%s170_s3 + $0x4] sm:$0xf] %vm94_vm2, %v108_v14 }

// kernel: _lambda_.55
= control target key start
LH: loop header
LB: loop body
LE: loop exit
PB: predicated region body
PF: predicated region fallthrough
CT: control target
= control target key end

     0   :  { %vm25_vm0 = vcmask 261120   ;;  %vm79_vm1 = vcmask 257024   ;;  %s150_s0 = inlined_call_operand.vmem [shape: f32[16,32], index: 0, kind: input, shape index: {}]   ;;  %s151_s1 = inlined_call_operand.vmem [shape: bf16[16,32], index: 1, kind: input, shape index: {}]   ;;  %s152_s2 = inlined_call_operand.vmem [shape: f32[1,32], index: 2, kind: input, shape index: {}]   ;;  %s153_s3 = inlined_call_operand.vmem [shape: f32[1,32], index: 3, kind: input, shape index: {}]   ;;  %s154_s4 = inlined_call_operand.vmem [shape: bf16[16,32], index: 4, kind: output, shape index: {}]  }
   0x1   :  { %v17_v0 = vld [vmem:[%s150_s0] sm:$0xff]  ;;  %v18_v2 = vld [vmem:[%s150_s0 + $0x8] sm:$0xff] }
   0x2   :  { %v93_v1 = vld [vmem:[%s151_s1] sm:$0xff]  }
   0x3   :  { %v94_v3 = vunpack.c.l.bf16 %v93_v1  ;;  %v95_v4 = vunpack.c.h.bf16 %v93_v1  ;;  %v86_v26 = vld [vmem:[%s152_s2] ss:$0 sm:$0xff] }
   0x4   :  { %v87_v28 = vld [vmem:[%s153_s3] ss:$0 sm:$0xff] }
   0x5   :  { %v23_v5 = vadd.f32 %v94_v3, %v17_v0  ;;  %v24_v6 = vadd.f32 %v95_v4, %v18_v2 }
   0x7   :  { %v26_v7 = vsel %vm25_vm0, %v23_v5, 0.0  ;;  %v29_v8 = vsel %vm25_vm0, %v24_v6, 0.0 }
   0x8   :  { %27 = vadd.xlane.f32.xlu0 %v26_v7 }
   0xc   :  { %30 = vadd.xlane.f32.xlu0 %v29_v8 }
  0x95   :  { %v28_v9 = vpop.xlane.xlu0 %27 }
  0x96   :  { %v33_v10 = vmul.f32 0.03125, %v28_v9 }
  0x98   :  { %v35_v11 = vsub.f32 %v23_v5, %v33_v10 }
  0x99   :  { %v31_v12 = vpop.xlane.xlu0 %30 }
  0x9a   :  { %v34_v13 = vmul.f32 0.03125, %v31_v12  ;;  %v37_v14 = vmul.f32 %v35_v11, %v35_v11 }
  0x9c   :  { %v36_v15 = vsub.f32 %v24_v6, %v34_v13  ;;  %v39_v16 = vsel %vm25_vm0, %v37_v14, 0.0 }
  0x9d   :  { %40 = vadd.xlane.f32.xlu1 %v39_v16 }
  0x9e   :  { %v38_v17 = vmul.f32 %v36_v15, %v36_v15 }
  0xa0   :  { %v42_v18 = vsel %vm25_vm0, %v38_v17, 0.0 }
  0xa1   :  { %43 = vadd.xlane.f32.xlu1 %v42_v18 }
 0x12a   :  { %v41_v19 = vpop.xlane.xlu1 %40 }
 0x12b   :  { %v45_v20 = vmul.f32 0.03125, %v41_v19 }
 0x12d   :  { %v47_v21 = vadd.f32 1e-05, %v45_v20 }
 0x12e   :  { %v44_v22 = vpop.xlane.xlu1 %43 }
 0x12f   :  { %96 = vrsqrt.f32 %v47_v21  ;;  %v46_v23 = vmul.f32 0.03125, %v44_v22 }
 0x131   :  { %v48_v24 = vadd.f32 1e-05, %v46_v23 }
 0x133   :  { %98 = vrsqrt.f32 %v48_v24 }
 0x139   :  { %v97_v25 = vpop.eup %96 }
 0x13a   :  { %v51_v27 = vmul.f32 %v97_v25, %v35_v11 }
 0x13c   :  { %v60_v29 = vmul.f32 %v86_v26, %v51_v27 }
 0x13d   :  { %v99_v30 = vpop.eup %98 }
 0x13e   :  { %v69_v31 = vadd.f32 %v87_v28, %v60_v29  ;;  %v52_v32 = vmul.f32 %v99_v30, %v36_v15 }
 0x140   :  { %v90_v33 = vpack.c.bf16 %v69_v31, %v69_v31  ;;  %v61_v34 = vmul.f32 %v86_v26, %v52_v32 }
 0x142   :  { %80 = vst.msk [vmem:[%s154_s4] sm:$0xf] %vm79_vm1, %v90_v33  ;;  %v70_v35 = vadd.f32 %v87_v28, %v61_v34 }
 0x144   :  { %v91_v36 = vpack.c.bf16 %v70_v35, %v70_v35 }
 0x146   :  { %81 = vst.msk [vmem:[%s154_s4 + $0x4] sm:$0xf] %vm79_vm1, %v91_v36 }

// kernel: _lambda_.56
= control target key start
LH: loop header
LB: loop body
LE: loop exit
PB: predicated region body
PF: predicated region fallthrough
CT: control target
= control target key end

     0   :  { %v130_v0 = vmov 0.0   ;;  %vm131_vm0 = vmmov 0   ;;  %vm45_vm1 = vcmask 261120   ;;  %vm98_vm2 = vcmask 257024   ;;  %s170_s1 = inlined_call_operand.vmem [shape: bf16[32,32], index: 1, kind: input, shape index: {}]   ;;  %s171_s0 = inlined_call_operand.vmem [shape: bf16[16,32], index: 0, kind: input, shape index: {}]   ;;  %s172_s2 = inlined_call_operand.vmem [shape: f32[1,32], index: 2, kind: input, shape index: {}]   ;;  %s173_s3 = inlined_call_operand.vmem [shape: bf16[16,32], index: 3, kind: output, shape index: {}]  }
   0x1   :  { %117 = vmatprep.subr.bf16.mxu0 %v130_v0  ;;  %v127_v1 = vld [vmem:[%s170_s1] sm:$0xff]   ;;  %121 = vmatprep.mubr.msk.bf16.mxu0 %vm131_vm0, %v130_v0  ;;  %v128_v2 = vld [vmem:[%s170_s1 + $0x8] sm:$0xff]  }
   0x2   :  { %118 = vmatpush3.bf16.msra.mxu0 %v127_v1  ;;  %v129_v3 = vld [vmem:[%s171_s0] sm:$0xff]  }
   0x3   :  { %119 = vmatprep.subr.bf16.mxu0 %v130_v0  ;;  %v105_v4 = vld [vmem:[%s172_s2] ss:$0 sm:$0xff] }
   0x6   :  { %120 = vmatpush3.bf16.msra.mxu0 %v128_v2 }
   0x9   :  { %122 = vmatmul.mubr.msk.bf16.vlgmr.msra.gmra.mrb[0].mxu0 %vm45_vm1, %v129_v3 }
  0xdc   :  { %v83_v5 = vpop.f32.mrb[0].mxu0 }
  0xdd   :  { %v84_v6 = vadd.f32 %v105_v4, %v83_v5  ;;  %v123_v7 = vpop.f32.mrb[1].mxu0 }
  0xde   :  { %v86_v8 = vpop.f32.mrb[2].mxu0 }
  0xdf   :  { %v112_v9 = vpack.c.bf16 %v84_v6, %v84_v6  ;;  %v87_v10 = vadd.f32 %v105_v4, %v86_v8  ;;  %v124_v11 = vpop.f32.mrb[3].mxu0 }
  0xe1   :  { %99 = vst.msk [vmem:[%s173_s3] sm:$0xf] %vm98_vm2, %v112_v9  ;;  %v113_v12 = vpack.c.bf16 %v87_v10, %v87_v10 }
  0xe3   :  { %100 = vst.msk [vmem:[%s173_s3 + $0x4] sm:$0xf] %vm98_vm2, %v113_v12 }

// kernel: _lambda_.54
= control target key start
LH: loop header
LB: loop body
LE: loop exit
PB: predicated region body
PF: predicated region fallthrough
CT: control target
= control target key end

     0   :  { %s1601_s15 = smov 0   ;;  %s1804_s0 = inlined_call_operand.vmem [shape: bf16[2,8,96], index: 0, kind: input, shape index: {}]   ;;  %s1805_s1 = inlined_call_operand.vmem [shape: s32[2,1,8], index: 1, kind: input, shape index: {}]   ;;  %s1806_s2 = inlined_call_operand.vmem [shape: bf16[32,32], index: 2, kind: input, shape index: {}]   ;;  %s1807_s3 = inlined_call_operand.vmem [shape: f32[1,32], index: 3, kind: input, shape index: {}]   ;;  %s1808_s4 = inlined_call_operand.vmem [shape: bf16[2,8,32], index: 4, kind: output, shape index: {}]  }
   0x1 LB: > { %s1414_s16 = sadd.s32 4294967295, %s1561_s15   ;;  %p1418_p0 = scmp.ge.s32.totalorder %s1561_s15, 1  ;;  %s1561_s15 = sphi %s1601_s15, %s14_s15  }
   0x2   : > { %p169_p1 = scmp.lt.s32.totalorder %s1561_s15, 3 }
   0x4   : > { %p170_p2 = pnand %p1418_p0, %p169_p1 }
   0x5   : > { %p196_p3 = scmp.lt.s32.totalorder (!%p170_p2), %s1414_s16, 1  ;;  %s1563_s21 = smov (!%p170_p2), 120   ;;  %v1568_v7 = vmov (!%p170_p2), 0.0   ;;  %vm1569_vm0 = vmmov (!%p170_p2), 0   ;;  %v1570_v8 = vmov (!%p170_p2), 1983009808   ;;  %v222_v10 = vlaneseq (!%p170_p2) }
   0x6   : > { %173 = sbr.rel (%p170_p2) target bundleno = 1283 (0x503), region = 36  ;;  %s1564_s22 = smov (!%p170_p2), 104   ;;  %1460 = vmatprep.subr.bf16.mxu0 (!%p170_p2), %v1568_v7  ;;  %1466 = vmatprep.subr.bf16.mxu1 (!%p170_p2), %v1568_v7  ;;  %v220_v9 = vunpack.c.l.s4 (!%p170_p2), %v1570_v8  ;;  %v1571_v14 = vmov (!%p170_p2), 1934713408   ;;  %v1572_v59 = vmov (!%p170_p2), 0   ;;  %vm687_vm1 = vcmask (!%p170_p2), 64512  }
   0x7   : > { %s1565_s23 = smov (!%p170_p2), 112   ;;  %s1566_s24 = smov (!%p170_p2), 96   ;;  %1462 = vmatprep.mubr.msk.bf16.mxu0 (!%p170_p2), %vm1569_vm0, %v1568_v7  ;;  %1468 = vmatprep.mubr.msk.bf16.mxu1 (!%p170_p2), %vm1569_vm0, %v1568_v7  ;;  %v1632_v13 = vshrl.u32 (!%p170_p2), %v222_v10, 7  ;;  %v237_v15 = vunpack.c.l.s4 (!%p170_p2), %v1571_v14  ;;  %vm938_vm5 = vcmask (!%p170_p2), 1043456   ;;  %vm1277_vm6 = vcmask (!%p170_p2), 130048  }
   0x8   : > { %s1567_s25 = smov (!%p170_p2), 64   ;;  %v221_v12 = vunpack.c.0.s8 (!%p170_p2), %v220_v9  ;;  %s1573_s7 = smov (!%p170_p2), 16   ;;  %vm1279_vm7 = vcmask (!%p170_p2), 195584   ;;  %vm1305_vm8 = vcmask (!%p170_p2), 261120   ;;  %vm1350_vm9 = vcmask (!%p170_p2), 257024  }
   0x9   : > { %v238_v21 = vunpack.c.0.s8 (!%p170_p2), %v237_v15  ;;  %s1574_s8 = smov (!%p170_p2), 8   ;;  %s1575_s9 = smov (!%p170_p2), 24  }
   0xa   : > { %v1635_v19 = vsub.s32 (!%p170_p2), %v221_v12, %v1632_v13 }
   0xb   : > { %v1639_v29 = vsub.s32 (!%p170_p2), %v238_v21, %v1632_v13 }
   0xd   : > { %s1810_s16 = smov (!%p196_p3, %s1414_s16), 1 }
   0xe   : > { %s1419_s17 = sshll.u32 %s1810_s16, 2  ;;  %s202_s28 = scalar_lea.vmem %s1805_s1, %s1810_s16 }
   0xf   : > { %s199_s20 = scalar_lea.vmem %s1804_s0, %s1419_s17  ;;  %s206_s14 = scalar_lea.vmem %s1808_s4, %s1419_s17 }
  0x10   : > { %v208_v0 = vld [vmem:[%s199_s20] sm:$0xf] }
  0x11   : > { %381 = vrot.lane.b32.xlu0 %v208_v0, %s1563_s21  ;;  %385 = vrot.lane.b32.xlu1 %v208_v0, %s1564_s22  ;;  %v209_v1 = vunpack.c.l.bf16 %v208_v0 }
  0x13   : > { %v210_v3 = vmul.f32 0.35355338, %v209_v1 }
  0x15   : > { %383 = vrot.lane.b32.xlu0 %v208_v0, %s1565_s23  ;;  %387 = vrot.lane.b32.xlu1 %v208_v0, %s1566_s24  ;;  %v211_v6 = vpack.c.bf16 %v210_v3, %v210_v3 }
  0x17   : > { %v225_v34 = vrot.slane %v211_v6, %v1635_v19 }
  0x83   : > { %v382_v2 = vpop.permute.xlu0 %381  ;;  %v1617_v4 = vpop.permute.xlu1 %385 }
  0x84   : > { %389 = vrot.lane.b32.xlu0 %v382_v2, %s1566_s24 }
  0x87   : > { %v1619_v5 = vpop.permute.xlu0 %383  ;;  %v388_v11 = vpop.permute.xlu1 %387 }
  0x88   : > { %393 = vrot.lane.b32.xlu0 %v1617_v4, %s1566_s24  ;;  %391 = vrot.lane.b32.xlu1 %v1619_v5, %s1566_s24  ;;  %v398_v17 = vshrl.u32 %v388_v11, 16 }
  0x8c   : > { %213 = vrot.lane.b32.xlu1 %v211_v6, %s1563_s21  ;;  %215 = vrot.lane.b32.xlu0 %v211_v6, %s1565_s23 }
  0x90   : > { %217 = vrot.lane.b32.xlu1 %v211_v6, %s1564_s22  ;;  %537 = vrot.lane.b32.xlu0 %v208_v0, %s1567_s25 }
  0x94   : > { %539 = vrot.lane.b32.xlu1 %v382_v2, %s1567_s25 }
  0xf6   : > { %v390_v16 = vpop.permute.xlu0 %389 }
  0xf7   : > { %v399_v18 = vshrl.u32 %v390_v16, 16  ;;  %v397_v20 = vpack.i.b16 %v390_v16, %v388_v11 }
  0xf9   : > { %v400_v24 = vpack.i.b16 %v399_v18, %v398_v17  ;;  %v414_v28 = vrot.slane %v397_v20, %v1635_v19 }
  0xfa   : > { %v392_v22 = vpop.permute.xlu1 %391  ;;  %v394_v23 = vpop.permute.xlu0 %393 }
  0xfb   : > { %v404_v25 = vshrl.u32 %v392_v22, 16  ;;  %v403_v26 = vpack.i.b16 %v394_v23, %v392_v22  ;;  %v405_v27 = vshrl.u32 %v394_v23, 16  ;;  %v448_v35 = vrot.slane %v400_v24, %v1635_v19 }
  0xfd   : > { %v406_v30 = vpack.i.b16 %v405_v27, %v404_v25  ;;  %v422_v31 = vrot.slane %v403_v26, %v1635_v19 }
  0xfe   : > { %v214_v32 = vpop.permute.xlu1 %213  ;;  %v216_v33 = vpop.permute.xlu0 %215 }
  0xff   : > { %v423_v36 = vcombine.low %v414_v28, %v422_v31  ;;  %v424_v37 = vcombine.high %v414_v28, %v422_v31  ;;  %v456_v38 = vrot.slane %v406_v30, %v1635_v19  ;;  %v233_v39 = vrot.slane %v216_v33, %v1635_v19 }
 0x100   : > { %v259_v55 = vrot.slane %v214_v32, %v1635_v19 }
 0x101   : > { %v431_v40 = vrot.slane %v423_v36, %v1639_v29  ;;  %v438_v41 = vrot.slane %v424_v37, %v1639_v29  ;;  %v457_v42 = vcombine.low %v448_v35, %v456_v38  ;;  %v458_v43 = vcombine.high %v448_v35, %v456_v38 }
 0x102   : > { %v234_v44 = vcombine.low %v225_v34, %v233_v39  ;;  %v235_v45 = vcombine.high %v225_v34, %v233_v39  ;;  %v218_v46 = vpop.permute.xlu1 %217 }
 0x103   : > { %v465_v47 = vrot.slane %v457_v42, %v1639_v29  ;;  %v472_v48 = vrot.slane %v458_v43, %v1639_v29  ;;  %v475_v49 = vcombine.low %v431_v40, %v438_v41  ;;  %v1421_v50 = vcombine.high %v431_v40, %v438_v41 }
 0x104   : > { %v242_v51 = vrot.slane %v234_v44, %v1639_v29  ;;  %v249_v52 = vrot.slane %v235_v45, %v1639_v29  ;;  %v267_v53 = vrot.slane %v218_v46, %v1635_v19 }
 0x105   : > { %v500_v54 = vcombine.low %v465_v47, %v472_v48  ;;  %v482_v56 = vrot.slane %v475_v49, %v1635_v19  ;;  %v490_v57 = vrot.slane %v1421_v50, %v1635_v19  ;;  %v1422_v58 = vcombine.high %v465_v47, %v472_v48 }
 0x106   : > { %v250_v60 = vcombine.high %v242_v51, %v1572_v59  ;;  %v251_v61 = vcombine.high %v249_v52, %v1572_v59  ;;  %v268_v62 = vcombine.low %v259_v55, %v267_v53  ;;  %v269_v63 = vcombine.high %v259_v55, %v267_v53 }
 0x107   : > { %v491_v0 = vcombine.low %v482_v56, %v490_v57  ;;  %v507_v1 = vrot.slane %v500_v54, %v1635_v19  ;;  %v290_v2 = vshrl.u32 %v242_v51, 16  ;;  %v306_v9 = vshrl.u32 %v249_v52, 16 }
 0x108   : > { %v276_v3 = vrot.slane %v268_v62, %v1639_v29  ;;  %v283_v6 = vrot.slane %v269_v63, %v1639_v29  ;;  %v298_v8 = vshrl.u32 %v250_v60, 16  ;;  %v314_v11 = vshrl.u32 %v251_v61, 16 }
 0x109   : > { %v515_v12 = vrot.slane %v1422_v58, %v1635_v19  ;;  %v498_v21 = vrot.slane %v491_v0, %v1639_v29 }
 0x10a   : > { %v284_v14 = vcombine.high %v276_v3, %v1572_v59  ;;  %v285_v15 = vcombine.high %v283_v6, %v1572_v59  ;;  %v288_v16 = vpack.i.b16 %v276_v3, %v242_v51  ;;  %v291_v17 = vshrl.u32 %v276_v3, 16 }
 0x10b   : > { %v304_v18 = vpack.i.b16 %v283_v6, %v249_v52  ;;  %v307_v20 = vshrl.u32 %v283_v6, 16  ;;  %v516_v22 = vcombine.low %v507_v1, %v515_v12  ;;  %v528_v39 = vshrl.u32 %v498_v21, 16 }
 0x10c   : > { %v292_v23 = vpack.i.b16 %v291_v17, %v290_v2  ;;  %v296_v24 = vpack.i.b16 %v284_v14, %v250_v60  ;;  %v299_v25 = vshrl.u32 %v284_v14, 16  ;;  %v312_v26 = vpack.i.b16 %v285_v15, %v251_v61 }
 0x10d   : > { %v308_v27 = vpack.i.b16 %v307_v20, %v306_v9  ;;  %v315_v28 = vshrl.u32 %v285_v15, 16  ;;  %v318_v30 = vcombine.low %v288_v16, %v304_v18  ;;  %v523_v31 = vrot.slane %v516_v22, %v1639_v29  ;;  %v872_v9 = vld [vmem:[%s202_s28] sm:$0x1] }
 0x10e   : > { %v300_v32 = vpack.i.b16 %v299_v25, %v298_v8  ;;  %v326_v33 = vcombine.low %v296_v24, %v312_v26  ;;  %v499_v48 = vcombine.high %v498_v21, %v1572_v59  ;;  %vm873_vm2 = vcmp.ne.s32.totalorder %v872_v9, 0 }
 0x10f   : > { %v316_v34 = vpack.i.b16 %v315_v28, %v314_v11  ;;  %v343_v35 = vcombine.low %v292_v23, %v308_v27  ;;  %v527_v36 = vpack.i.b16 %v523_v31, %v498_v21  ;;  %v325_v37 = vrot.slane %v318_v30, %v1635_v19 }
 0x110   : > { %v333_v38 = vrot.slane %v326_v33, %v1635_v19  ;;  %v529_v40 = vshrl.u32 %v523_v31, 16  ;;  %v524_v43 = vcombine.high %v523_v31, %v1572_v59  ;;  %v534_v55 = vshrl.u32 %v499_v48, 16 }
 0x111   : > { %v351_v41 = vcombine.low %v300_v32, %v316_v34  ;;  %v692_v42 = vsel %vm687_vm1, %v527_v36, 0  ;;  %v350_v46 = vrot.slane %v343_v35, %v1635_v19  ;;  %v877_v11 = vsub.s32 0, %v1632_v13 }
 0x112   : > { %1461 = vmatpush3.bf16.xpose.msra.mxu0 %v692_v42  ;;  %v530_v44 = vpack.i.b16 %v529_v40, %v528_v39  ;;  %v334_v45 = vcombine.low %v325_v37, %v333_v38  ;;  %v535_v52 = vshrl.u32 %v524_v43, 16  ;;  %v533_v54 = vpack.i.b16 %v524_v43, %v499_v48 }
 0x113   : > { %1472 = vmatprep.subr.bf16.mxu0 %v1568_v7  ;;  %v358_v47 = vrot.slane %v351_v41, %v1635_v19  ;;  %v874_v12 = vsel %vm873_vm2, 1, %v1572_v59  ;;  %v887_v15 = vand.u32 127, %v222_v10 }
 0x114   : > { %v738_v49 = vsel %vm687_vm1, %v530_v44, 0  ;;  %v341_v50 = vrot.slane %v334_v45, %v1639_v29  ;;  %v536_v60 = vpack.i.b16 %v535_v52, %v534_v55  ;;  %v784_v61 = vsel %vm687_vm1, %v533_v54, 0  ;;  %v540_v44 = vpop.permute.xlu1 %539 }
 0x115   : > { %1467 = vmatpush3.bf16.xpose.msra.mxu1 %v738_v49  ;;  %v359_v51 = vcombine.low %v350_v46, %v358_v47  ;;  %v878_v14 = vrot.slane %v874_v12, %v877_v11  ;;  %vm888_vm4 = vcmp.gt.s32.totalorder %v887_v15, %v1632_v13  ;;  %v549_v48 = vshrl.u32 %v540_v44, 16 }
 0x116   : > { %1478 = vmatprep.subr.bf16.mxu1 %v1568_v7  ;;  %v371_v57 = vshrl.u32 %v341_v50, 16  ;;  %v830_v0 = vsel %vm687_vm1, %v536_v60, 0  ;;  %v342_v1 = vcombine.high %v341_v50, %v1572_v59 }
 0x117   : > { %v366_v53 = vrot.slane %v359_v51, %v1639_v29  ;;  %vm879_vm3 = vcmp.eq.s32.totalorder %v878_v14, 1 }
 0x118   : > { %v377_v6 = vshrl.u32 %v342_v1, 16 }
 0x119   : > { %v370_v56 = vpack.i.b16 %v366_v53, %v341_v50  ;;  %v372_v58 = vshrl.u32 %v366_v53, 16  ;;  %v367_v63 = vcombine.high %v366_v53, %v1572_v59 }
 0x11b   : > { %1463 = vmatmul.mubr.msk.bf16.vlgmr.msra.gmra.mrb[0].mxu0 %vm687_vm1, %v370_v56  ;;  %v373_v62 = vpack.i.b16 %v372_v58, %v371_v57  ;;  %v378_v2 = vshrl.u32 %v367_v63, 16  ;;  %v376_v3 = vpack.i.b16 %v367_v63, %v342_v1 }
 0x11c   : > { %1473 = vmatpush3.bf16.xpose.msra.mxu0 %v784_v61  ;;  %1474 = vmatprep.mubr.msk.bf16.mxu0 %vm1569_vm0, %v1568_v7 }
 0x11d   : > { %1469 = vmatmul.mubr.msk.bf16.vlgmr.msra.gmra.mrb[0].mxu1 %vm687_vm1, %v373_v62  ;;  %1484 = vmatprep.subr.bf16.mxu0 %v1568_v7  ;;  %v379_v8 = vpack.i.b16 %v378_v2, %v377_v6 }
 0x11e   : > { %1479 = vmatpush3.bf16.xpose.msra.mxu1 %v830_v0  ;;  %1480 = vmatprep.mubr.msk.bf16.mxu1 %vm1569_vm0, %v1568_v7 }
 0x11f   : > { %1490 = vmatprep.subr.bf16.mxu1 %v1568_v7 }
 0x123   : > { %1475 = vmatmul.mubr.msk.bf16.vlgmr.msra.gmra.mrb[4].mxu0 %vm687_vm1, %v376_v3 }
 0x124   : > { %1486 = vmatprep.mubr.msk.bf16.mxu0 %vm1569_vm0, %v1568_v7 }
 0x125   : > { %1481 = vmatmul.mubr.msk.bf16.vlgmr.msra.gmra.mrb[4].mxu1 %vm687_vm1, %v379_v8 }
 0x126   : > { %1492 = vmatprep.mubr.msk.bf16.mxu1 %vm1569_vm0, %v1568_v7 }
 0x1ee   : > { %v728_v16 = vpop.f32.mrb[0].mxu0 }
 0x1ef   : > { %v880_v17 = vsel %vm879_vm3, -1e+09, %v728_v16  ;;  %v1464_v18 = vpop.f32.mrb[1].mxu0 }
 0x1f0   : > { %v731_v20 = vpop.f32.mrb[2].mxu0  ;;  %v774_v21 = vpop.f32.mrb[0].mxu1  ;;  %v891_v22 = vsel %vm888_vm4, -1e+09, %v880_v17 }
 0x1f1   : > { %v881_v23 = vsel %vm879_vm3, -1e+09, %v774_v21  ;;  %v1465_v24 = vpop.f32.mrb[3].mxu0  ;;  %v1470_v25 = vpop.f32.mrb[1].mxu1  ;;  %v895_v26 = vsel %vm687_vm1, %v891_v22, -inf }
 0x1f2   : > { %v777_v27 = vpop.f32.mrb[2].mxu1  ;;  %896 = vmax.xlane.f32.xlu0 %v895_v26  ;;  %v892_v10 = vsel %vm888_vm4, -1e+09, %v881_v23 }
 0x1f3   : > { %v1471_v28 = vpop.f32.mrb[3].mxu1  ;;  %v898_v30 = vsel %vm687_vm1, %v892_v10, -inf }
 0x1f4   : > { %899 = vmax.xlane.f32.xlu1 %v898_v30 }
 0x1f6   : > { %v820_v31 = vpop.f32.mrb[4].mxu0 }
 0x1f7   : > { %v1476_v32 = vpop.f32.mrb[5].mxu0  ;;  %v882_v39 = vsel %vm879_vm3, -1e+09, %v820_v31 }
 0x1f8   : > { %v823_v33 = vpop.f32.mrb[6].mxu0  ;;  %v866_v34 = vpop.f32.mrb[4].mxu1  ;;  %v1720_v41 = vsel %vm888_vm4, -1e+09, %v882_v39 }
 0x1f9   : > { %v1477_v35 = vpop.f32.mrb[7].mxu0  ;;  %v1482_v36 = vpop.f32.mrb[5].mxu1  ;;  %v883_v40 = vsel %vm879_vm3, -1e+09, %v866_v34  ;;  %v901_v43 = vsel %vm687_vm1, %v1720_v41, -inf }
 0x1fa   : > { %v869_v37 = vpop.f32.mrb[6].mxu1  ;;  %v1724_v42 = vsel %vm888_vm4, -1e+09, %v883_v40 }
 0x1fb   : > { %v1483_v38 = vpop.f32.mrb[7].mxu1 }
 0x205   : > { %543 = vrot.lane.b32.xlu1 %v1617_v4, %s1567_s25  ;;  %v904_v4 = vsel %vm687_vm1, %v1724_v42, -inf }
 0x208   : > { %541 = vrot.lane.b32.xlu0 %v1619_v5, %s1567_s25  ;;  %v538_v5 = vpop.permute.xlu0 %537 }
 0x209   : > { %v548_v47 = vshrl.u32 %v538_v5, 16  ;;  %v547_v52 = vpack.i.b16 %v540_v44, %v538_v5 }
 0x20b   : > { %v550_v54 = vpack.i.b16 %v549_v48, %v548_v47  ;;  %v564_v60 = vrot.slane %v547_v52, %v1635_v19 }
 0x20d   : > { %v598_v63 = vrot.slane %v550_v54, %v1635_v19 }
 0x227   : > { %902 = vmax.xlane.f32.xlu0 %v901_v43 }
 0x229   : > { %905 = vmax.xlane.f32.xlu1 %v904_v4 }
 0x27f   : > { %v897_v45 = vpop.xlane.xlu0 %896 }
 0x280   : > { %v907_v46 = vsub.f32 %v891_v22, %v897_v45 }
 0x281   : > { %v900_v49 = vpop.xlane.xlu1 %899 }
 0x282   : > { %v911_v50 = vmul.f32 1.442695, %v907_v46  ;;  %v908_v51 = vsub.f32 %v892_v10, %v900_v49 }
 0x283   : > { %v542_v13 = vpop.permute.xlu0 %541 }
 0x284   : > { %1539 = vpow2.f32 %v911_v50  ;;  %v913_v53 = vmul.f32 1.442695, %v908_v51  ;;  %v554_v56 = vshrl.u32 %v542_v13, 16 }
 0x285   : > { %v544_v55 = vpop.permute.xlu1 %543 }
 0x286   : > { %1541 = vpow2.f32 %v913_v53  ;;  %v553_v57 = vpack.i.b16 %v544_v55, %v542_v13  ;;  %v555_v58 = vshrl.u32 %v544_v55, 16 }
 0x288   : > { %v556_v61 = vpack.i.b16 %v555_v58, %v554_v56  ;;  %v572_v62 = vrot.slane %v553_v57, %v1635_v19 }
 0x28a   : > { %v573_v0 = vcombine.low %v564_v60, %v572_v62  ;;  %v574_v1 = vcombine.high %v564_v60, %v572_v62  ;;  %v606_v2 = vrot.slane %v556_v61, %v1635_v19 }
 0x28c   : > { %v581_v3 = vrot.slane %v573_v0, %v1639_v29  ;;  %v588_v6 = vrot.slane %v574_v1, %v1639_v29  ;;  %v607_v8 = vcombine.low %v598_v63, %v606_v2  ;;  %v608_v9 = vcombine.high %v598_v63, %v606_v2 }
 0x28e   : > { %v1540_v11 = vpop.eup %1539  ;;  %v615_v12 = vrot.slane %v607_v8, %v1639_v29  ;;  %v622_v14 = vrot.slane %v608_v9, %v1639_v29  ;;  %v625_v15 = vcombine.low %v581_v3, %v588_v6  ;;  %v1423_v16 = vcombine.high %v581_v3, %v588_v6 }
 0x28f   : > { %v919_v17 = vsel %vm687_vm1, %v1540_v11, 0.0  ;;  %v931_v4 = vpack.c.bf16 %v1540_v11, %v1540_v11 }
 0x290   : > { %v1542_v18 = vpop.eup %1541  ;;  %v632_v20 = vrot.slane %v625_v15, %v1635_v19  ;;  %v640_v21 = vrot.slane %v1423_v16, %v1635_v19  ;;  %v650_v22 = vcombine.low %v615_v12, %v622_v14  ;;  %v1424_v23 = vcombine.high %v615_v12, %v622_v14  ;;  %920 = vadd.xlane.f32.xlu0 %v919_v17 }
 0x291   : > { %v922_v27 = vsel %vm687_vm1, %v1542_v18, 0.0  ;;  %v932_v45 = vpack.c.bf16 %v1542_v18, %v1542_v18 }
 0x292   : > { %v657_v24 = vrot.slane %v650_v22, %v1635_v19  ;;  %v665_v25 = vrot.slane %v1424_v23, %v1635_v19  ;;  %v641_v26 = vcombine.low %v632_v20, %v640_v21 }
 0x294   : > { %923 = vadd.xlane.f32.xlu0 %v922_v27  ;;  %v648_v10 = vrot.slane %v641_v26, %v1639_v29  ;;  %v666_v28 = vcombine.low %v657_v24, %v665_v25 }
 0x296   : > { %v673_v30 = vrot.slane %v666_v28, %v1639_v29  ;;  %v649_v31 = vcombine.high %v648_v10, %v1572_v59  ;;  %v678_v33 = vshrl.u32 %v648_v10, 16 }
 0x298   : > { %v677_v32 = vpack.i.b16 %v673_v30, %v648_v10  ;;  %v679_v34 = vshrl.u32 %v673_v30, 16  ;;  %v674_v35 = vcombine.high %v673_v30, %v1572_v59  ;;  %v684_v36 = vshrl.u32 %v649_v31, 16 }
 0x29a   : > { %v940_v37 = vsel %vm938_vm5, %v677_v32, 0  ;;  %v680_v38 = vpack.i.b16 %v679_v34, %v678_v33  ;;  %v683_v39 = vpack.i.b16 %v674_v35, %v649_v31  ;;  %v685_v40 = vshrl.u32 %v674_v35, 16 }
 0x29b   : > { %1485 = vmatpush3.bf16.msra.mxu0 %v940_v37 }
 0x29c   : > { %v986_v43 = vsel %vm938_vm5, %v680_v38, 0  ;;  %1496 = vmatprep.subr.bf16.mxu0 %v1568_v7  ;;  %v686_v5 = vpack.i.b16 %v685_v40, %v684_v36  ;;  %v1032_v44 = vsel %vm938_vm5, %v683_v39, 0  ;;  %v1538_v38 = vld [vmem:[%s1806_s2 + $0x8] sm:$0xff]  }
 0x29d   : > { %1491 = vmatpush3.bf16.msra.mxu1 %v986_v43 }
 0x29e   : > { %1487 = vmatmul.mubr.msk.bf16.vlgmr.msra.gmra.mrb[8].mxu0 %vm687_vm1, %v931_v4  ;;  %1502 = vmatprep.subr.bf16.mxu1 %v1568_v7  ;;  %v1078_v59 = vsel %vm938_vm5, %v686_v5, 0 }
 0x29f   : > { %1497 = vmatpush3.bf16.msra.mxu0 %v1032_v44  ;;  %1498 = vmatprep.mubr.msk.bf16.mxu0 %vm1569_vm0, %v1568_v7 }
 0x2a0   : > { %1493 = vmatmul.mubr.msk.bf16.vlgmr.msra.gmra.mrb[8].mxu1 %vm687_vm1, %v932_v45  ;;  %1508 = vmatprep.subr.bf16.mxu0 %v1568_v7 }
 0x2a1   : > { %1503 = vmatpush3.bf16.msra.mxu1 %v1078_v59  ;;  %1504 = vmatprep.mubr.msk.bf16.mxu1 %vm1569_vm0, %v1568_v7 }
 0x2b4   : > { %v903_v46 = vpop.xlane.xlu0 %902 }
 0x2b5   : > { %v909_v47 = vsub.f32 %v1720_v41, %v903_v46  ;;  %v1537_v41 = vld [vmem:[%s1806_s2] sm:$0xff]  }
 0x2b6   : > { %v906_v48 = vpop.xlane.xlu1 %905 }
 0x2b7   : > { %v915_v49 = vmul.f32 1.442695, %v909_v47  ;;  %v910_v50 = vsub.f32 %v1724_v42, %v906_v48 }
 0x2b9   : > { %1543 = vpow2.f32 %v915_v49  ;;  %v917_v51 = vmul.f32 1.442695, %v910_v50 }
 0x2bb   : > { %1545 = vpow2.f32 %v917_v51 }
 0x2c3   : > { %v1544_v13 = vpop.eup %1543 }
 0x2c4   : > { %v925_v52 = vsel %vm687_vm1, %v1544_v13, 0.0  ;;  %v933_v53 = vpack.c.bf16 %v1544_v13, %v1544_v13 }
 0x2c5   : > { %v1546_v54 = vpop.eup %1545  ;;  %926 = vadd.xlane.f32.xlu1 %v925_v52 }
 0x2c6   : > { %1499 = vmatmul.mubr.msk.bf16.vlgmr.msra.gmra.mrb[12].mxu0 %vm687_vm1, %v933_v53  ;;  %v928_v55 = vsel %vm687_vm1, %v1546_v54, 0.0  ;;  %v934_v56 = vpack.c.bf16 %v1546_v54, %v1546_v54 }
 0x2c7   : > { %929 = vadd.xlane.f32.xlu0 %v928_v55  ;;  %1512 = vmatprep.mubr.msk.bf16.mxu0 %vm1569_vm0, %v1568_v7 }
 0x2c8   : > { %1505 = vmatmul.mubr.msk.bf16.vlgmr.msra.gmra.mrb[12].mxu1 %vm687_vm1, %v934_v56  ;;  %1509 = vmatpush3.bf16.msra.mxu0 %v1537_v41 }
 0x2c9   : > { %1510 = vmatprep.subr.bf16.mxu0 %v1568_v7 }
 0x2cc   : > { %1511 = vmatpush3.bf16.msra.mxu0 %v1538_v38 }
 0x31d   : > { %v921_v1 = vpop.xlane.xlu0 %920 }
 0x31e   : > { %1547 = vrcp.f32 %v921_v1  ;;  %v1435_v1 = vld [vmem:[%s1807_s3] ss:$0 sm:$0xff] }
 0x321   : > { %v924_v2 = vpop.xlane.xlu0 %923 }
 0x328   : > { %v1548_v8 = vpop.eup %1547 }
 0x352   : > { %v927_v3 = vpop.xlane.xlu1 %926 }
 0x353   : > { %1549 = vrcp.f32 %v927_v3 }
 0x354   : > { %v930_v6 = vpop.xlane.xlu0 %929  ;;  %1551 = vrcp.f32 %v924_v2 }
 0x355   : > { %1553 = vrcp.f32 %v930_v6 }
 0x35d   : > { %v1550_v9 = vpop.eup %1549 }
 0x35e   : > { %v1552_v7 = vpop.eup %1551 }
 0x35f   : > { %v1554_v16 = vpop.eup %1553 }
 0x371   : > { %v976_v42 = vpop.f32.mrb[8].mxu0 }
 0x372   : > { %v1488_v57 = vpop.f32.mrb[9].mxu0  ;;  %v1124_v12 = vmul.f32 %v1548_v8, %v976_v42 }
 0x373   : > { %v979_v58 = vpop.f32.mrb[10].mxu0  ;;  %v1022_v60 = vpop.f32.mrb[8].mxu1 }
 0x374   : > { %v1489_v61 = vpop.f32.mrb[11].mxu0  ;;  %v1494_v62 = vpop.f32.mrb[9].mxu1  ;;  %v1125_v20 = vmul.f32 %v1552_v7, %v1022_v60 }
 0x375   : > { %v1025_v63 = vpop.f32.mrb[10].mxu1 }
 0x376   : > { %v1495_v0 = vpop.f32.mrb[11].mxu1 }
 0x399   : > { %v1068_v11 = vpop.f32.mrb[12].mxu0 }
 0x39a   : > { %v1126_v14 = vmul.f32 %v1550_v9, %v1068_v11  ;;  %v1500_v15 = vpop.f32.mrb[13].mxu0 }
 0x39b   : > { %v1071_v17 = vpop.f32.mrb[14].mxu0  ;;  %v1114_v18 = vpop.f32.mrb[12].mxu1 }
 0x39c   : > { %v1128_v21 = vcombine.low %v1124_v12, %v1126_v14  ;;  %v1129_v22 = vcombine.high %v1124_v12, %v1126_v14  ;;  %v1127_v23 = vmul.f32 %v1554_v16, %v1114_v18  ;;  %v1501_v24 = vpop.f32.mrb[15].mxu0  ;;  %v1506_v25 = vpop.f32.mrb[13].mxu1 }
 0x39d   : > { %v1117_v26 = vpop.f32.mrb[14].mxu1 }
 0x39e   : > { %v1144_v27 = vcombine.low %v1125_v20, %v1127_v23  ;;  %v1145_v10 = vcombine.high %v1125_v20, %v1127_v23  ;;  %v1507_v28 = vpop.f32.mrb[15].mxu1  ;;  %v1136_v30 = vrot.slane %v1128_v21, %v1635_v19  ;;  %v1143_v31 = vrot.slane %v1129_v22, %v1635_v19 }
 0x3a0   : > { %v1152_v32 = vrot.slane %v1144_v27, %v1635_v19  ;;  %v1159_v33 = vrot.slane %v1145_v10, %v1635_v19 }
 0x3a2   : > { %v1160_v34 = vcombine.low %v1136_v30, %v1152_v32  ;;  %v1161_v35 = vcombine.high %v1136_v30, %v1152_v32  ;;  %v1176_v36 = vcombine.low %v1143_v31, %v1159_v33  ;;  %v1177_v37 = vcombine.high %v1143_v31, %v1159_v33 }
 0x3a4   : > { %v1168_v39 = vrot.slane %v1160_v34, %v1639_v29  ;;  %v1175_v40 = vrot.slane %v1161_v35, %v1639_v29  ;;  %v1184_v43 = vrot.slane %v1176_v36, %v1639_v29  ;;  %v1191_v4 = vrot.slane %v1177_v37, %v1639_v29 }
 0x3a6   : > { %v1196_v5 = vcombine.low %v1168_v39, %v1175_v40  ;;  %v1433_v44 = vcombine.high %v1168_v39, %v1175_v40  ;;  %v1212_v45 = vcombine.low %v1184_v43, %v1191_v4  ;;  %v1434_v59 = vcombine.high %v1184_v43, %v1191_v4 }
 0x3a8   : > { %v1203_v46 = vrot.slane %v1196_v5, %v1635_v19  ;;  %v1211_v47 = vrot.slane %v1433_v44, %v1635_v19  ;;  %v1219_v48 = vrot.slane %v1212_v45, %v1635_v19  ;;  %v1227_v49 = vrot.slane %v1434_v59, %v1635_v19 }
 0x3aa   : > { %v1229_v50 = vcombine.high %v1203_v46, %v1211_v47  ;;  %v1245_v51 = vcombine.high %v1219_v48, %v1227_v49  ;;  %v1228_v13 = vcombine.low %v1203_v46, %v1211_v47  ;;  %v1244_v52 = vcombine.low %v1219_v48, %v1227_v49 }
 0x3ac   : > { %v1243_v53 = vrot.slane %v1229_v50, %v1639_v29  ;;  %v1259_v54 = vrot.slane %v1245_v51, %v1639_v29  ;;  %v1236_v55 = vrot.slane %v1228_v13, %v1639_v29  ;;  %v1252_v56 = vrot.slane %v1244_v52, %v1639_v29 }
 0x3ae   : > { %v1262_v41 = vcombine.low %v1243_v53, %v1259_v54  ;;  %v1261_v42 = vcombine.high %v1236_v55, %v1252_v56  ;;  %v1263_v57 = vcombine.high %v1243_v53, %v1259_v54  ;;  %v1260_v58 = vcombine.low %v1236_v55, %v1252_v56 }
 0x3b0   : > { %1269 = vrot.lane.b32.xlu0 %v1262_v41, %s1573_s7  ;;  %1265 = vrot.lane.b32.xlu1 %v1261_v42, %s1574_s8 }
 0x3b4   : > { %1273 = vrot.lane.b32.xlu1 %v1263_v57, %s1575_s9 }
 0x422   : > { %v1266_v19 = vpop.permute.xlu1 %1265  ;;  %v1270_v60 = vpop.permute.xlu0 %1269 }
 0x423   : > { %v1276_v61 = vsel %vm687_vm1, %v1260_v58, %v1266_v19 }
 0x424   : > { %v1278_v63 = vsel %vm1277_vm6, %v1276_v61, %v1270_v60 }
 0x426   : > { %v1274_v62 = vpop.permute.xlu1 %1273 }
 0x427   : > { %v1280_v29 = vsel %vm1279_vm7, %v1278_v63, %v1274_v62 }
 0x428   : > { %v1281_v0 = vpack.c.bf16 %v1280_v29, %v1280_v29 }
 0x42a   : > { %1513 = vmatmul.mubr.msk.bf16.vlgmr.msra.gmra.mrb[16].mxu0 %vm1305_vm8, %v1281_v0 }
 0x4fd   : > { %v1343_v2 = vpop.f32.mrb[16].mxu0 }
 0x4fe   : > { %v1344_v3 = vadd.f32 %v1435_v1, %v1343_v2  ;;  %v1514_v6 = vpop.f32.mrb[17].mxu0 }
 0x4ff   : > { %v1346_v8 = vpop.f32.mrb[18].mxu0 }
 0x500   : > { %v1349_v9 = vpack.c.bf16 %v1344_v3, %v1344_v3  ;;  %v1515_v11 = vpop.f32.mrb[19].mxu0 }
 0x502   : > { %1351 = vst.msk [vmem:[%s206_s14] sm:$0xf] %vm1350_vm9, %v1349_v9 }
 0x503 PF: > { %s14_s15 = sadd.s32 1, %s1561_s15  }
 0x504   : > { %p11_p4 = scmp.ge.s32.totalorder %s14_s15, 4  }
 0x506   :  { %13 = sbr.rel (!%p11_p4) target bundleno = 1 (0x1), region = 69 }

// kernel: _lambda_.58
= control target key start
LH: loop header
LB: loop body
LE: loop exit
PB: predicated region body
PF: predicated region fallthrough
CT: control target
= control target key end

     0   :  { %s1643_s18 = smov 0   ;;  %s1841_s0 = inlined_call_operand.vmem [shape: bf16[2,8,32], index: 0, kind: input, shape index: {}]   ;;  %s1842_s1 = inlined_call_operand.vmem [shape: bf16[2,8,64], index: 1, kind: input, shape index: {}]   ;;  %s1843_s2 = inlined_call_operand.vmem [shape: s32[2,1,8], index: 2, kind: input, shape index: {}]   ;;  %s1844_s3 = inlined_call_operand.vmem [shape: bf16[32,32], index: 3, kind: input, shape index: {}]   ;;  %s1845_s4 = inlined_call_operand.vmem [shape: f32[1,32], index: 4, kind: input, shape index: {}]   ;;  %s1846_s5 = inlined_call_operand.vmem [shape: bf16[2,8,32], index: 5, kind: output, shape index: {}]  }
   0x1 LB: > { %s1452_s19 = sadd.s32 4294967295, %s1599_s18   ;;  %p1456_p0 = scmp.ge.s32.totalorder %s1599_s18, 1  ;;  %s1599_s18 = sphi %s1643_s18, %s15_s18  }
   0x2   : > { %p203_p1 = scmp.lt.s32.totalorder %s1599_s18, 3 }
   0x4   : > { %p204_p2 = pnand %p1456_p0, %p203_p1 }
   0x5   : > { %p236_p3 = scmp.lt.s32.totalorder (!%p204_p2), %s1452_s19, 1  ;;  %s1601_s27 = smov (!%p204_p2), 120   ;;  %v1605_v5 = vmov (!%p204_p2), 0.0   ;;  %vm1606_vm0 = vmmov (!%p204_p2), 0   ;;  %v1607_v6 = vmov (!%p204_p2), 1983009808   ;;  %v267_v8 = vlaneseq (!%p204_p2) }
   0x6   : > { %207 = sbr.rel (%p204_p2) target bundleno = 1165 (0x48d), region = 40  ;;  %s1602_s28 = smov (!%p204_p2), 104   ;;  %1499 = vmatprep.subr.bf16.mxu0 (!%p204_p2), %v1605_v5  ;;  %1505 = vmatprep.subr.bf16.mxu1 (!%p204_p2), %v1605_v5  ;;  %v265_v7 = vunpack.c.l.s4 (!%p204_p2), %v1607_v6  ;;  %v1608_v11 = vmov (!%p204_p2), 1934713408   ;;  %v1609_v58 = vmov (!%p204_p2), 0   ;;  %vm724_vm1 = vcmask (!%p204_p2), 64512  }
   0x7   : > { %s1603_s29 = smov (!%p204_p2), 112   ;;  %s1604_s30 = smov (!%p204_p2), 96   ;;  %1501 = vmatprep.mubr.msk.bf16.mxu0 (!%p204_p2), %vm1606_vm0, %v1605_v5  ;;  %1507 = vmatprep.mubr.msk.bf16.mxu1 (!%p204_p2), %vm1606_vm0, %v1605_v5  ;;  %v1671_v10 = vshrl.u32 (!%p204_p2), %v267_v8, 7  ;;  %v282_v12 = vunpack.c.l.s4 (!%p204_p2), %v1608_v11  ;;  %vm964_vm4 = vcmask (!%p204_p2), 1043456   ;;  %vm1303_vm5 = vcmask (!%p204_p2), 130048  }
   0x8   : > { %v266_v9 = vunpack.c.0.s8 (!%p204_p2), %v265_v7  ;;  %s1610_s13 = smov (!%p204_p2), 16   ;;  %s1611_s14 = smov (!%p204_p2), 8   ;;  %vm1305_vm6 = vcmask (!%p204_p2), 195584   ;;  %vm1331_vm7 = vcmask (!%p204_p2), 261120   ;;  %vm1376_vm8 = vcmask (!%p204_p2), 257024  }
   0x9   : > { %v283_v19 = vunpack.c.0.s8 (!%p204_p2), %v282_v12  ;;  %s1612_s15 = smov (!%p204_p2), 24  }
   0xa   : > { %v1677_v17 = vsub.s32 (!%p204_p2), %v266_v9, %v1671_v10 }
   0xb   : > { %v1687_v27 = vsub.s32 (!%p204_p2), %v283_v19, %v1671_v10 }
   0xd   : > { %s1848_s19 = smov (!%p236_p3, %s1452_s19), 1 }
   0xe   : > { %s1654_s20 = sshll.u32 %s1848_s19, 2  ;;  %s246_s8 = scalar_lea.vmem %s1843_s2, %s1848_s19 }
   0xf   : > { %s243_s23 = scalar_lea.vmem %s1842_s1, %s1654_s20  ;;  %s239_s26 = scalar_lea.vmem %s1841_s0, %s1654_s20 }
  0x10   : > { %v256_v0 = vld [vmem:[%s243_s23] sm:$0xf]  ;;  %s250_s22 = scalar_lea.vmem %s1846_s5, %s1654_s20 }
  0x11   : > { %v252_v1 = vld [vmem:[%s239_s26] sm:$0xf]  ;;  %426 = vrot.lane.b32.xlu0 %v256_v0, %s1601_s27  ;;  %430 = vrot.lane.b32.xlu1 %v256_v0, %s1602_s28  ;;  %v435_v14 = vshrl.u32 %v256_v0, 16 }
  0x12   : > { %v253_v2 = vunpack.c.l.bf16 %v252_v1 }
  0x14   : > { %v254_v3 = vmul.f32 0.35355338, %v253_v2 }
  0x15   : > { %428 = vrot.lane.b32.xlu0 %v256_v0, %s1603_s29 }
  0x16   : > { %v255_v4 = vpack.c.bf16 %v254_v3, %v254_v3 }
  0x18   : > { %258 = vrot.lane.b32.xlu1 %v255_v4, %s1601_s27  ;;  %v270_v32 = vrot.slane %v255_v4, %v1677_v17 }
  0x19   : > { %260 = vrot.lane.b32.xlu0 %v255_v4, %s1603_s29 }
  0x1c   : > { %262 = vrot.lane.b32.xlu1 %v255_v4, %s1602_s28 }
  0x1d   : > { %574 = vrot.lane.b32.xlu0 %v256_v0, %s1604_s30 }
  0x83   : > { %v427_v13 = vpop.permute.xlu0 %426  ;;  %v1673_v15 = vpop.permute.xlu1 %430 }
  0x84   : > { %v436_v16 = vshrl.u32 %v427_v13, 16  ;;  %576 = vrot.lane.b32.xlu1 %v427_v13, %s1604_s30  ;;  %v434_v18 = vpack.i.b16 %v427_v13, %v256_v0  ;;  %v442_v22 = vshrl.u32 %v1673_v15, 16 }
  0x86   : > { %v437_v20 = vpack.i.b16 %v436_v16, %v435_v14  ;;  %v451_v26 = vrot.slane %v434_v18, %v1677_v17 }
  0x87   : > { %v1679_v21 = vpop.permute.xlu0 %428 }
  0x88   : > { %v440_v23 = vpack.i.b16 %v1673_v15, %v1679_v21  ;;  %v441_v24 = vshrl.u32 %v1679_v21, 16  ;;  %v485_v30 = vrot.slane %v437_v20, %v1677_v17 }
  0x8a   : > { %v259_v25 = vpop.permute.xlu1 %258  ;;  %v443_v28 = vpack.i.b16 %v442_v22, %v441_v24  ;;  %v459_v29 = vrot.slane %v440_v23, %v1677_v17 }
  0x8b   : > { %v261_v31 = vpop.permute.xlu0 %260  ;;  %v304_v42 = vrot.slane %v259_v25, %v1677_v17 }
  0x8c   : > { %v460_v33 = vcombine.low %v451_v26, %v459_v29  ;;  %v461_v34 = vcombine.high %v451_v26, %v459_v29  ;;  %v493_v35 = vrot.slane %v443_v28, %v1677_v17  ;;  %v278_v36 = vrot.slane %v261_v31, %v1677_v17 }
  0x8e   : > { %v263_v37 = vpop.permute.xlu1 %262  ;;  %v468_v38 = vrot.slane %v460_v33, %v1687_v27  ;;  %v475_v39 = vrot.slane %v461_v34, %v1687_v27  ;;  %v494_v40 = vcombine.low %v485_v30, %v493_v35  ;;  %v495_v41 = vcombine.high %v485_v30, %v493_v35 }
  0x8f   : > { %v279_v43 = vcombine.low %v270_v32, %v278_v36  ;;  %v280_v44 = vcombine.high %v270_v32, %v278_v36  ;;  %v312_v45 = vrot.slane %v263_v37, %v1677_v17 }
  0x90   : > { %v502_v46 = vrot.slane %v494_v40, %v1687_v27  ;;  %v509_v47 = vrot.slane %v495_v41, %v1687_v27  ;;  %v512_v48 = vcombine.low %v468_v38, %v475_v39  ;;  %v1460_v49 = vcombine.high %v468_v38, %v475_v39 }
  0x91   : > { %v287_v50 = vrot.slane %v279_v43, %v1687_v27  ;;  %v294_v51 = vrot.slane %v280_v44, %v1687_v27  ;;  %v313_v52 = vcombine.low %v304_v42, %v312_v45  ;;  %v314_v53 = vcombine.high %v304_v42, %v312_v45 }
  0x92   : > { %v519_v54 = vrot.slane %v512_v48, %v1677_v17  ;;  %v527_v55 = vrot.slane %v1460_v49, %v1677_v17  ;;  %v537_v56 = vcombine.low %v502_v46, %v509_v47  ;;  %v1461_v57 = vcombine.high %v502_v46, %v509_v47 }
  0x93   : > { %v295_v59 = vcombine.high %v287_v50, %v1609_v58  ;;  %v296_v60 = vcombine.high %v294_v51, %v1609_v58  ;;  %v335_v61 = vshrl.u32 %v287_v50, 16  ;;  %v321_v62 = vrot.slane %v313_v52, %v1687_v27 }
  0x94   : > { %v328_v63 = vrot.slane %v314_v53, %v1687_v27  ;;  %v528_v0 = vcombine.low %v519_v54, %v527_v55  ;;  %v544_v1 = vrot.slane %v537_v56, %v1677_v17  ;;  %v351_v3 = vshrl.u32 %v294_v51, 16 }
  0x95   : > { %v343_v2 = vshrl.u32 %v295_v59, 16  ;;  %v359_v4 = vshrl.u32 %v296_v60, 16  ;;  %v552_v6 = vrot.slane %v1461_v57, %v1677_v17  ;;  %v329_v7 = vcombine.high %v321_v62, %v1609_v58 }
  0x96   : > { %v330_v8 = vcombine.high %v328_v63, %v1609_v58  ;;  %v333_v9 = vpack.i.b16 %v321_v62, %v287_v50  ;;  %v336_v11 = vshrl.u32 %v321_v62, 16  ;;  %v349_v12 = vpack.i.b16 %v328_v63, %v294_v51 }
  0x97   : > { %v352_v13 = vshrl.u32 %v328_v63, 16  ;;  %v535_v14 = vrot.slane %v528_v0, %v1687_v27  ;;  %v553_v16 = vcombine.low %v544_v1, %v552_v6  ;;  %v341_v19 = vpack.i.b16 %v329_v7, %v295_v59 }
  0x98   : > { %v337_v18 = vpack.i.b16 %v336_v11, %v335_v61  ;;  %v344_v20 = vshrl.u32 %v329_v7, 16  ;;  %v357_v22 = vpack.i.b16 %v330_v8, %v296_v60  ;;  %v360_v24 = vshrl.u32 %v330_v8, 16 }
  0x99   : > { %v353_v23 = vpack.i.b16 %v352_v13, %v351_v3  ;;  %v363_v25 = vcombine.low %v333_v9, %v349_v12  ;;  %v560_v26 = vrot.slane %v553_v16, %v1687_v27  ;;  %v565_v35 = vshrl.u32 %v535_v14, 16 }
  0x9a   : > { %v345_v28 = vpack.i.b16 %v344_v20, %v343_v2  ;;  %v371_v29 = vcombine.low %v341_v19, %v357_v22  ;;  %v361_v30 = vpack.i.b16 %v360_v24, %v359_v4  ;;  %v536_v44 = vcombine.high %v535_v14, %v1609_v58  ;;  %v909_v2 = vld [vmem:[%s246_s8] sm:$0x1] }
  0x9b   : > { %v388_v31 = vcombine.low %v337_v18, %v353_v23  ;;  %v564_v32 = vpack.i.b16 %v560_v26, %v535_v14  ;;  %v370_v33 = vrot.slane %v363_v25, %v1677_v17  ;;  %v566_v36 = vshrl.u32 %v560_v26, 16 }
  0x9c   : > { %v378_v34 = vrot.slane %v371_v29, %v1677_v17  ;;  %v396_v37 = vcombine.low %v345_v28, %v361_v30  ;;  %v561_v39 = vcombine.high %v560_v26, %v1609_v58  ;;  %v571_v51 = vshrl.u32 %v536_v44, 16 }
  0x9d   : > { %v729_v38 = vsel %vm724_vm1, %v564_v32, 0  ;;  %v567_v40 = vpack.i.b16 %v566_v36, %v565_v35  ;;  %v395_v42 = vrot.slane %v388_v31, %v1677_v17  ;;  %vm910_vm2 = vcmp.ne.s32.totalorder %v909_v2, 0  ;;  %v575_v35 = vpop.permute.xlu0 %574 }
  0x9e   : > { %1500 = vmatpush3.bf16.xpose.msra.mxu0 %v729_v38  ;;  %v379_v41 = vcombine.low %v370_v33, %v378_v34  ;;  %v403_v43 = vrot.slane %v396_v37, %v1677_v17  ;;  %v572_v48 = vshrl.u32 %v561_v39, 16  ;;  %v570_v50 = vpack.i.b16 %v561_v39, %v536_v44 }
  0x9f   : > { %1511 = vmatprep.subr.bf16.mxu0 %v1605_v5  ;;  %v775_v45 = vsel %vm724_vm1, %v567_v40, 0  ;;  %v914_v3 = vsub.s32 0, %v1671_v10  ;;  %v911_v4 = vsel %vm910_vm2, 1, %v1609_v58  ;;  %v585_v38 = vshrl.u32 %v575_v35, 16 }
  0xa0   : > { %1506 = vmatpush3.bf16.xpose.msra.mxu1 %v775_v45  ;;  %v386_v46 = vrot.slane %v379_v41, %v1687_v27  ;;  %v404_v47 = vcombine.low %v395_v42, %v403_v43  ;;  %v573_v55 = vpack.i.b16 %v572_v48, %v571_v51  ;;  %v821_v56 = vsel %vm724_vm1, %v570_v50, 0 }
  0xa1   : > { %1517 = vmatprep.subr.bf16.mxu1 %v1605_v5  ;;  %v915_v6 = vrot.slane %v911_v4, %v914_v3 }
  0xa2   : > { %v411_v49 = vrot.slane %v404_v47, %v1687_v27  ;;  %v416_v53 = vshrl.u32 %v386_v46, 16  ;;  %v867_v60 = vsel %vm724_vm1, %v573_v55, 0  ;;  %v387_v61 = vcombine.high %v386_v46, %v1609_v58 }
  0xa3   : > { %vm916_vm3 = vcmp.eq.s32.totalorder %v915_v6, 1 }
  0xa4   : > { %v415_v52 = vpack.i.b16 %v411_v49, %v386_v46  ;;  %v417_v54 = vshrl.u32 %v411_v49, 16  ;;  %v412_v59 = vcombine.high %v411_v49, %v1609_v58  ;;  %v422_v0 = vshrl.u32 %v387_v61, 16 }
  0xa6   : > { %1502 = vmatmul.mubr.msk.bf16.vlgmr.msra.gmra.mrb[0].mxu0 %vm724_vm1, %v415_v52  ;;  %v418_v57 = vpack.i.b16 %v417_v54, %v416_v53  ;;  %v423_v62 = vshrl.u32 %v412_v59, 16  ;;  %v421_v63 = vpack.i.b16 %v412_v59, %v387_v61 }
  0xa7   : > { %1512 = vmatpush3.bf16.xpose.msra.mxu0 %v821_v56  ;;  %1513 = vmatprep.mubr.msk.bf16.mxu0 %vm1606_vm0, %v1605_v5 }
  0xa8   : > { %1508 = vmatmul.mubr.msk.bf16.vlgmr.msra.gmra.mrb[0].mxu1 %vm724_vm1, %v418_v57  ;;  %1523 = vmatprep.subr.bf16.mxu0 %v1605_v5  ;;  %v424_v1 = vpack.i.b16 %v423_v62, %v422_v0 }
  0xa9   : > { %1518 = vmatpush3.bf16.xpose.msra.mxu1 %v867_v60  ;;  %1519 = vmatprep.mubr.msk.bf16.mxu1 %vm1606_vm0, %v1605_v5 }
  0xaa   : > { %1529 = vmatprep.subr.bf16.mxu1 %v1605_v5 }
  0xae   : > { %1514 = vmatmul.mubr.msk.bf16.vlgmr.msra.gmra.mrb[4].mxu0 %vm724_vm1, %v421_v63 }
  0xaf   : > { %1525 = vmatprep.mubr.msk.bf16.mxu0 %vm1606_vm0, %v1605_v5 }
  0xb0   : > { %1520 = vmatmul.mubr.msk.bf16.vlgmr.msra.gmra.mrb[4].mxu1 %vm724_vm1, %v424_v1 }
  0xb1   : > { %1531 = vmatprep.mubr.msk.bf16.mxu1 %vm1606_vm0, %v1605_v5 }
  0xf6   : > { %v577_v36 = vpop.permute.xlu1 %576 }
  0xf7   : > { %v584_v43 = vpack.i.b16 %v577_v36, %v575_v35 }
  0xf9   : > { %v601_v50 = vrot.slane %v584_v43, %v1677_v17 }
 0x179   : > { %v765_v7 = vpop.f32.mrb[0].mxu0 }
 0x17a   : > { %v917_v8 = vsel %vm916_vm3, -1e+09, %v765_v7  ;;  %v1503_v9 = vpop.f32.mrb[1].mxu0 }
 0x17b   : > { %v768_v11 = vpop.f32.mrb[2].mxu0  ;;  %v811_v12 = vpop.f32.mrb[0].mxu1  ;;  %v921_v13 = vsel %vm724_vm1, %v917_v8, -inf }
 0x17c   : > { %v918_v14 = vsel %vm916_vm3, -1e+09, %v811_v12  ;;  %v1509_v16 = vpop.f32.mrb[1].mxu1  ;;  %922 = vmax.xlane.f32.xlu0 %v921_v13  ;;  %v1504_v18 = vpop.f32.mrb[3].mxu0 }
 0x17d   : > { %v814_v19 = vpop.f32.mrb[2].mxu1  ;;  %v924_v10 = vsel %vm724_vm1, %v918_v14, -inf }
 0x17e   : > { %925 = vmax.xlane.f32.xlu1 %v924_v10  ;;  %v1510_v20 = vpop.f32.mrb[3].mxu1 }
 0x181   : > { %v857_v22 = vpop.f32.mrb[4].mxu0 }
 0x182   : > { %v1515_v23 = vpop.f32.mrb[5].mxu0  ;;  %v1759_v31 = vsel %vm916_vm3, -1e+09, %v857_v22 }
 0x183   : > { %v860_v24 = vpop.f32.mrb[6].mxu0  ;;  %v903_v25 = vpop.f32.mrb[4].mxu1  ;;  %v927_v33 = vsel %vm724_vm1, %v1759_v31, -inf }
 0x184   : > { %v1516_v26 = vpop.f32.mrb[7].mxu0  ;;  %v1521_v28 = vpop.f32.mrb[5].mxu1  ;;  %v1762_v32 = vsel %vm916_vm3, -1e+09, %v903_v25 }
 0x185   : > { %v906_v29 = vpop.f32.mrb[6].mxu1  ;;  %v930_v34 = vsel %vm724_vm1, %v1762_v32, -inf }
 0x186   : > { %v1522_v30 = vpop.f32.mrb[7].mxu1 }
 0x18f   : > { %580 = vrot.lane.b32.xlu1 %v1673_v15, %s1604_s30 }
 0x192   : > { %578 = vrot.lane.b32.xlu0 %v1679_v21, %s1604_s30  ;;  %v586_v21 = vshrl.u32 %v577_v36, 16 }
 0x194   : > { %v587_v45 = vpack.i.b16 %v586_v21, %v585_v38 }
 0x196   : > { %v635_v53 = vrot.slane %v587_v45, %v1677_v17 }
 0x1b1   : > { %928 = vmax.xlane.f32.xlu0 %v927_v33 }
 0x1b3   : > { %931 = vmax.xlane.f32.xlu1 %v930_v34 }
 0x209   : > { %v923_v15 = vpop.xlane.xlu0 %922 }
 0x20a   : > { %v933_v37 = vsub.f32 %v917_v8, %v923_v15 }
 0x20b   : > { %v926_v39 = vpop.xlane.xlu1 %925 }
 0x20c   : > { %v937_v40 = vmul.f32 1.442695, %v933_v37  ;;  %v934_v41 = vsub.f32 %v918_v14, %v926_v39 }
 0x20d   : > { %v579_v42 = vpop.permute.xlu0 %578 }
 0x20e   : > { %1577 = vpow2.f32 %v937_v40  ;;  %v939_v44 = vmul.f32 1.442695, %v934_v41  ;;  %v591_v47 = vshrl.u32 %v579_v42, 16 }
 0x20f   : > { %v581_v46 = vpop.permute.xlu1 %580 }
 0x210   : > { %1579 = vpow2.f32 %v939_v44  ;;  %v590_v48 = vpack.i.b16 %v581_v46, %v579_v42  ;;  %v592_v49 = vshrl.u32 %v581_v46, 16 }
 0x212   : > { %v593_v51 = vpack.i.b16 %v592_v49, %v591_v47  ;;  %v609_v52 = vrot.slane %v590_v48, %v1677_v17 }
 0x214   : > { %v610_v54 = vcombine.low %v601_v50, %v609_v52  ;;  %v611_v55 = vcombine.high %v601_v50, %v609_v52  ;;  %v643_v56 = vrot.slane %v593_v51, %v1677_v17 }
 0x216   : > { %v618_v57 = vrot.slane %v610_v54, %v1687_v27  ;;  %v625_v59 = vrot.slane %v611_v55, %v1687_v27  ;;  %v644_v60 = vcombine.low %v635_v53, %v643_v56  ;;  %v645_v61 = vcombine.high %v635_v53, %v643_v56 }
 0x218   : > { %v1578_v62 = vpop.eup %1577  ;;  %v652_v63 = vrot.slane %v644_v60, %v1687_v27  ;;  %v659_v0 = vrot.slane %v645_v61, %v1687_v27  ;;  %v662_v1 = vcombine.low %v618_v57, %v625_v59  ;;  %v1462_v2 = vcombine.high %v618_v57, %v625_v59 }
 0x219   : > { %v945_v3 = vsel %vm724_vm1, %v1578_v62, 0.0  ;;  %v957_v34 = vpack.c.bf16 %v1578_v62, %v1578_v62 }
 0x21a   : > { %v1580_v4 = vpop.eup %1579  ;;  %v669_v6 = vrot.slane %v662_v1, %v1677_v17  ;;  %v677_v7 = vrot.slane %v1462_v2, %v1677_v17  ;;  %v687_v8 = vcombine.low %v652_v63, %v659_v0  ;;  %v1463_v9 = vcombine.high %v652_v63, %v659_v0  ;;  %946 = vadd.xlane.f32.xlu0 %v945_v3 }
 0x21b   : > { %v948_v14 = vsel %vm724_vm1, %v1580_v4, 0.0  ;;  %v958_v15 = vpack.c.bf16 %v1580_v4, %v1580_v4 }
 0x21c   : > { %v694_v11 = vrot.slane %v687_v8, %v1677_v17  ;;  %v702_v12 = vrot.slane %v1463_v9, %v1677_v17  ;;  %v678_v13 = vcombine.low %v669_v6, %v677_v7 }
 0x21e   : > { %949 = vadd.xlane.f32.xlu0 %v948_v14  ;;  %v685_v16 = vrot.slane %v678_v13, %v1687_v27  ;;  %v703_v18 = vcombine.low %v694_v11, %v702_v12 }
 0x220   : > { %v710_v19 = vrot.slane %v703_v18, %v1687_v27  ;;  %v686_v10 = vcombine.high %v685_v16, %v1609_v58  ;;  %v715_v22 = vshrl.u32 %v685_v16, 16 }
 0x222   : > { %v714_v20 = vpack.i.b16 %v710_v19, %v685_v16  ;;  %v716_v23 = vshrl.u32 %v710_v19, 16  ;;  %v711_v24 = vcombine.high %v710_v19, %v1609_v58  ;;  %v721_v25 = vshrl.u32 %v686_v10, 16 }
 0x224   : > { %v966_v26 = vsel %vm964_vm4, %v714_v20, 0  ;;  %v717_v28 = vpack.i.b16 %v716_v23, %v715_v22  ;;  %v720_v29 = vpack.i.b16 %v711_v24, %v686_v10  ;;  %v722_v30 = vshrl.u32 %v711_v24, 16 }
 0x225   : > { %1524 = vmatpush3.bf16.msra.mxu0 %v966_v26 }
 0x226   : > { %v1012_v33 = vsel %vm964_vm4, %v717_v28, 0  ;;  %1535 = vmatprep.subr.bf16.mxu0 %v1605_v5  ;;  %v723_v35 = vpack.i.b16 %v722_v30, %v721_v25  ;;  %v1058_v36 = vsel %vm964_vm4, %v720_v29, 0  ;;  %v1576_v28 = vld [vmem:[%s1844_s3 + $0x8] sm:$0xff]  }
 0x227   : > { %1530 = vmatpush3.bf16.msra.mxu1 %v1012_v33 }
 0x228   : > { %1526 = vmatmul.mubr.msk.bf16.vlgmr.msra.gmra.mrb[8].mxu0 %vm724_vm1, %v957_v34  ;;  %1541 = vmatprep.subr.bf16.mxu1 %v1605_v5  ;;  %v1104_v58 = vsel %vm964_vm4, %v723_v35, 0 }
 0x229   : > { %1536 = vmatpush3.bf16.msra.mxu0 %v1058_v36  ;;  %1537 = vmatprep.mubr.msk.bf16.mxu0 %vm1606_vm0, %v1605_v5 }
 0x22a   : > { %1532 = vmatmul.mubr.msk.bf16.vlgmr.msra.gmra.mrb[8].mxu1 %vm724_vm1, %v958_v15  ;;  %1547 = vmatprep.subr.bf16.mxu0 %v1605_v5 }
 0x22b   : > { %1542 = vmatpush3.bf16.msra.mxu1 %v1104_v58  ;;  %1543 = vmatprep.mubr.msk.bf16.mxu1 %vm1606_vm0, %v1605_v5 }
 0x23e   : > { %v929_v37 = vpop.xlane.xlu0 %928 }
 0x23f   : > { %v935_v38 = vsub.f32 %v1759_v31, %v929_v37  ;;  %v1575_v31 = vld [vmem:[%s1844_s3] sm:$0xff]  }
 0x240   : > { %v932_v21 = vpop.xlane.xlu1 %931 }
 0x241   : > { %v941_v39 = vmul.f32 1.442695, %v935_v38  ;;  %v936_v40 = vsub.f32 %v1762_v32, %v932_v21 }
 0x243   : > { %1581 = vpow2.f32 %v941_v39  ;;  %v943_v41 = vmul.f32 1.442695, %v936_v40 }
 0x245   : > { %1583 = vpow2.f32 %v943_v41 }
 0x24d   : > { %v1582_v42 = vpop.eup %1581 }
 0x24e   : > { %v951_v43 = vsel %vm724_vm1, %v1582_v42, 0.0  ;;  %v959_v44 = vpack.c.bf16 %v1582_v42, %v1582_v42 }
 0x24f   : > { %v1584_v45 = vpop.eup %1583  ;;  %952 = vadd.xlane.f32.xlu1 %v951_v43 }
 0x250   : > { %1538 = vmatmul.mubr.msk.bf16.vlgmr.msra.gmra.mrb[12].mxu0 %vm724_vm1, %v959_v44  ;;  %v954_v46 = vsel %vm724_vm1, %v1584_v45, 0.0  ;;  %v960_v47 = vpack.c.bf16 %v1584_v45, %v1584_v45 }
 0x251   : > { %955 = vadd.xlane.f32.xlu0 %v954_v46  ;;  %1551 = vmatprep.mubr.msk.bf16.mxu0 %vm1606_vm0, %v1605_v5 }
 0x252   : > { %1544 = vmatmul.mubr.msk.bf16.vlgmr.msra.gmra.mrb[12].mxu1 %vm724_vm1, %v960_v47  ;;  %1548 = vmatpush3.bf16.msra.mxu0 %v1575_v31 }
 0x253   : > { %1549 = vmatprep.subr.bf16.mxu0 %v1605_v5 }
 0x256   : > { %1550 = vmatpush3.bf16.msra.mxu0 %v1576_v28 }
 0x2a7   : > { %v947_v55 = vpop.xlane.xlu0 %946 }
 0x2a8   : > { %1585 = vrcp.f32 %v947_v55  ;;  %v1474_v55 = vld [vmem:[%s1845_s4] ss:$0 sm:$0xff] }
 0x2ab   : > { %v950_v56 = vpop.xlane.xlu0 %949 }
 0x2b2   : > { %v1586_v60 = vpop.eup %1585 }
 0x2dc   : > { %v953_v57 = vpop.xlane.xlu1 %952 }
 0x2dd   : > { %1587 = vrcp.f32 %v953_v57 }
 0x2de   : > { %v956_v59 = vpop.xlane.xlu0 %955  ;;  %1589 = vrcp.f32 %v950_v56 }
 0x2df   : > { %1591 = vrcp.f32 %v956_v59 }
 0x2e7   : > { %v1588_v61 = vpop.eup %1587 }
 0x2e8   : > { %v1590_v5 = vpop.eup %1589 }
 0x2e9   : > { %v1592_v2 = vpop.eup %1591 }
 0x2fb   : > { %v1002_v32 = vpop.f32.mrb[8].mxu0 }
 0x2fc   : > { %v1527_v48 = vpop.f32.mrb[9].mxu0  ;;  %v1150_v63 = vmul.f32 %v1586_v60, %v1002_v32 }
 0x2fd   : > { %v1005_v49 = vpop.f32.mrb[10].mxu0  ;;  %v1048_v50 = vpop.f32.mrb[8].mxu1 }
 0x2fe   : > { %v1528_v51 = vpop.f32.mrb[11].mxu0  ;;  %v1533_v52 = vpop.f32.mrb[9].mxu1  ;;  %v1151_v6 = vmul.f32 %v1590_v5, %v1048_v50 }
 0x2ff   : > { %v1051_v53 = vpop.f32.mrb[10].mxu1 }
 0x300   : > { %v1534_v54 = vpop.f32.mrb[11].mxu1 }
 0x323   : > { %v1094_v62 = vpop.f32.mrb[12].mxu0 }
 0x324   : > { %v1152_v0 = vmul.f32 %v1588_v61, %v1094_v62  ;;  %v1539_v1 = vpop.f32.mrb[13].mxu0 }
 0x325   : > { %v1097_v3 = vpop.f32.mrb[14].mxu0  ;;  %v1140_v4 = vpop.f32.mrb[12].mxu1 }
 0x326   : > { %v1154_v7 = vcombine.low %v1150_v63, %v1152_v0  ;;  %v1155_v8 = vcombine.high %v1150_v63, %v1152_v0  ;;  %v1153_v9 = vmul.f32 %v1592_v2, %v1140_v4  ;;  %v1540_v11 = vpop.f32.mrb[15].mxu0  ;;  %v1545_v12 = vpop.f32.mrb[13].mxu1 }
 0x327   : > { %v1143_v13 = vpop.f32.mrb[14].mxu1 }
 0x328   : > { %v1170_v14 = vcombine.low %v1151_v6, %v1153_v9  ;;  %v1171_v16 = vcombine.high %v1151_v6, %v1153_v9  ;;  %v1546_v18 = vpop.f32.mrb[15].mxu1  ;;  %v1162_v19 = vrot.slane %v1154_v7, %v1677_v17  ;;  %v1169_v10 = vrot.slane %v1155_v8, %v1677_v17 }
 0x32a   : > { %v1178_v20 = vrot.slane %v1170_v14, %v1677_v17  ;;  %v1185_v22 = vrot.slane %v1171_v16, %v1677_v17 }
 0x32c   : > { %v1186_v23 = vcombine.low %v1162_v19, %v1178_v20  ;;  %v1187_v24 = vcombine.high %v1162_v19, %v1178_v20  ;;  %v1202_v25 = vcombine.low %v1169_v10, %v1185_v22  ;;  %v1203_v26 = vcombine.high %v1169_v10, %v1185_v22 }
 0x32e   : > { %v1194_v29 = vrot.slane %v1186_v23, %v1687_v27  ;;  %v1201_v30 = vrot.slane %v1187_v24, %v1687_v27  ;;  %v1210_v33 = vrot.slane %v1202_v25, %v1687_v27  ;;  %v1217_v34 = vrot.slane %v1203_v26, %v1687_v27 }
 0x330   : > { %v1222_v35 = vcombine.low %v1194_v29, %v1201_v30  ;;  %v1472_v36 = vcombine.high %v1194_v29, %v1201_v30  ;;  %v1238_v15 = vcombine.low %v1210_v33, %v1217_v34  ;;  %v1473_v58 = vcombine.high %v1210_v33, %v1217_v34 }
 0x332   : > { %v1229_v37 = vrot.slane %v1222_v35, %v1677_v17  ;;  %v1237_v38 = vrot.slane %v1472_v36, %v1677_v17  ;;  %v1245_v21 = vrot.slane %v1238_v15, %v1677_v17  ;;  %v1253_v39 = vrot.slane %v1473_v58, %v1677_v17 }
 0x334   : > { %v1255_v40 = vcombine.high %v1229_v37, %v1237_v38  ;;  %v1271_v41 = vcombine.high %v1245_v21, %v1253_v39  ;;  %v1254_v42 = vcombine.low %v1229_v37, %v1237_v38  ;;  %v1270_v43 = vcombine.low %v1245_v21, %v1253_v39 }
 0x336   : > { %v1269_v44 = vrot.slane %v1255_v40, %v1687_v27  ;;  %v1285_v45 = vrot.slane %v1271_v41, %v1687_v27  ;;  %v1262_v46 = vrot.slane %v1254_v42, %v1687_v27  ;;  %v1278_v47 = vrot.slane %v1270_v43, %v1687_v27 }
 0x338   : > { %v1288_v31 = vcombine.low %v1269_v44, %v1285_v45  ;;  %v1287_v32 = vcombine.high %v1262_v46, %v1278_v47  ;;  %v1289_v48 = vcombine.high %v1269_v44, %v1285_v45  ;;  %v1286_v49 = vcombine.low %v1262_v46, %v1278_v47 }
 0x33a   : > { %1295 = vrot.lane.b32.xlu0 %v1288_v31, %s1610_s13  ;;  %1291 = vrot.lane.b32.xlu1 %v1287_v32, %s1611_s14 }
 0x33e   : > { %1299 = vrot.lane.b32.xlu1 %v1289_v48, %s1612_s15 }
 0x3ac   : > { %v1292_v17 = vpop.permute.xlu1 %1291  ;;  %v1296_v50 = vpop.permute.xlu0 %1295 }
 0x3ad   : > { %v1302_v51 = vsel %vm724_vm1, %v1286_v49, %v1292_v17 }
 0x3ae   : > { %v1304_v53 = vsel %vm1303_vm5, %v1302_v51, %v1296_v50 }
 0x3b0   : > { %v1300_v52 = vpop.permute.xlu1 %1299 }
 0x3b1   : > { %v1306_v27 = vsel %vm1305_vm6, %v1304_v53, %v1300_v52 }
 0x3b2   : > { %v1307_v54 = vpack.c.bf16 %v1306_v27, %v1306_v27 }
 0x3b4   : > { %1552 = vmatmul.mubr.msk.bf16.vlgmr.msra.gmra.mrb[16].mxu0 %vm1331_vm7, %v1307_v54 }
 0x487   : > { %v1369_v56 = vpop.f32.mrb[16].mxu0 }
 0x488   : > { %v1370_v57 = vadd.f32 %v1474_v55, %v1369_v56  ;;  %v1553_v59 = vpop.f32.mrb[17].mxu0 }
 0x489   : > { %v1372_v60 = vpop.f32.mrb[18].mxu0 }
 0x48a   : > { %v1375_v61 = vpack.c.bf16 %v1370_v57, %v1370_v57  ;;  %v1554_v62 = vpop.f32.mrb[19].mxu0 }
 0x48c   : > { %1377 = vst.msk [vmem:[%s250_s22] sm:$0xf] %vm1376_vm8, %v1375_v61 }
 0x48d PF: > { %s15_s18 = sadd.s32 1, %s1599_s18  }
 0x48e   : > { %p12_p4 = scmp.ge.s32.totalorder %s15_s18, 4  }
 0x490   :  { %14 = sbr.rel (!%p12_p4) target bundleno = 1 (0x1), region = 76 }

// kernel: _lambda_.73
= control target key start
LH: loop header
LB: loop body
LE: loop exit
PB: predicated region body
PF: predicated region fallthrough
CT: control target
= control target key end

     0   :  { %8 = vsyncpa [#allocation3], 0  ;;  %s696_s0 = inlined_call_operand.vmem [shape: bf16[8,2,32], index: 0, kind: input, shape index: {}]   ;;  %s697_s1 = inlined_call_operand.vmem [shape: bf16[32,16], index: 1, kind: input, shape index: {}]   ;;  %s698_s2 = inlined_call_operand.vmem [shape: f32[1,16], index: 2, kind: input, shape index: {}]   ;;  %s699_s3 = inlined_call_operand.hbm [shape: f32[8,2,16], index: 3, kind: output, shape index: {}]  }
   0x1   :  { %10 = vsyncpa [#allocation3 + $0x1], 0  ;;  %s575_s12 = smov 0   ;;  %s577_s13 = smov 0  }
   0x2   :  { %s579_s14 = smov 0   ;;  %s581_s15 = smov 0  }
   0x3   :  { %s583_s16 = smov 0   ;;  %s585_s17 = smov 0  }
   0x4 LB: > { %s386_s18 = sadd.s32 4294967295, %s550_s17   ;;  %s387_s19 = sadd.s32 4294967294, %s550_s17   ;;  %s550_s17 = sphi %s585_s17, %s16_s17   ;;  %s546_s16 = sphi %s583_s16, %s706_s16   ;;  %s542_s15 = sphi %s581_s15, %s705_s15   ;;  %s538_s14 = sphi %s579_s14, %s704_s14   ;;  %s534_s13 = sphi %s577_s13, %s703_s13   ;;  %s530_s12 = sphi %s575_s12, %s702_s12  }
   0x5   : > { %s28_s20 = sadd.s32 1, %s546_s16  ;;  %s115_s21 = sadd.s32 1, %s538_s14 }
   0x6   : > { %p30_p0 = scmp.ge.s32.totalorder %s28_s20, 8  ;;  %p125_p1 = scmp.ne.s32.totalorder %s538_s14, %s534_s13 }
   0x7   : > { %p126_p2 = scmp.eq.s32.totalorder %s386_s18, 7  ;;  %p131_p3 = scmp.ne.s32.totalorder %s534_s13, %s530_s12 }
   0x8   : > { %s708_s20 = smov (%p30_p0, %s28_s20), 0  ;;  %p132_p5 = scmp.eq.s32.totalorder %s387_s19, 7 }
   0x9   : > { %p615_p4 = por %p126_p2, %p125_p1  ;;  %s110_s23 = ssub.s32 %s546_s16, %s708_s20 }
   0xa   : > { %p392_p6 = scmp.ge.s32.totalorder %s550_s17, 1  ;;  %p113_p7 = scmp.eq.s32.totalorder %s110_s23, 0 }
   0xb   : > { %p622_p8 = por %p132_p5, %p131_p3  ;;  %p169_p9 = scmp.lt.s32.totalorder %s550_s17, 9 }
   0xc   : > { %s628_s25 = scalar_select %p113_p7, %s538_s14, %s115_s21  }
   0xd   : > { %p170_p10 = pnand %p392_p6, %p169_p9 }
   0xe   : > { %v470_v0 = vld [vmem:[%s697_s1] sm:$0xff] (!%p170_p10)   ;;  %v552_v1 = vmov (!%p170_p10), 0.0   ;;  %v471_v2 = vld [vmem:[%s697_s1 + $0x8] sm:$0xff] (!%p170_p10)   ;;  %vm553_vm0 = vmmov (!%p170_p10), 0   ;;  %p198_p11 = scmp.lt.s32.totalorder (!%p170_p10), %s542_s15, 7  ;;  %vm233_vm1 = vcmask (!%p170_p10), 261120  }
   0xf   : > { %173 = sbr.rel (%p170_p10) target bundleno = 254 (0xfe), region = 32  ;;  %405 = vmatprep.subr.bf16.mxu0 (!%p170_p10), %v552_v1  ;;  %409 = vmatprep.mubr.msk.bf16.mxu0 (!%p170_p10), %vm553_vm0, %v552_v1  ;;  %s195_s7 = sand.u32 (!%p170_p10), 1, %s534_s13   ;;  %v394_v4 = vld [vmem:[%s698_s2] ss:$0 sm:$0xff] (!%p170_p10)  ;;  %vm277_vm2 = vcmask (!%p170_p10), 123904  }
  0x10   : > { %406 = vmatpush3.bf16.msra.mxu0 (!%p170_p10), %v470_v0  ;;  %s393_s8 = sshll.u32 (!%p170_p10), %s195_s7, 1  ;;  %s399_s11 = sshll.u32 (!%p170_p10), %s542_s15, 5 }
  0x11   : > { %407 = vmatprep.subr.bf16.mxu0 (!%p170_p10), %v552_v1  ;;  %s197_s18 = scalar_lea.vmem (!%p170_p10), [#allocation2], %s393_s8  ;;  %s649_s26 = scalar_lea.hbm (!%p170_p10), %s699_s3, %s399_s11 }
  0x12   : > { %s294_s19 = sshll.u32 (!%p170_p10), %s197_s18, 4  ;;  %s554_s28 = smov (!%p170_p10), [#allocation2]   ;;  %s651_s19 = int_to_ptr.vmem [resolvable:$true] %s294_s19 }
  0x13   : > { %s472_s27 = scalar_lea.vmem (!%p170_p10), %s651_s19, 32  ;;  %s476_s29 = sshll.u32 (!%p170_p10), %s554_s28, 4  ;;  %s477_s29 = int_to_ptr.vmem [resolvable:$false] %s476_s29 }
  0x14   : > { %408 = vmatpush3.bf16.msra.mxu0 (!%p170_p10), %v471_v2  ;;  %p473_p12 = scmp.ne.s32.totalorder (!%p170_p10), %s651_s19, %s472_s27  ;;  %p479_p1 = scmp.lt.s32.totalorder (!%p170_p10), %s651_s19, %s477_s29 }
  0x16   : > { %s199_s30 = scalar_select %p198_p11, %s542_s15, 7 }
  0x17   : > { %s280_s15 = scalar_lea.sflag [#allocation3], %s195_s7  ;;  %p474_p13 = pnand %p473_p12, %p615_p4 }
  0x18   : > { %s200_s6 = scalar_lea.vmem %s696_s0, %s199_s30  ;;  %s478_s30 = scalar_lea.vmem %s477_s29, 64 }
  0x19   : > { %v209_v3 = vld [vmem:[%s200_s6] sm:$0x1]  ;;  %p475_p0 = pneg %p474_p13  ;;  %p480_p2 = scmp.lt.s32.totalorder %s478_s30, %s472_s27 }
  0x1a   : > { %410 = vmatmul.mubr.msk.bf16.vlgmr.msra.gmra.mrb[0].mxu0 %vm233_vm1, %v209_v3 }
  0x1b   : > { %p481_p3 = por %p480_p2, %p479_p1 }
  0x1d   : > { %p482_p5 = pnand %p481_p3, %p475_p0 }
  0xed   : > { %v271_v5 = vpop.f32.mrb[0].mxu0 }
  0xee   : > { %v272_v6 = vadd.f32 %v394_v4, %v271_v5  ;;  %v411_v7 = vpop.f32.mrb[1].mxu0 }
  0xef   : > { %v274_v8 = vpop.f32.mrb[2].mxu0 }
  0xf0   : > { %v412_v9 = vpop.f32.mrb[3].mxu0  ;;  %278 = vst.msk [vmem:[%s197_s18] sm:$0x3] %vm277_vm2, %v272_v6 }
  0xf1   : > { %485 = shalt.err (!%p482_p5)
}
  0xf2   : > { %s486_s4 = scalar_lea.hbm %s649_s26, 32  ;;  %s490_s7 = scalar_lea.hbm %s699_s3, 256 }
  0xf3   : > { %p487_p6 = scmp.ne.s32.totalorder %s649_s26, %s486_s4  ;;  %p491_p10 = scmp.lt.u32.totalorder %s649_s26, %s699_s3 }
  0xf4   : > { %p492_p11 = scmp.lt.u32.totalorder %s490_s7, %s486_s4  ;;  %p494_p13 = scmp.lt.u32.totalorder %s486_s4, %s649_s26 }
  0xf5   : > { %p488_p7 = pnand %p487_p6, %p615_p4 }
  0xf6   : > { %p493_p12 = por %p492_p11, %p491_p10 }
  0xf7   : > { %p489_p9 = pneg %p488_p7 }
  0xf8   : > { %p495_p0 = por %p494_p13, %p493_p12 }
  0xfa   : > { %p496_p1 = pnand %p495_p0, %p489_p9 }
  0xfc   : > { %499 = shalt.err (!%p496_p1)
}
  0xfd   : > { %413 = dma.vmem_to_hbm [thread:$0]  (%p615_p4), %s651_s19, 32, %s649_s26, %s280_s15  }
  0xfe PF: > { %p419_p2 = scmp.ge.s32.totalorder %s550_s17, 2  ;;  %s306_s10 = sand.u32 1, %s530_s12  }
  0xff   : > { %s307_s11 = scalar_lea.sflag [#allocation3], %s306_s10 }
 0x100   : > { %p416_p3 = pnand %p419_p2, %p622_p8 }
 0x102   : > { %525 = dma.done.wait (!%p416_p3), %s307_s11, 32  }
 0x103   : > { %527 = vsyncadd (!%p416_p3), %s307_s11, 4294967264  ;;  %s16_s17 = sadd.s32 1, %s550_s17   ;;  %s702_s12 = smov %s534_s13 }
 0x104   : > { %p13_p5 = scmp.ge.s32.totalorder %s16_s17, 10   ;;  %s703_s13 = smov %s538_s14 }
 0x105   : > { %s704_s14 = smov %s628_s25  ;;  %s705_s15 = smov %s546_s16 }
 0x106   : > { %s706_s16 = smov %s708_s20  ;;  %15 = sbr.rel (!%p13_p5) target bundleno = 4 (0x4), region = 73 }
 0x10d   :  { %312 = vsyncpa [#allocation3], 1 }
 0x10e   :  { %314 = vsyncpa [#allocation3 + $0x1], 1 }

</bundles_post_ra>
